<compile_context>
chip_gen: v6e
topology: v6e:2x2x1
jax: 0.10.0
libtpu: 0.0.40
codegen_flags: <defaults>
</compile_context>

<pallas_src>
import jax
import jax.numpy as jnp
from jax.experimental import pallas as pl
from jax.experimental.pallas import tpu as pltpu

# --- model hyperparameters (small, consistent with the module's __init__) ---
BATCH = 2
INPUT_SIZE = 16          # 1-D sequence length
OUTPUT_SIZE = 8
NUM_FILTERS = 32
KERNEL_SIZE = 3
NUM_CONV_LAYERS = 2
DROPOUT = 0.0            # eval / identity
PAD = KERNEL_SIZE // 2
OFFSETS = tuple(k - PAD for k in range(KERNEL_SIZE))

B_BLK = 16               # samples packed along lanes per group: B_BLK*OUT = 128
G_SUB_MAX = 4            # groups of B_BLK handled (statically unrolled) per grid step


# --------------------------------- kernel -----------------------------------

def cnn1d_kernel(x0_ref, w0_ref, wrest_ref, wfc_ref, bias_ref, out_ref):
    # x0_ref:    (1, G_SUB, L, K*B_BLK)       layer-0 im2col (host-prepared), lanes (tap, batch)
    # w0_ref:    (K*B_BLK, B_BLK*F)           layer-0 weight, rows ordered (tap, batch)
    # wrest_ref: (NL-1, K, B_BLK*F, B_BLK*F)  per-tap batch-block-diagonal conv weights
    # wfc_ref:   (B_BLK*F, B_BLK*OUT)         fc head, batch-block-diagonal
    # bias_ref:  (NL+1, B_BLK*F)              rows 0..NL-1: conv biases (tiled over batch),
    #                                         row NL[:B_BLK*OUT]: fc bias (tiled)
    # out_ref:   (1, G_SUB, B_BLK*OUT)
    g_sub = x0_ref.shape[1]
    length = x0_ref.shape[2]
    width = w0_ref.shape[1]           # B_BLK * F
    out_w = out_ref.shape[2]          # B_BLK * OUT

    w0 = w0_ref[...]
    wfc = wfc_ref[...]
    biases = bias_ref[...]
    b0 = biases[0:1, :]
    b_rest = [biases[l + 1:l + 2, :] for l in range(NUM_CONV_LAYERS - 1)]
    b_fc = biases[NUM_CONV_LAYERS:NUM_CONV_LAYERS + 1, :out_w]

    # Row-validity masks for each non-zero conv tap offset (shared by all
    # layers / sub-groups) -- hoisted out of the loops.
    rows = jax.lax.broadcasted_iota(jnp.int32, (length, width), 0)
    masks = {o: jnp.logical_and(rows + o >= 0, rows + o < length)
             for o in OFFSETS if o != 0}

    outs = []
    for s in range(g_sub):                               # static unroll
        # --- conv layer 0 (in_channels = 1): one matmul on pre-built im2col ---
        a0 = x0_ref[0, s]                                # (L, K*B_BLK)
        h = jnp.dot(a0, w0, preferred_element_type=jnp.float32)
        h = jnp.maximum(h + b0, 0.0)                     # (L, B_BLK*F)

        # --- remaining conv layers: K accumulating tap-matmuls ---
        for l in range(NUM_CONV_LAYERS - 1):
            acc = None
            for k, o in enumerate(OFFSETS):
                if o == 0:
                    hs = h
                else:
                    # hs[t, :] = h[t + o, :] for valid t + o, else 0.
                    rolled = pltpu.roll(h, shift=(-o) % length, axis=0)
                    hs = jnp.where(masks[o], rolled, 0.0)
                t = jnp.dot(hs, wrest_ref[l, k], preferred_element_type=jnp.float32)
                acc = t if acc is None else acc + t
            h = jnp.maximum(acc + b_rest[l], 0.0)
        # TODO(synk): nn.Dropout is the identity here (dropout=0.0 / eval mode).

        # --- AdaptiveAvgPool1d(1): mean over the sequence (sublane) axis ---
        pooled = jnp.mean(h, axis=0, keepdims=True)      # (1, B_BLK*F)

        # --- fc head (batch-block-diagonal weight) ---
        y = jnp.dot(pooled, wfc, preferred_element_type=jnp.float32) + b_fc
        outs.append(y)                                   # (1, B_BLK*OUT)

    # One lane-dense (G_SUB, 128) store per grid step.
    out_ref[0] = jnp.concatenate(outs, axis=0).astype(out_ref.dtype)


# ----------------------------- host-side glue -------------------------------

def _pack_conv0_weight(w, b_blk):
    """(F, 1, K) conv0 weight -> (K*b_blk, b_blk*F), rows ordered (tap, batch)."""
    f, c, k = w.shape
    eye = jnp.eye(b_blk, dtype=jnp.float32)
    wp = jnp.einsum('fck,bd->kbcdf', w.astype(jnp.float32), eye)    # (K,b,C,b',F)
    return wp.reshape(k * b_blk * c, b_blk * f)


def _pack_conv_taps(w, b_blk):
    """(F, C, K) conv weight -> (K, b_blk*C, b_blk*F) per-tap block-diag operands."""
    f, c, k = w.shape
    eye = jnp.eye(b_blk, dtype=jnp.float32)
    wp = jnp.einsum('fck,bd->kbcdf', w.astype(jnp.float32), eye)    # (K,b,C,b',F)
    return wp.reshape(k, b_blk * c, b_blk * f)


def _pack_fc_weight(w, b_blk):
    """(OUT, F) fc weight -> (b_blk*F, b_blk*OUT) block-diag matmul operand."""
    o, f = w.shape
    eye = jnp.eye(b_blk, dtype=jnp.float32)
    wp = jnp.einsum('of,bd->bfdo', w.astype(jnp.float32), eye)      # (b,F,b',OUT)
    return wp.reshape(b_blk * f, b_blk * o)


def _im2col_layer0(xb):
    """(S, G_SUB, B_BLK, L) -> (S, G_SUB, L, K*B_BLK) with lanes ordered (tap, batch)."""
    s, gs, b, length = xb.shape
    taps = []
    for o in OFFSETS:
        if o == 0:
            taps.append(xb)
        elif o > 0:
            z = jnp.zeros(xb.shape[:-1] + (o,), xb.dtype)
            taps.append(jnp.concatenate([xb[..., o:], z], axis=-1))
        else:
            z = jnp.zeros(xb.shape[:-1] + (-o,), xb.dtype)
            taps.append(jnp.concatenate([z, xb[..., :length + o]], axis=-1))
    a = jnp.stack(taps, axis=0)                    # (K, S, GS, B, L)
    a = jnp.transpose(a, (1, 2, 4, 0, 3))          # (S, GS, L, K, B)
    return a.reshape(s, gs, length, KERNEL_SIZE * b)


def cnn1d_forward(x, params):
    """x: (N, INPUT_SIZE) f32 -> (N, OUTPUT_SIZE) f32 (CNN1DNet.forward, eval)."""
    n, length = x.shape
    assert length == INPUT_SIZE
    num_groups = -(-n // B_BLK)
    g_sub = min(G_SUB_MAX, num_groups)
    num_steps = -(-num_groups // g_sub)
    n_pad = num_steps * g_sub * B_BLK

    xf = x.astype(jnp.float32)
    if n_pad > n:
        xf = jnp.concatenate([xf, jnp.zeros((n_pad - n, length), jnp.float32)], axis=0)
    xb = xf.reshape(num_steps, g_sub, B_BLK, length)
    x0 = _im2col_layer0(xb)                                     # (S, GS, L, K*B)

    w0p = _pack_conv0_weight(params['w_conv0'], B_BLK)
    wrp = jnp.stack([_pack_conv_taps(params['w_conv_rest'][l], B_BLK)
                     for l in range(NUM_CONV_LAYERS - 1)], axis=0)
    wfcp = _pack_fc_weight(params['w_fc'], B_BLK)

    f_lanes = B_BLK * NUM_FILTERS
    biases = jnp.zeros((NUM_CONV_LAYERS + 1, f_lanes), jnp.float32)
    biases = biases.at[0].set(jnp.tile(params['b_conv0'].astype(jnp.float32), B_BLK))
    for l in range(NUM_CONV_LAYERS - 1):
        biases = biases.at[l + 1].set(
            jnp.tile(params['b_conv_rest'][l].astype(jnp.float32), B_BLK))
    biases = biases.at[NUM_CONV_LAYERS, :B_BLK * OUTPUT_SIZE].set(
        jnp.tile(params['b_fc'].astype(jnp.float32), B_BLK))

    out_w = B_BLK * OUTPUT_SIZE
    y = pl.pallas_call(
        cnn1d_kernel,
        out_shape=jax.ShapeDtypeStruct((num_steps, g_sub, out_w), jnp.float32),
        grid=(num_steps,),
        in_specs=[
            pl.BlockSpec((1, g_sub, INPUT_SIZE, KERNEL_SIZE * B_BLK),
                         lambda i: (i, 0, 0, 0)),
            pl.BlockSpec(w0p.shape, lambda i: (0, 0)),
            pl.BlockSpec(wrp.shape, lambda i: (0, 0, 0, 0)),
            pl.BlockSpec(wfcp.shape, lambda i: (0, 0)),
            pl.BlockSpec(biases.shape, lambda i: (0, 0)),
        ],
        out_specs=pl.BlockSpec((1, g_sub, out_w), lambda i: (i, 0, 0)),
        compiler_params=pltpu.CompilerParams(dimension_semantics=("parallel",)),
    )(x0, w0p, wrp, wfcp, biases)

    # lanes within a group are ordered (batch-in-group, output) -> plain reshape.
    return y.reshape(n_pad, OUTPUT_SIZE)[:n]


# ----------------------------- reference / test ------------------------------

def init_params(key):
    """Deterministic synthetic parameters in PyTorch (out, in, k) layouts."""
    ks = jax.random.split(key, 6)
    nrm = lambda k, shape, s=0.1: s * jax.random.normal(k, shape, jnp.float32)
    return dict(
        w_conv0=nrm(ks[0], (NUM_FILTERS, 1, KERNEL_SIZE)),
        b_conv0=nrm(ks[1], (NUM_FILTERS,)),
        w_conv_rest=nrm(ks[2], (NUM_CONV_LAYERS - 1, NUM_FILTERS, NUM_FILTERS, KERNEL_SIZE)),
        b_conv_rest=nrm(ks[3], (NUM_CONV_LAYERS - 1, NUM_FILTERS)),
        w_fc=nrm(ks[4], (OUTPUT_SIZE, NUM_FILTERS)),
        b_fc=nrm(ks[5], (OUTPUT_SIZE,)),
    )


def _conv1d_same(h, w, b):
    """PyTorch Conv1d with padding=K//2.  h: (N, C, L), w: (F, C, K), b: (F,)."""
    n, c, length = h.shape
    hp = jnp.pad(h, ((0, 0), (0, 0), (PAD, PAD)))
    out = jnp.zeros((n, w.shape[0], length), jnp.float32)
    for k in range(KERNEL_SIZE):
        out = out + jnp.einsum('ncl,fc->nfl', hp[:, :, k:k + length], w[:, :, k])
    return out + b[None, :, None]


def reference_forward(x, p):
    """Pure-JAX mirror of the PyTorch forward (eval mode, dropout = identity)."""
    h = x[:, None, :].astype(jnp.float32)                     # (N, 1, L)
    h = jax.nn.relu(_conv1d_same(h, p['w_conv0'], p['b_conv0']))
    for l in range(NUM_CONV_LAYERS - 1):
        h = jax.nn.relu(_conv1d_same(h, p['w_conv_rest'][l], p['b_conv_rest'][l]))
    pooled = jnp.mean(h, axis=-1)                             # (N, F)
    return pooled @ p['w_fc'].T + p['b_fc'][None]


if __name__ == "__main__":
    key = jax.random.PRNGKey(0)
    kx, kp = jax.random.split(key)
    x = jax.random.normal(kx, (BATCH, INPUT_SIZE), jnp.float32)
    params = init_params(kp)

    out = jax.block_until_ready(cnn1d_forward(x, params))
    assert out.shape == (BATCH, OUTPUT_SIZE)

    ref = jax.block_until_ready(reference_forward(x, params))
    assert jnp.allclose(out, ref, atol=1e-2, rtol=1e-2), (out, ref)

    print("KERNEL_OK")
</pallas_src>

<mosaic_0001>
module attributes {stable_mosaic.version = 11 : i64} {
  func.func @cnn1d_kernel(%arg0: i32, %arg1: memref<1x1x16x48xf32, #tpu.memory_space<vmem>>, %arg2: memref<48x512xf32, #tpu.memory_space<vmem>>, %arg3: memref<1x3x512x512xf32, #tpu.memory_space<vmem>>, %arg4: memref<512x128xf32, #tpu.memory_space<vmem>>, %arg5: memref<3x512xf32, #tpu.memory_space<vmem>>, %arg6: memref<1x1x128xf32, #tpu.memory_space<vmem>>) attributes {dimension_semantics = [#tpu.dimension_semantics<parallel>], iteration_bounds = array<i64: 1>, scalar_prefetch = 0 : i64, scratch_operands = 0 : i64, tpu.core_type = #tpu.core_type<tc>, window_params = [{transform_indices = @transform_0, window_bounds = array<i64: 1, 1, 16, 48>}, {pipeline_mode = #tpu.pipeline_mode<synchronous>, transform_indices = @transform_1, window_bounds = array<i64: 48, 512>}, {pipeline_mode = #tpu.pipeline_mode<synchronous>, transform_indices = @transform_2, window_bounds = array<i64: 1, 3, 512, 512>}, {pipeline_mode = #tpu.pipeline_mode<synchronous>, transform_indices = @transform_3, window_bounds = array<i64: 512, 128>}, {pipeline_mode = #tpu.pipeline_mode<synchronous>, transform_indices = @transform_4, window_bounds = array<i64: 3, 512>}, {transform_indices = @transform_5, window_bounds = array<i64: 1, 1, 128>}]} {
    %c0 = arith.constant 0 : index
    %c0_0 = arith.constant 0 : index
    %0 = vector.load %arg2[%c0, %c0_0] : memref<48x512xf32, #tpu.memory_space<vmem>>, vector<48x512xf32>
    %c0_1 = arith.constant 0 : index
    %c0_2 = arith.constant 0 : index
    %1 = vector.load %arg4[%c0_1, %c0_2] : memref<512x128xf32, #tpu.memory_space<vmem>>, vector<512x128xf32>
    %c0_3 = arith.constant 0 : index
    %c0_4 = arith.constant 0 : index
    %2 = vector.load %arg5[%c0_3, %c0_4] : memref<3x512xf32, #tpu.memory_space<vmem>>, vector<3x512xf32>
    %3 = vector.extract_strided_slice %2 {offsets = [0, 0], sizes = [1, 512], strides = [1, 1]} : vector<3x512xf32> to vector<1x512xf32>
    %4 = vector.extract_strided_slice %2 {offsets = [1, 0], sizes = [1, 512], strides = [1, 1]} : vector<3x512xf32> to vector<1x512xf32>
    %5 = vector.extract_strided_slice %2 {offsets = [2, 0], sizes = [1, 128], strides = [1, 1]} : vector<3x512xf32> to vector<1x128xf32>
    %6 = tpu.iota {dimensions = array<i32: 0>} : vector<16x512xi32>
    %c-1_i32 = arith.constant -1 : i32
    %7 = vector.broadcast %c-1_i32 : i32 to vector<16x512xi32>
    %8 = arith.addi %6, %7 : vector<16x512xi32>
    %c0_i32 = arith.constant 0 : i32
    %9 = vector.broadcast %c0_i32 : i32 to vector<16x512xi32>
    %10 = arith.cmpi sge, %8, %9 : vector<16x512xi32>
    %c-1_i32_5 = arith.constant -1 : i32
    %11 = vector.broadcast %c-1_i32_5 : i32 to vector<16x512xi32>
    %12 = arith.addi %6, %11 : vector<16x512xi32>
    %c16_i32 = arith.constant 16 : i32
    %13 = vector.broadcast %c16_i32 : i32 to vector<16x512xi32>
    %14 = arith.cmpi slt, %12, %13 : vector<16x512xi32>
    %15 = arith.andi %10, %14 : vector<16x512xi1>
    %c1_i32 = arith.constant 1 : i32
    %16 = vector.broadcast %c1_i32 : i32 to vector<16x512xi32>
    %17 = arith.addi %6, %16 : vector<16x512xi32>
    %c0_i32_6 = arith.constant 0 : i32
    %18 = vector.broadcast %c0_i32_6 : i32 to vector<16x512xi32>
    %19 = arith.cmpi sge, %17, %18 : vector<16x512xi32>
    %c1_i32_7 = arith.constant 1 : i32
    %20 = vector.broadcast %c1_i32_7 : i32 to vector<16x512xi32>
    %21 = arith.addi %6, %20 : vector<16x512xi32>
    %c16_i32_8 = arith.constant 16 : i32
    %22 = vector.broadcast %c16_i32_8 : i32 to vector<16x512xi32>
    %23 = arith.cmpi slt, %21, %22 : vector<16x512xi32>
    %24 = arith.andi %19, %23 : vector<16x512xi1>
    %c0_9 = arith.constant 0 : index
    %c0_10 = arith.constant 0 : index
    %c0_11 = arith.constant 0 : index
    %c0_12 = arith.constant 0 : index
    %25 = vector.load %arg1[%c0_9, %c0_10, %c0_11, %c0_12] : memref<1x1x16x48xf32, #tpu.memory_space<vmem>>, vector<1x1x16x48xf32>
    %26 = vector.shape_cast %25 : vector<1x1x16x48xf32> to vector<16x48xf32>
    %cst = arith.constant dense<0.000000e+00> : vector<16x512xf32>
    %27 = tpu.matmul %26, %0, %cst {dimension_numbers = #tpu.dot_dimension_numbers<[1], [0], [0], [1], [0, 0, 1, 1], [], []>} : vector<16x48xf32>, vector<48x512xf32>, vector<16x512xf32> -> vector<16x512xf32>
    %28 = vector.broadcast %3 : vector<1x512xf32> to vector<16x512xf32>
    %29 = arith.addf %27, %28 : vector<16x512xf32>
    %cst_13 = arith.constant 0.000000e+00 : f32
    %30 = vector.broadcast %cst_13 : f32 to vector<16x512xf32>
    %31 = arith.maximumf %29, %30 : vector<16x512xf32>
    %c1_i32_14 = arith.constant 1 : i32
    %32 = tpu.dynamic_rotate %31 by %c1_i32_14 dim 0 : vector<16x512xf32>, i32 -> vector<16x512xf32>
    %cst_15 = arith.constant 0.000000e+00 : f32
    %33 = vector.broadcast %cst_15 : f32 to vector<16x512xf32>
    %34 = arith.select %15, %32, %33 : vector<16x512xi1>, vector<16x512xf32>
    %c0_16 = arith.constant 0 : index
    %c0_17 = arith.constant 0 : index
    %c0_18 = arith.constant 0 : index
    %c0_19 = arith.constant 0 : index
    %35 = vector.load %arg3[%c0_16, %c0_17, %c0_18, %c0_19] : memref<1x3x512x512xf32, #tpu.memory_space<vmem>>, vector<1x1x512x512xf32>
    %36 = vector.shape_cast %35 : vector<1x1x512x512xf32> to vector<512x512xf32>
    %cst_20 = arith.constant dense<0.000000e+00> : vector<16x512xf32>
    %37 = tpu.matmul %34, %36, %cst_20 {dimension_numbers = #tpu.dot_dimension_numbers<[1], [0], [0], [1], [0, 0, 1, 1], [], []>} : vector<16x512xf32>, vector<512x512xf32>, vector<16x512xf32> -> vector<16x512xf32>
    %c0_21 = arith.constant 0 : index
    %c1 = arith.constant 1 : index
    %c0_22 = arith.constant 0 : index
    %c0_23 = arith.constant 0 : index
    %38 = vector.load %arg3[%c0_21, %c1, %c0_22, %c0_23] : memref<1x3x512x512xf32, #tpu.memory_space<vmem>>, vector<1x1x512x512xf32>
    %39 = vector.shape_cast %38 : vector<1x1x512x512xf32> to vector<512x512xf32>
    %cst_24 = arith.constant dense<0.000000e+00> : vector<16x512xf32>
    %40 = tpu.matmul %31, %39, %cst_24 {dimension_numbers = #tpu.dot_dimension_numbers<[1], [0], [0], [1], [0, 0, 1, 1], [], []>} : vector<16x512xf32>, vector<512x512xf32>, vector<16x512xf32> -> vector<16x512xf32>
    %41 = arith.addf %37, %40 : vector<16x512xf32>
    %c15_i32 = arith.constant 15 : i32
    %42 = tpu.dynamic_rotate %31 by %c15_i32 dim 0 : vector<16x512xf32>, i32 -> vector<16x512xf32>
    %cst_25 = arith.constant 0.000000e+00 : f32
    %43 = vector.broadcast %cst_25 : f32 to vector<16x512xf32>
    %44 = arith.select %24, %42, %43 : vector<16x512xi1>, vector<16x512xf32>
    %c0_26 = arith.constant 0 : index
    %c2 = arith.constant 2 : index
    %c0_27 = arith.constant 0 : index
    %c0_28 = arith.constant 0 : index
    %45 = vector.load %arg3[%c0_26, %c2, %c0_27, %c0_28] : memref<1x3x512x512xf32, #tpu.memory_space<vmem>>, vector<1x1x512x512xf32>
    %46 = vector.shape_cast %45 : vector<1x1x512x512xf32> to vector<512x512xf32>
    %cst_29 = arith.constant dense<0.000000e+00> : vector<16x512xf32>
    %47 = tpu.matmul %44, %46, %cst_29 {dimension_numbers = #tpu.dot_dimension_numbers<[1], [0], [0], [1], [0, 0, 1, 1], [], []>} : vector<16x512xf32>, vector<512x512xf32>, vector<16x512xf32> -> vector<16x512xf32>
    %48 = arith.addf %41, %47 : vector<16x512xf32>
    %49 = vector.broadcast %4 : vector<1x512xf32> to vector<16x512xf32>
    %50 = arith.addf %48, %49 : vector<16x512xf32>
    %cst_30 = arith.constant 0.000000e+00 : f32
    %51 = vector.broadcast %cst_30 : f32 to vector<16x512xf32>
    %52 = arith.maximumf %50, %51 : vector<16x512xf32>
    %cst_31 = arith.constant dense<0.000000e+00> : vector<512xf32>
    %53 = vector.multi_reduction <add>, %52, %cst_31 [0] : vector<16x512xf32> to vector<512xf32>
    %54 = vector.shape_cast %53 : vector<512xf32> to vector<1x512xf32>
    %cst_32 = arith.constant 1.600000e+01 : f32
    %55 = vector.broadcast %cst_32 : f32 to vector<1x512xf32>
    %56 = arith.divf %54, %55 : vector<1x512xf32>
    %cst_33 = arith.constant dense<0.000000e+00> : vector<1x128xf32>
    %57 = tpu.matmul %56, %1, %cst_33 {dimension_numbers = #tpu.dot_dimension_numbers<[1], [0], [0], [1], [0, 0, 1, 1], [], []>} : vector<1x512xf32>, vector<512x128xf32>, vector<1x128xf32> -> vector<1x128xf32>
    %58 = arith.addf %57, %5 : vector<1x128xf32>
    %c0_34 = arith.constant 0 : index
    %c0_35 = arith.constant 0 : index
    %c0_36 = arith.constant 0 : index
    %59 = vector.load %arg6[%c0_34, %c0_35, %c0_36] : memref<1x1x128xf32, #tpu.memory_space<vmem>>, vector<1x1x128xf32>
    %60 = vector.shape_cast %59 : vector<1x1x128xf32> to vector<1x128xf32>
    %61 = vector.shape_cast %58 : vector<1x128xf32> to vector<1x1x128xf32>
    tpu.vector_store %arg6[%c0_34, %c0_35, %c0_36], %61 {strides = array<i32>} : memref<1x1x128xf32, #tpu.memory_space<vmem>>, vector<1x1x128xf32>,
    return
  }
  func.func @transform_0(%arg0: i32) -> (i32, i32, i32, i32) {
    %c0_i32 = arith.constant 0 : i32
    %c0_i32_0 = arith.constant 0 : i32
    %c0_i32_1 = arith.constant 0 : i32
    %c0_i32_2 = arith.constant 0 : i32
    return %arg0, %c0_i32, %c0_i32_0, %c0_i32_1 : i32, i32, i32, i32
  }
  func.func @transform_1(%arg0: i32) -> (i32, i32) {
    %c0_i32 = arith.constant 0 : i32
    %c0_i32_0 = arith.constant 0 : i32
    %c0_i32_1 = arith.constant 0 : i32
    return %c0_i32, %c0_i32_0 : i32, i32
  }
  func.func @transform_2(%arg0: i32) -> (i32, i32, i32, i32) {
    %c0_i32 = arith.constant 0 : i32
    %c0_i32_0 = arith.constant 0 : i32
    %c0_i32_1 = arith.constant 0 : i32
    %c0_i32_2 = arith.constant 0 : i32
    %c0_i32_3 = arith.constant 0 : i32
    return %c0_i32, %c0_i32_0, %c0_i32_1, %c0_i32_2 : i32, i32, i32, i32
  }
  func.func @transform_3(%arg0: i32) -> (i32, i32) {
    %c0_i32 = arith.constant 0 : i32
    %c0_i32_0 = arith.constant 0 : i32
    %c0_i32_1 = arith.constant 0 : i32
    return %c0_i32, %c0_i32_0 : i32, i32
  }
  func.func @transform_4(%arg0: i32) -> (i32, i32) {
    %c0_i32 = arith.constant 0 : i32
    %c0_i32_0 = arith.constant 0 : i32
    %c0_i32_1 = arith.constant 0 : i32
    return %c0_i32, %c0_i32_0 : i32, i32
  }
  func.func @transform_5(%arg0: i32) -> (i32, i32, i32) {
    %c0_i32 = arith.constant 0 : i32
    %c0_i32_0 = arith.constant 0 : i32
    %c0_i32_1 = arith.constant 0 : i32
    return %arg0, %c0_i32, %c0_i32_0 : i32, i32, i32
  }
}

</mosaic_0001>

<bundles_post_ra>
// kernel: tpu_custom_call.1
= control target key start
LH: loop header
LB: loop body
LE: loop exit
PB: predicated region body
PF: predicated region fallthrough
CT: control target
= control target key end

     0   :  { %10 = vsyncpa [#allocation3], 0  ;;  %s3015_s0 = inlined_call_operand.hbm [shape: f32[1,1,16,48], index: 0, kind: input, shape index: {}]   ;;  %s3016_s1 = inlined_call_operand.hbm [shape: f32[48,512], index: 1, kind: input, shape index: {}]   ;;  %s3017_s2 = inlined_call_operand.hbm [shape: f32[1,3,512,512], index: 2, kind: input, shape index: {}]   ;;  %s3018_s3 = inlined_call_operand.hbm [shape: f32[512,128], index: 3, kind: input, shape index: {}]   ;;  %s3019_s4 = inlined_call_operand.hbm [shape: f32[3,512], index: 4, kind: input, shape index: {}]   ;;  %s3020_s5 = inlined_call_operand.hbm [shape: f32[1,1,128], index: 5, kind: output, shape index: {}]  }
   0x1   :  { %11 = vsyncpa [#allocation6], 0 }
   0x2   :  { %12 = vsyncpa [#allocation9], 0 }
   0x3   :  { %13 = vsyncpa [#allocation4], 0  ;;  %s2636_s18 = smov [#allocation5]  }
   0x4   :  { %s31_s19 = sshll.u32 %s2636_s18, 4  ;;  %s32_s19 = int_to_ptr.vmem [resolvable:$true] %s31_s19 }
   0x5   :  { %s2516_s20 = scalar_lea.vmem %s32_s19, 3072  ;;  %p2521_p1 = scmp.lt.s32.totalorder %s32_s19, %s32_s19 }
   0x6   :  { %p2517_p0 = scmp.ne.s32.totalorder %s32_s19, %s2516_s20  ;;  %p2522_p2 = scmp.lt.s32.totalorder %s2516_s20, %s2516_s20 }
   0x8   :  { %p2523_p3 = por %p2522_p2, %p2521_p1 }
   0xa   :  { %p2524_p4 = pnand %p2523_p3, %p2517_p0 }
   0xc   :  { %2527 = shalt.err (!%p2524_p4)
}
   0xd   :  { %s2637_s21 = smov 512   ;;  %s2638_s22 = smov 32  }
   0xe   :  { %37 = dma.hbm_to_vmem [thread:$0]  %s3016_s1, 3072, %s32_s19, [#allocation6], %s2637_s21, %s2637_s21, %s2638_s22  }
   0xf   :  { %s2639_s25 = smov [#allocation8]   ;;  %s2640_s27 = smov [#allocation2]  }
  0x10   :  { %s55_s26 = sshll.u32 %s2639_s25, 4  ;;  %s19_s28 = sshll.u32 %s2640_s27, 4  ;;  %s56_s26 = int_to_ptr.vmem [resolvable:$true] %s55_s26  ;;  %s20_s28 = int_to_ptr.vmem [resolvable:$true] %s19_s28 }
  0x11   :  { %s2536_s29 = scalar_lea.vmem %s56_s26, 8192  ;;  %p2541_p6 = scmp.lt.s32.totalorder %s56_s26, %s56_s26 }
  0x12   :  { %p2537_p5 = scmp.ne.s32.totalorder %s56_s26, %s2536_s29  ;;  %p2542_p7 = scmp.lt.s32.totalorder %s2536_s29, %s2536_s29 }
  0x14   :  { %p2543_p8 = por %p2542_p7, %p2541_p6 }
  0x16   :  { %p2544_p9 = pnand %p2543_p8, %p2537_p5 }
  0x18   :  { %2547 = shalt.err (!%p2544_p9)
}
  0x19   :  { %s2641_s30 = smov 128   ;;  %s2642_s6 = smov 8  }
  0x1a   :  { %61 = dma.hbm_to_vmem [thread:$0]  %s3018_s3, 8192, %s56_s26, [#allocation9], %s2641_s30, %s2641_s30, %s2642_s6  }
  0x1b   :  { %s2556_s1 = scalar_lea.vmem %s20_s28, 256  ;;  %p2561_p11 = scmp.lt.s32.totalorder %s20_s28, %s20_s28 }
  0x1c   :  { %p2557_p10 = scmp.ne.s32.totalorder %s20_s28, %s2556_s1  ;;  %p2562_p12 = scmp.lt.s32.totalorder %s2556_s1, %s2556_s1 }
  0x1e   :  { %p2563_p13 = por %p2562_p12, %p2561_p11 }
  0x20   :  { %p2564_p0 = pnand %p2563_p13, %p2557_p10 }
  0x22   :  { %2567 = shalt.err (!%p2564_p0)
}
  0x23   :  { %25 = dma.hbm_to_vmem [thread:$0]  %s3015_s0, 256, %s20_s28, [#allocation3], %s2641_s30, %s2641_s30, %s2642_s6  }
  0x24   :  { %s2643_s11 = smov [#allocation7]   ;;  %s2644_s13 = smov [#allocation10]  }
  0x25   :  { %s43_s12 = sshll.u32 %s2643_s11, 4  ;;  %s68_s14 = sshll.u32 %s2644_s13, 4  ;;  %s44_s12 = int_to_ptr.vmem [resolvable:$true] %s43_s12  ;;  %s69_s14 = int_to_ptr.vmem [resolvable:$true] %s68_s14 }
  0x26   :  { %s2576_s15 = scalar_lea.vmem %s44_s12, 98304  ;;  %p2581_p2 = scmp.lt.s32.totalorder %s44_s12, %s44_s12 }
  0x27   :  { %p2577_p1 = scmp.ne.s32.totalorder %s44_s12, %s2576_s15  ;;  %p2582_p3 = scmp.lt.s32.totalorder %s2576_s15, %s2576_s15 }
  0x29   :  { %p2583_p4 = por %p2582_p3, %p2581_p2 }
  0x2b   :  { %p2584_p5 = pnand %p2583_p4, %p2577_p1 }
  0x2d   :  { %2587 = shalt.err (!%p2584_p5)
}
  0x2e   :  { %49 = dma.hbm_to_vmem [thread:$0]  %s3017_s2, 98304, %s44_s12, [#allocation6], %s2637_s21, %s2637_s21, %s2638_s22  }
  0x2f   :  { %s2596_s0 = scalar_lea.vmem %s69_s14, 256  ;;  %p2601_p7 = scmp.lt.s32.totalorder %s69_s14, %s69_s14 }
  0x30   :  { %p2597_p6 = scmp.ne.s32.totalorder %s69_s14, %s2596_s0  ;;  %p2602_p8 = scmp.lt.s32.totalorder %s2596_s0, %s2596_s0 }
  0x32   :  { %p2603_p9 = por %p2602_p8, %p2601_p7 }
  0x34   :  { %p2604_p10 = pnand %p2603_p9, %p2597_p6 }
  0x36   :  { %2607 = shalt.err (!%p2604_p10)
}
  0x37   :  { %71 = dma.hbm_to_vmem [thread:$0]  %s3019_s4, 256, %s69_s14, [#allocation9]  }
  0x38   :  { %2628 = dma.done.wait [#allocation3], 256  }
  0x39   :  { %2629 = vsyncadd [#allocation3], 4294967040 }
  0x3a   :  { %2630 = dma.done.wait [#allocation6], 101376  }
  0x3b   :  { %2631 = vsyncadd [#allocation6], 4294865920 }
  0x3c   :  { %2632 = dma.done.wait [#allocation9], 8448  }
  0x3d   :  { %2633 = vsyncadd [#allocation9], 4294958848  ;;  %v2645_v0 = vmov 0.0   ;;  %v108_v1 = vld [vmem:[#allocation5 + $0xa8] sm:$0xff]  ;;  %v110_v2 = vld [vmem:[#allocation5 + $0xb8] sm:$0xff]  ;;  %vm236_vm0 = vcmask 392192  }
  0x3e   :  { %307 = vmatprep.mubr.f32.mxu0 %v2645_v0  ;;  %384 = vmatprep.mubr.f32.mxu1 %v2645_v0  ;;  %v107_v3 = vld [vmem:[#allocation5 + $0xa0] sm:$0xff]  ;;  %v109_v4 = vld [vmem:[#allocation5 + $0xb0] sm:$0xff]  ;;  %v104_v5 = vld [vmem:[#allocation5 + $0x88] sm:$0xff]  ;;  %s2646_s2 = smov [#allocation11]  }
  0x3f   :  { %263 = vmatprep.subr.mxu0 %v108_v1  ;;  %340 = vmatprep.subr.mxu1 %v110_v2  ;;  %v106_v6 = vld [vmem:[#allocation5 + $0x98] sm:$0xff]  ;;  %v103_v7 = vld [vmem:[#allocation5 + $0x80] sm:$0xff]  ;;  %v105_v8 = vld [vmem:[#allocation5 + $0x90] sm:$0xff]  ;;  %s2394_s4 = sshll.u32 %s2646_s2, 4  ;;  %s2395_s4 = int_to_ptr.vmem [resolvable:$true] %s2394_s4 }
  0x40   :  { %264 = vmatpush1.msra.mxu0 %v107_v3  ;;  %341 = vmatpush1.msra.mxu1 %v109_v4  ;;  %v100_v9 = vld [vmem:[#allocation5 + $0x68] sm:$0xff]  ;;  %v102_v10 = vld [vmem:[#allocation5 + $0x78] sm:$0xff]  ;;  %v99_v11 = vld [vmem:[#allocation5 + $0x60] sm:$0xff]  ;;  %s2608_s19 = scalar_lea.vmem %s2395_s4, 16  ;;  %s2612_s20 = scalar_lea.vmem %s2395_s4, 32 }
  0x41   :  { %265 = vmatprep.subr.mxu0 %v104_v5  ;;  %342 = vmatprep.subr.mxu1 %v106_v6  ;;  %v101_v12 = vld [vmem:[#allocation5 + $0x70] sm:$0xff]  ;;  %v96_v13 = vld [vmem:[#allocation5 + $0x48] sm:$0xff]  ;;  %v98_v14 = vld [vmem:[#allocation5 + $0x58] sm:$0xff]  ;;  %p2609_p11 = scmp.ne.s32.totalorder %s2395_s4, %s2608_s19  ;;  %p2613_p12 = scmp.lt.s32.totalorder %s2395_s4, %s2395_s4 }
  0x42   :  { %266 = vmatpush1.msra.mxu0 %v103_v7  ;;  %343 = vmatpush1.msra.mxu1 %v105_v8  ;;  %v95_v15 = vld [vmem:[#allocation5 + $0x40] sm:$0xff]  ;;  %v97_v16 = vld [vmem:[#allocation5 + $0x50] sm:$0xff]  ;;  %v92_v17 = vld [vmem:[#allocation5 + $0x28] sm:$0xff]  ;;  %p2614_p13 = scmp.lt.s32.totalorder %s2612_s20, %s2608_s19 }
  0x43   :  { %267 = vmatprep.subr.mxu0 %v100_v9  ;;  %344 = vmatprep.subr.mxu1 %v102_v10  ;;  %v94_v18 = vld [vmem:[#allocation5 + $0x38] sm:$0xff]  ;;  %v91_v19 = vld [vmem:[#allocation5 + $0x20] sm:$0xff]  ;;  %v93_v20 = vld [vmem:[#allocation5 + $0x30] sm:$0xff] }
  0x44   :  { %268 = vmatpush1.msra.mxu0 %v99_v11  ;;  %345 = vmatpush1.msra.mxu1 %v101_v12  ;;  %v88_v21 = vld [vmem:[#allocation5 + $0x8] sm:$0xff]  ;;  %v90_v22 = vld [vmem:[#allocation5 + $0x18] sm:$0xff]  ;;  %v87_v23 = vld [vmem:[#allocation5] sm:$0xff]  ;;  %p2615_p0 = por %p2614_p13, %p2613_p12 }
  0x45   :  { %269 = vmatprep.subr.mxu0 %v96_v13  ;;  %346 = vmatprep.subr.mxu1 %v98_v14  ;;  %v89_v24 = vld [vmem:[#allocation5 + $0x10] sm:$0xff]  ;;  %v748_v26 = vld [vmem:[#allocation7 + $0x9e8] sm:$0xff]  ;;  %v747_v28 = vld [vmem:[#allocation7 + $0x9e0] sm:$0xff] }
  0x46   :  { %270 = vmatpush1.msra.mxu0 %v95_v15  ;;  %347 = vmatpush1.msra.mxu1 %v97_v16  ;;  %v196_v25 = vld [vmem:[#allocation2] sm:$0xff]  ;;  %v876_v27 = vld [vmem:[#allocation7 + $0xde8] sm:$0xff]  ;;  %v875_v29 = vld [vmem:[#allocation7 + $0xde0] sm:$0xff]  ;;  %p2616_p1 = pnand %p2615_p0, %p2609_p11 }
  0x47   :  { %271 = vmatprep.subr.mxu0 %v92_v17  ;;  %348 = vmatprep.subr.mxu1 %v94_v18  ;;  %v197_v30 = vld [vmem:[#allocation2 + $0x8] sm:$0xff]  ;;  %v744_v31 = vld [vmem:[#allocation7 + $0x9c8] sm:$0xff]  ;;  %v743_v33 = vld [vmem:[#allocation7 + $0x9c0] sm:$0xff] }
  0x48   :  { %272 = vmatpush1.msra.mxu0 %v91_v19  ;;  %349 = vmatpush1.msra.mxu1 %v93_v20  ;;  %v872_v32 = vld [vmem:[#allocation7 + $0xdc8] sm:$0xff]  ;;  %v871_v34 = vld [vmem:[#allocation7 + $0xdc0] sm:$0xff] }
  0x49   :  { %273 = vmatprep.subr.mxu0 %v88_v21  ;;  %350 = vmatprep.subr.mxu1 %v90_v22  ;;  %v740_v35 = vld [vmem:[#allocation7 + $0x9a8] sm:$0xff]  ;;  %v739_v37 = vld [vmem:[#allocation7 + $0x9a0] sm:$0xff] }
  0x4a   :  { %274 = vmatpush1.msra.mxu0 %v87_v23  ;;  %351 = vmatpush1.msra.mxu1 %v89_v24  ;;  %v868_v36 = vld [vmem:[#allocation7 + $0xda8] sm:$0xff]  ;;  %v867_v38 = vld [vmem:[#allocation7 + $0xda0] sm:$0xff] }
  0x4b   :  { %2405 = vmatmul.mubr.msk.f32.vlgmr.msra.gmra.mxu0 %vm236_vm0, %v196_v25  ;;  %2407 = vmatmul.mubr.msk.f32.vlgmr.msra.gmra.mxu1 %vm236_vm0, %v196_v25  ;;  %v736_v39 = vld [vmem:[#allocation7 + $0x988] sm:$0xff]  ;;  %v735_v41 = vld [vmem:[#allocation7 + $0x980] sm:$0xff] }
  0x4c   :  { %313 = vmatprep.mubr.f32.mxu0 %v2645_v0  ;;  %390 = vmatprep.mubr.f32.mxu1 %v2645_v0  ;;  %v864_v40 = vld [vmem:[#allocation7 + $0xd88] sm:$0xff]  ;;  %v863_v42 = vld [vmem:[#allocation7 + $0xd80] sm:$0xff] }
  0x4d   :  { %943 = vmatprep.subr.mxu0 %v748_v26  ;;  %1020 = vmatprep.subr.mxu1 %v876_v27  ;;  %v732_v43 = vld [vmem:[#allocation7 + $0x968] sm:$0xff]  ;;  %v731_v45 = vld [vmem:[#allocation7 + $0x960] sm:$0xff] }
  0x4e   :  { %944 = vmatpush1.msra.mxu0 %v747_v28  ;;  %1021 = vmatpush1.msra.mxu1 %v875_v29  ;;  %v860_v44 = vld [vmem:[#allocation7 + $0xd68] sm:$0xff]  ;;  %v859_v46 = vld [vmem:[#allocation7 + $0xd60] sm:$0xff] }
  0x4f   :  { %2406 = vmatmul.mubr.msk.f32.gmra.mxu0 %vm236_vm0, %v197_v30  ;;  %2408 = vmatmul.mubr.msk.f32.gmra.mxu1 %vm236_vm0, %v197_v30  ;;  %v728_v47 = vld [vmem:[#allocation7 + $0x948] sm:$0xff]  ;;  %v727_v49 = vld [vmem:[#allocation7 + $0x940] sm:$0xff] }
  0x50   :  { %945 = vmatprep.subr.mxu0 %v744_v31  ;;  %1022 = vmatprep.subr.mxu1 %v872_v32  ;;  %v856_v48 = vld [vmem:[#allocation7 + $0xd48] sm:$0xff]  ;;  %v855_v50 = vld [vmem:[#allocation7 + $0xd40] sm:$0xff] }
  0x51   :  { %946 = vmatpush1.msra.mxu0 %v743_v33  ;;  %1023 = vmatpush1.msra.mxu1 %v871_v34  ;;  %v724_v51 = vld [vmem:[#allocation7 + $0x928] sm:$0xff]  ;;  %v723_v53 = vld [vmem:[#allocation7 + $0x920] sm:$0xff] }
  0x52   :  { %947 = vmatprep.subr.mxu0 %v740_v35  ;;  %1024 = vmatprep.subr.mxu1 %v868_v36  ;;  %v852_v52 = vld [vmem:[#allocation7 + $0xd28] sm:$0xff]  ;;  %v851_v54 = vld [vmem:[#allocation7 + $0xd20] sm:$0xff] }
  0x53   :  { %948 = vmatpush1.msra.mxu0 %v739_v37  ;;  %1025 = vmatpush1.msra.mxu1 %v867_v38  ;;  %v720_v55 = vld [vmem:[#allocation7 + $0x908] sm:$0xff]  ;;  %v719_v57 = vld [vmem:[#allocation7 + $0x900] sm:$0xff] }
  0x54   :  { %949 = vmatprep.subr.mxu0 %v736_v39  ;;  %1026 = vmatprep.subr.mxu1 %v864_v40  ;;  %v848_v56 = vld [vmem:[#allocation7 + $0xd08] sm:$0xff]  ;;  %v847_v58 = vld [vmem:[#allocation7 + $0xd00] sm:$0xff] }
  0x55   :  { %950 = vmatpush1.msra.mxu0 %v735_v41  ;;  %1027 = vmatpush1.msra.mxu1 %v863_v42  ;;  %v716_v59 = vld [vmem:[#allocation7 + $0x8e8] sm:$0xff]  ;;  %v715_v61 = vld [vmem:[#allocation7 + $0x8e0] sm:$0xff] }
  0x56   :  { %951 = vmatprep.subr.mxu0 %v732_v43  ;;  %1028 = vmatprep.subr.mxu1 %v860_v44  ;;  %v844_v60 = vld [vmem:[#allocation7 + $0xce8] sm:$0xff]  ;;  %v843_v62 = vld [vmem:[#allocation7 + $0xce0] sm:$0xff] }
  0x57   :  { %952 = vmatpush1.msra.mxu0 %v731_v45  ;;  %1029 = vmatpush1.msra.mxu1 %v859_v46  ;;  %v712_v63 = vld [vmem:[#allocation7 + $0x8c8] sm:$0xff]  ;;  %v711_v1 = vld [vmem:[#allocation7 + $0x8c0] sm:$0xff] }
  0x58   :  { %953 = vmatprep.subr.mxu0 %v728_v47  ;;  %1030 = vmatprep.subr.mxu1 %v856_v48  ;;  %v840_v0 = vld [vmem:[#allocation7 + $0xcc8] sm:$0xff]  ;;  %v839_v2 = vld [vmem:[#allocation7 + $0xcc0] sm:$0xff] }
  0x59   :  { %954 = vmatpush1.msra.mxu0 %v727_v49  ;;  %1031 = vmatpush1.msra.mxu1 %v855_v50  ;;  %v708_v3 = vld [vmem:[#allocation7 + $0x8a8] sm:$0xff]  ;;  %v707_v5 = vld [vmem:[#allocation7 + $0x8a0] sm:$0xff] }
  0x5a   :  { %955 = vmatprep.subr.mxu0 %v724_v51  ;;  %1032 = vmatprep.subr.mxu1 %v852_v52  ;;  %v836_v4 = vld [vmem:[#allocation7 + $0xca8] sm:$0xff]  ;;  %v835_v6 = vld [vmem:[#allocation7 + $0xca0] sm:$0xff] }
  0x5b   :  { %956 = vmatpush1.msra.mxu0 %v723_v53  ;;  %1033 = vmatpush1.msra.mxu1 %v851_v54  ;;  %v704_v7 = vld [vmem:[#allocation7 + $0x888] sm:$0xff]  ;;  %v703_v9 = vld [vmem:[#allocation7 + $0x880] sm:$0xff] }
  0x5c   :  { %957 = vmatprep.subr.mxu0 %v720_v55  ;;  %1034 = vmatprep.subr.mxu1 %v848_v56  ;;  %v832_v8 = vld [vmem:[#allocation7 + $0xc88] sm:$0xff]  ;;  %v831_v10 = vld [vmem:[#allocation7 + $0xc80] sm:$0xff] }
  0x5d   :  { %958 = vmatpush1.msra.mxu0 %v719_v57  ;;  %1035 = vmatpush1.msra.mxu1 %v847_v58  ;;  %v700_v11 = vld [vmem:[#allocation7 + $0x868] sm:$0xff]  ;;  %v699_v13 = vld [vmem:[#allocation7 + $0x860] sm:$0xff] }
  0x5e   :  { %959 = vmatprep.subr.mxu0 %v716_v59  ;;  %1036 = vmatprep.subr.mxu1 %v844_v60  ;;  %v828_v12 = vld [vmem:[#allocation7 + $0xc68] sm:$0xff]  ;;  %v827_v14 = vld [vmem:[#allocation7 + $0xc60] sm:$0xff] }
  0x5f   :  { %960 = vmatpush1.msra.mxu0 %v715_v61  ;;  %1037 = vmatpush1.msra.mxu1 %v843_v62  ;;  %v696_v15 = vld [vmem:[#allocation7 + $0x848] sm:$0xff]  ;;  %v695_v17 = vld [vmem:[#allocation7 + $0x840] sm:$0xff] }
  0x60   :  { %961 = vmatprep.subr.mxu0 %v712_v63  ;;  %1038 = vmatprep.subr.mxu1 %v840_v0  ;;  %v824_v16 = vld [vmem:[#allocation7 + $0xc48] sm:$0xff]  ;;  %v823_v18 = vld [vmem:[#allocation7 + $0xc40] sm:$0xff] }
  0x61   :  { %962 = vmatpush1.msra.mxu0 %v711_v1  ;;  %1039 = vmatpush1.msra.mxu1 %v839_v2  ;;  %v692_v19 = vld [vmem:[#allocation7 + $0x828] sm:$0xff]  ;;  %v691_v21 = vld [vmem:[#allocation7 + $0x820] sm:$0xff] }
  0x62   :  { %963 = vmatprep.subr.mxu0 %v708_v3  ;;  %1040 = vmatprep.subr.mxu1 %v836_v4  ;;  %v820_v20 = vld [vmem:[#allocation7 + $0xc28] sm:$0xff]  ;;  %v819_v22 = vld [vmem:[#allocation7 + $0xc20] sm:$0xff] }
  0x63   :  { %964 = vmatpush1.msra.mxu0 %v707_v5  ;;  %1041 = vmatpush1.msra.mxu1 %v835_v6  ;;  %v688_v23 = vld [vmem:[#allocation7 + $0x808] sm:$0xff]  ;;  %v687_v25 = vld [vmem:[#allocation7 + $0x800] sm:$0xff] }
  0x64   :  { %965 = vmatprep.subr.mxu0 %v704_v7  ;;  %1042 = vmatprep.subr.mxu1 %v832_v8  ;;  %v816_v24 = vld [vmem:[#allocation7 + $0xc08] sm:$0xff]  ;;  %v815_v26 = vld [vmem:[#allocation7 + $0xc00] sm:$0xff] }
  0x65   :  { %966 = vmatpush1.msra.mxu0 %v703_v9  ;;  %1043 = vmatpush1.msra.mxu1 %v831_v10  ;;  %v812_v27 = vld [vmem:[#allocation7 + $0xbe8] sm:$0xff]  ;;  %v811_v29 = vld [vmem:[#allocation7 + $0xbe0] sm:$0xff] }
  0x66   :  { %967 = vmatprep.subr.mxu0 %v700_v11  ;;  %1044 = vmatprep.subr.mxu1 %v828_v12  ;;  %v940_v28 = vld [vmem:[#allocation7 + $0xfe8] sm:$0xff]  ;;  %v939_v30 = vld [vmem:[#allocation7 + $0xfe0] sm:$0xff] }
  0x67   :  { %968 = vmatpush1.msra.mxu0 %v699_v13  ;;  %1045 = vmatpush1.msra.mxu1 %v827_v14  ;;  %v808_v31 = vld [vmem:[#allocation7 + $0xbc8] sm:$0xff]  ;;  %v807_v33 = vld [vmem:[#allocation7 + $0xbc0] sm:$0xff] }
  0x68   :  { %969 = vmatprep.subr.mxu0 %v696_v15  ;;  %1046 = vmatprep.subr.mxu1 %v824_v16  ;;  %v936_v32 = vld [vmem:[#allocation7 + $0xfc8] sm:$0xff]  ;;  %v935_v34 = vld [vmem:[#allocation7 + $0xfc0] sm:$0xff] }
  0x69   :  { %970 = vmatpush1.msra.mxu0 %v695_v17  ;;  %1047 = vmatpush1.msra.mxu1 %v823_v18  ;;  %v804_v35 = vld [vmem:[#allocation7 + $0xba8] sm:$0xff]  ;;  %v803_v37 = vld [vmem:[#allocation7 + $0xba0] sm:$0xff] }
  0x6a   :  { %971 = vmatprep.subr.mxu0 %v692_v19  ;;  %1048 = vmatprep.subr.mxu1 %v820_v20  ;;  %v932_v36 = vld [vmem:[#allocation7 + $0xfa8] sm:$0xff]  ;;  %v931_v38 = vld [vmem:[#allocation7 + $0xfa0] sm:$0xff] }
  0x6b   :  { %972 = vmatpush1.msra.mxu0 %v691_v21  ;;  %1049 = vmatpush1.msra.mxu1 %v819_v22  ;;  %v800_v39 = vld [vmem:[#allocation7 + $0xb88] sm:$0xff]  ;;  %v799_v41 = vld [vmem:[#allocation7 + $0xb80] sm:$0xff] }
  0x6c   :  { %973 = vmatprep.subr.mxu0 %v688_v23  ;;  %1050 = vmatprep.subr.mxu1 %v816_v24  ;;  %v928_v40 = vld [vmem:[#allocation7 + $0xf88] sm:$0xff]  ;;  %v927_v42 = vld [vmem:[#allocation7 + $0xf80] sm:$0xff] }
  0x6d   :  { %974 = vmatpush1.msra.mxu0 %v687_v25  ;;  %1051 = vmatpush1.msra.mxu1 %v815_v26  ;;  %v796_v43 = vld [vmem:[#allocation7 + $0xb68] sm:$0xff]  ;;  %v795_v45 = vld [vmem:[#allocation7 + $0xb60] sm:$0xff] }
  0x6e   :  { %975 = vmatprep.subr.mxu0 %v812_v27  ;;  %1052 = vmatprep.subr.mxu1 %v940_v28  ;;  %v924_v44 = vld [vmem:[#allocation7 + $0xf68] sm:$0xff]  ;;  %v923_v46 = vld [vmem:[#allocation7 + $0xf60] sm:$0xff]  ;;  %v750_v27 = vld [vmem:[#allocation7 + $0x9f8] sm:$0xff] }
  0x6f   :  { %976 = vmatpush2.msra.mxu0 %v811_v29  ;;  %1053 = vmatpush2.msra.mxu1 %v939_v30  ;;  %v792_v47 = vld [vmem:[#allocation7 + $0xb48] sm:$0xff]  ;;  %v791_v49 = vld [vmem:[#allocation7 + $0xb40] sm:$0xff]  ;;  %v878_v28 = vld [vmem:[#allocation7 + $0xdf8] sm:$0xff]  ;;  %v177_v29 = vlaneseq }
  0x70   :  { %977 = vmatprep.subr.mxu0 %v808_v31  ;;  %1054 = vmatprep.subr.mxu1 %v936_v32  ;;  %v920_v48 = vld [vmem:[#allocation7 + $0xf48] sm:$0xff]  ;;  %v919_v50 = vld [vmem:[#allocation7 + $0xf40] sm:$0xff] }
  0x71   :  { %978 = vmatpush2.msra.mxu0 %v807_v33  ;;  %1055 = vmatpush2.msra.mxu1 %v935_v34  ;;  %v788_v51 = vld [vmem:[#allocation7 + $0xb28] sm:$0xff]  ;;  %v787_v53 = vld [vmem:[#allocation7 + $0xb20] sm:$0xff]  ;;  %v2702_v30 = vshrl.u32 %v177_v29, 7  ;;  %v722_v29 = vld [vmem:[#allocation7 + $0x918] sm:$0xff] }
  0x72   :  { %979 = vmatprep.subr.mxu0 %v804_v35  ;;  %1056 = vmatprep.subr.mxu1 %v932_v36  ;;  %v916_v52 = vld [vmem:[#allocation7 + $0xf28] sm:$0xff]  ;;  %v915_v54 = vld [vmem:[#allocation7 + $0xf20] sm:$0xff] }
  0x73   :  { %980 = vmatpush2.msra.mxu0 %v803_v37  ;;  %1057 = vmatpush2.msra.mxu1 %v931_v38  ;;  %v784_v55 = vld [vmem:[#allocation7 + $0xb08] sm:$0xff]  ;;  %v783_v57 = vld [vmem:[#allocation7 + $0xb00] sm:$0xff]  ;;  %v202_v31 = vsub.s32 0, %v2702_v30  ;;  %v206_v32 = vsub.s32 4, %v2702_v30  ;;  %vm413_vm2 = vcmp.lt.s32.totalorder %v2702_v30, 1  ;;  %vm1567_vm3 = vcmp.lt.s32.totalorder %v2702_v30, 7 }
  0x74   :  { %981 = vmatprep.subr.mxu0 %v800_v39  ;;  %1058 = vmatprep.subr.mxu1 %v928_v40  ;;  %v912_v56 = vld [vmem:[#allocation7 + $0xf08] sm:$0xff]  ;;  %v911_v58 = vld [vmem:[#allocation7 + $0xf00] sm:$0xff] }
  0x75   :  { %982 = vmatpush2.msra.mxu0 %v799_v41  ;;  %1059 = vmatpush2.msra.mxu1 %v927_v42  ;;  %v780_v59 = vld [vmem:[#allocation7 + $0xae8] sm:$0xff]  ;;  %v779_v61 = vld [vmem:[#allocation7 + $0xae0] sm:$0xff] }
  0x76   :  { %983 = vmatprep.subr.mxu0 %v796_v43  ;;  %1060 = vmatprep.subr.mxu1 %v924_v44  ;;  %v908_v60 = vld [vmem:[#allocation7 + $0xee8] sm:$0xff]  ;;  %v907_v62 = vld [vmem:[#allocation7 + $0xee0] sm:$0xff] }
  0x77   :  { %984 = vmatpush2.msra.mxu0 %v795_v45  ;;  %1061 = vmatpush2.msra.mxu1 %v923_v46  ;;  %v776_v63 = vld [vmem:[#allocation7 + $0xac8] sm:$0xff]  ;;  %v775_v1 = vld [vmem:[#allocation7 + $0xac0] sm:$0xff] }
  0x78   :  { %985 = vmatprep.subr.mxu0 %v792_v47  ;;  %1062 = vmatprep.subr.mxu1 %v920_v48  ;;  %v904_v0 = vld [vmem:[#allocation7 + $0xec8] sm:$0xff]  ;;  %v903_v2 = vld [vmem:[#allocation7 + $0xec0] sm:$0xff] }
  0x79   :  { %986 = vmatpush2.msra.mxu0 %v791_v49  ;;  %1063 = vmatpush2.msra.mxu1 %v919_v50  ;;  %v772_v3 = vld [vmem:[#allocation7 + $0xaa8] sm:$0xff]  ;;  %v771_v5 = vld [vmem:[#allocation7 + $0xaa0] sm:$0xff] }
  0x7a   :  { %987 = vmatprep.subr.mxu0 %v788_v51  ;;  %1064 = vmatprep.subr.mxu1 %v916_v52  ;;  %v900_v4 = vld [vmem:[#allocation7 + $0xea8] sm:$0xff]  ;;  %v899_v6 = vld [vmem:[#allocation7 + $0xea0] sm:$0xff] }
  0x7b   :  { %988 = vmatpush2.msra.mxu0 %v787_v53  ;;  %1065 = vmatpush2.msra.mxu1 %v915_v54  ;;  %v768_v7 = vld [vmem:[#allocation7 + $0xa88] sm:$0xff]  ;;  %v767_v9 = vld [vmem:[#allocation7 + $0xa80] sm:$0xff] }
  0x7c   :  { %989 = vmatprep.subr.mxu0 %v784_v55  ;;  %1066 = vmatprep.subr.mxu1 %v912_v56  ;;  %v896_v8 = vld [vmem:[#allocation7 + $0xe88] sm:$0xff]  ;;  %v895_v10 = vld [vmem:[#allocation7 + $0xe80] sm:$0xff] }
  0x7d   :  { %990 = vmatpush2.msra.mxu0 %v783_v57  ;;  %1067 = vmatpush2.msra.mxu1 %v911_v58  ;;  %v764_v11 = vld [vmem:[#allocation7 + $0xa68] sm:$0xff]  ;;  %v763_v13 = vld [vmem:[#allocation7 + $0xa60] sm:$0xff] }
  0x7e   :  { %991 = vmatprep.subr.mxu0 %v780_v59  ;;  %1068 = vmatprep.subr.mxu1 %v908_v60  ;;  %v892_v12 = vld [vmem:[#allocation7 + $0xe68] sm:$0xff]  ;;  %v891_v14 = vld [vmem:[#allocation7 + $0xe60] sm:$0xff] }
  0x7f   :  { %992 = vmatpush2.msra.mxu0 %v779_v61  ;;  %1069 = vmatpush2.msra.mxu1 %v907_v62  ;;  %v760_v15 = vld [vmem:[#allocation7 + $0xa48] sm:$0xff]  ;;  %v759_v17 = vld [vmem:[#allocation7 + $0xa40] sm:$0xff]  ;;  %v749_v61 = vld [vmem:[#allocation7 + $0x9f0] sm:$0xff] }
  0x80   :  { %993 = vmatprep.subr.mxu0 %v776_v63  ;;  %1070 = vmatprep.subr.mxu1 %v904_v0  ;;  %v888_v16 = vld [vmem:[#allocation7 + $0xe48] sm:$0xff]  ;;  %v887_v18 = vld [vmem:[#allocation7 + $0xe40] sm:$0xff]  ;;  %v877_v62 = vld [vmem:[#allocation7 + $0xdf0] sm:$0xff] }
  0x81   :  { %994 = vmatpush2.msra.mxu0 %v775_v1  ;;  %1071 = vmatpush2.msra.mxu1 %v903_v2  ;;  %v756_v19 = vld [vmem:[#allocation7 + $0xa28] sm:$0xff]  ;;  %v755_v21 = vld [vmem:[#allocation7 + $0xa20] sm:$0xff]  ;;  %v746_v63 = vld [vmem:[#allocation7 + $0x9d8] sm:$0xff] }
  0x82   :  { %995 = vmatprep.subr.mxu0 %v772_v3  ;;  %1072 = vmatprep.subr.mxu1 %v900_v4  ;;  %v884_v20 = vld [vmem:[#allocation7 + $0xe28] sm:$0xff]  ;;  %v883_v22 = vld [vmem:[#allocation7 + $0xe20] sm:$0xff]  ;;  %v874_v0 = vld [vmem:[#allocation7 + $0xdd8] sm:$0xff] }
  0x83   :  { %996 = vmatpush2.msra.mxu0 %v771_v5  ;;  %1073 = vmatpush2.msra.mxu1 %v899_v6  ;;  %v752_v23 = vld [vmem:[#allocation7 + $0xa08] sm:$0xff]  ;;  %v751_v25 = vld [vmem:[#allocation7 + $0xa00] sm:$0xff]  ;;  %v745_v5 = vld [vmem:[#allocation7 + $0x9d0] sm:$0xff] }
  0x84   :  { %997 = vmatprep.subr.mxu0 %v768_v7  ;;  %1074 = vmatprep.subr.mxu1 %v896_v8  ;;  %v880_v24 = vld [vmem:[#allocation7 + $0xe08] sm:$0xff]  ;;  %v879_v26 = vld [vmem:[#allocation7 + $0xe00] sm:$0xff]  ;;  %v873_v6 = vld [vmem:[#allocation7 + $0xdd0] sm:$0xff] }
  0x85   :  { %998 = vmatpush2.msra.mxu0 %v767_v9  ;;  %1075 = vmatpush2.msra.mxu1 %v895_v10  ;;  %v175_v33 = vld [vmem:[#allocation10] sm:$0x77]  ;;  %v176_v34 = vld [vmem:[#allocation10 + $0x8] sm:$0x77]  ;;  %v742_v7 = vld [vmem:[#allocation7 + $0x9b8] sm:$0xff] }
  0x86   :  { %999 = vmatprep.subr.mxu0 %v764_v11  ;;  %1076 = vmatprep.subr.mxu1 %v892_v12  ;;  %v203_v35 = vrot.slane %v175_v33, %v202_v31  ;;  %v211_v36 = vrot.slane %v176_v34, %v202_v31  ;;  %v207_v37 = vrot.slane %v175_v33, %v206_v32  ;;  %v870_v8 = vld [vmem:[#allocation7 + $0xdb8] sm:$0xff]  ;;  %v741_v11 = vld [vmem:[#allocation7 + $0x9b0] sm:$0xff] }
  0x87   :  { %1000 = vmatpush2.msra.mxu0 %v763_v13  ;;  %1077 = vmatpush2.msra.mxu1 %v891_v14  ;;  %v215_v38 = vrot.slane %v176_v34, %v206_v32  ;;  %v869_v12 = vld [vmem:[#allocation7 + $0xdb0] sm:$0xff]  ;;  %v738_v13 = vld [vmem:[#allocation7 + $0x998] sm:$0xff] }
  0x88   :  { %1001 = vmatprep.subr.mxu0 %v760_v15  ;;  %1078 = vmatprep.subr.mxu1 %v888_v16  ;;  %v223_v39 = vrot.slane %v203_v35, %v202_v31  ;;  %v231_v40 = vrot.slane %v211_v36, %v202_v31  ;;  %v227_v41 = vrot.slane %v207_v37, %v202_v31  ;;  %v866_v14 = vld [vmem:[#allocation7 + $0xd98] sm:$0xff]  ;;  %v737_v15 = vld [vmem:[#allocation7 + $0x990] sm:$0xff] }
  0x89   :  { %1002 = vmatpush2.msra.mxu0 %v759_v17  ;;  %1079 = vmatpush2.msra.mxu1 %v887_v18  ;;  %v235_v42 = vrot.slane %v215_v38, %v202_v31  ;;  %v865_v16 = vld [vmem:[#allocation7 + $0xd90] sm:$0xff]  ;;  %v734_v17 = vld [vmem:[#allocation7 + $0x978] sm:$0xff] }
  0x8a   :  { %1003 = vmatprep.subr.mxu0 %v756_v19  ;;  %1080 = vmatprep.subr.mxu1 %v884_v20  ;;  %v862_v18 = vld [vmem:[#allocation7 + $0xd78] sm:$0xff]  ;;  %v733_v19 = vld [vmem:[#allocation7 + $0x970] sm:$0xff] }
  0x8b   :  { %1004 = vmatpush2.msra.mxu0 %v755_v21  ;;  %1081 = vmatpush2.msra.mxu1 %v883_v22  ;;  %v861_v20 = vld [vmem:[#allocation7 + $0xd70] sm:$0xff]  ;;  %v730_v21 = vld [vmem:[#allocation7 + $0x958] sm:$0xff] }
  0x8c   :  { %1005 = vmatprep.subr.mxu0 %v752_v23  ;;  %1082 = vmatprep.subr.mxu1 %v880_v24  ;;  %v858_v22 = vld [vmem:[#allocation7 + $0xd58] sm:$0xff]  ;;  %v729_v23 = vld [vmem:[#allocation7 + $0x950] sm:$0xff] }
  0x8d   :  { %1006 = vmatpush2.msra.mxu0 %v751_v25  ;;  %1083 = vmatpush2.msra.mxu1 %v879_v26  ;;  %v857_v24 = vld [vmem:[#allocation7 + $0xd50] sm:$0xff]  ;;  %v726_v25 = vld [vmem:[#allocation7 + $0x938] sm:$0xff] }
  0x8e   :  { %1097 = vmatprep.subr.mxu0 %v750_v27  ;;  %1174 = vmatprep.subr.mxu1 %v878_v28  ;;  %v854_v26 = vld [vmem:[#allocation7 + $0xd38] sm:$0xff]  ;;  %v725_v27 = vld [vmem:[#allocation7 + $0x930] sm:$0xff] }
  0x8f   :  { %v853_v28 = vld [vmem:[#allocation7 + $0xd30] sm:$0xff]  ;;  %v850_v31 = vld [vmem:[#allocation7 + $0xd18] sm:$0xff] }
  0x90   :  { %v721_v32 = vld [vmem:[#allocation7 + $0x910] sm:$0xff]  ;;  %v718_v34 = vld [vmem:[#allocation7 + $0x8f8] sm:$0xff] }
  0x91   :  { %v849_v33 = vld [vmem:[#allocation7 + $0xd10] sm:$0xff]  ;;  %v846_v35 = vld [vmem:[#allocation7 + $0xcf8] sm:$0xff] }
  0x92   :  { %v717_v36 = vld [vmem:[#allocation7 + $0x8f0] sm:$0xff]  ;;  %v714_v38 = vld [vmem:[#allocation7 + $0x8d8] sm:$0xff] }
  0x93   :  { %v845_v37 = vld [vmem:[#allocation7 + $0xcf0] sm:$0xff] }
 0x10b   :  { %v309_v43 = vpop.f32.mrf.mxu0  ;;  %v386_v44 = vpop.f32.mrf.mxu1 }
 0x10c   :  { %v310_v47 = vadd.f32 %v309_v43, %v223_v39  ;;  %v387_v48 = vadd.f32 %v386_v44, %v231_v40  ;;  %v838_v43 = vld [vmem:[#allocation7 + $0xcb8] sm:$0xff]  ;;  %v709_v44 = vld [vmem:[#allocation7 + $0x8b0] sm:$0xff] }
 0x10d   :  { %v311_v45 = vpop.f32.mrf.mxu0  ;;  %v388_v46 = vpop.f32.mrf.mxu1 }
 0x10e   :  { %v312_v49 = vadd.f32 %v311_v45, %v227_v41  ;;  %v389_v50 = vadd.f32 %v388_v46, %v235_v42  ;;  %v2710_v57 = vmax.f32 %v310_v47, 0.0  ;;  %v2712_v58 = vmax.f32 %v387_v48, 0.0  ;;  %v837_v45 = vld [vmem:[#allocation7 + $0xcb0] sm:$0xff]  ;;  %v706_v46 = vld [vmem:[#allocation7 + $0x898] sm:$0xff] }
 0x10f   :  { %v315_v51 = vpop.f32.mrf.mxu0  ;;  %v392_v52 = vpop.f32.mrf.mxu1  ;;  %v834_v47 = vld [vmem:[#allocation7 + $0xc98] sm:$0xff]  ;;  %v705_v48 = vld [vmem:[#allocation7 + $0x890] sm:$0xff] }
 0x110   :  { %v2706_v53 = vmax.f32 %v312_v49, 0.0  ;;  %v2708_v54 = vmax.f32 %v389_v50, 0.0  ;;  %v316_v1 = vadd.f32 %v315_v51, %v223_v39  ;;  %v393_v2 = vadd.f32 %v392_v52, %v231_v40  ;;  %v842_v39 = vld [vmem:[#allocation7 + $0xcd8] sm:$0xff]  ;;  %v713_v40 = vld [vmem:[#allocation7 + $0x8d0] sm:$0xff] }
 0x111   :  { %v317_v55 = vpop.f32.mrf.mxu0  ;;  %v394_v56 = vpop.f32.mrf.mxu1  ;;  %v833_v49 = vld [vmem:[#allocation7 + $0xc90] sm:$0xff]  ;;  %v702_v50 = vld [vmem:[#allocation7 + $0x878] sm:$0xff] }
 0x112   :  { %v318_v59 = vadd.f32 %v317_v55, %v227_v41  ;;  %v395_v60 = vadd.f32 %v394_v56, %v235_v42  ;;  %1007 = vmatprep.mubr.f32.mxu0 %v2706_v53  ;;  %1084 = vmatprep.mubr.f32.mxu1 %v2708_v54  ;;  %v2722_v9 = vmax.f32 %v316_v1, 0.0  ;;  %v2724_v10 = vmax.f32 %v393_v2, 0.0  ;;  %v841_v41 = vld [vmem:[#allocation7 + $0xcd0] sm:$0xff]  ;;  %v710_v42 = vld [vmem:[#allocation7 + $0x8b8] sm:$0xff] }
 0x113   :  { %1008 = vmatmul.mubr.f32.vlgmr.msra.gmra.mxu0 %v2710_v57  ;;  %1085 = vmatmul.mubr.f32.vlgmr.msra.gmra.mxu1 %v2712_v58  ;;  %v830_v51 = vld [vmem:[#allocation7 + $0xc78] sm:$0xff]  ;;  %v701_v52 = vld [vmem:[#allocation7 + $0x870] sm:$0xff] }
 0x114   :  { %v2716_v3 = vmax.f32 %v318_v59, 0.0  ;;  %v2718_v4 = vmax.f32 %v395_v60, 0.0  ;;  %1098 = vmatpush1.msra.mxu0 %v749_v61  ;;  %1175 = vmatpush1.msra.mxu1 %v877_v62  ;;  %v829_v55 = vld [vmem:[#allocation7 + $0xc70] sm:$0xff]  ;;  %v698_v56 = vld [vmem:[#allocation7 + $0x858] sm:$0xff] }
 0x115   :  { %1099 = vmatprep.subr.mxu0 %v746_v63  ;;  %1176 = vmatprep.subr.mxu1 %v874_v0  ;;  %v826_v59 = vld [vmem:[#allocation7 + $0xc58] sm:$0xff]  ;;  %v697_v60 = vld [vmem:[#allocation7 + $0x850] sm:$0xff] }
 0x116   :  { %1100 = vmatpush1.msra.mxu0 %v745_v5  ;;  %1177 = vmatpush1.msra.mxu1 %v873_v6  ;;  %v825_v61 = vld [vmem:[#allocation7 + $0xc50] sm:$0xff]  ;;  %v694_v62 = vld [vmem:[#allocation7 + $0x838] sm:$0xff] }
 0x117   :  { %1013 = vmatprep.mubr.f32.mxu0 %v2716_v3  ;;  %1090 = vmatprep.mubr.f32.mxu1 %v2718_v4  ;;  %v822_v63 = vld [vmem:[#allocation7 + $0xc38] sm:$0xff]  ;;  %v693_v0 = vld [vmem:[#allocation7 + $0x830] sm:$0xff] }
 0x118   :  { %1101 = vmatprep.subr.mxu0 %v742_v7  ;;  %1178 = vmatprep.subr.mxu1 %v870_v8  ;;  %v821_v1 = vld [vmem:[#allocation7 + $0xc30] sm:$0xff]  ;;  %v690_v2 = vld [vmem:[#allocation7 + $0x818] sm:$0xff] }
 0x119   :  { %1014 = vmatmul.mubr.f32.gmra.mxu0 %v2722_v9  ;;  %1091 = vmatmul.mubr.f32.gmra.mxu1 %v2724_v10  ;;  %v818_v5 = vld [vmem:[#allocation7 + $0xc18] sm:$0xff]  ;;  %v689_v6 = vld [vmem:[#allocation7 + $0x810] sm:$0xff] }
 0x11a   :  { %1102 = vmatpush1.msra.mxu0 %v741_v11  ;;  %1179 = vmatpush1.msra.mxu1 %v869_v12  ;;  %v817_v7 = vld [vmem:[#allocation7 + $0xc10] sm:$0xff]  ;;  %v814_v8 = vld [vmem:[#allocation7 + $0xbf8] sm:$0xff] }
 0x11b   :  { %1103 = vmatprep.subr.mxu0 %v738_v13  ;;  %1161 = vmatprep.mubr.f32.mxu0 %v2706_v53  ;;  %v942_v11 = vld [vmem:[#allocation7 + $0xff8] sm:$0xff]  ;;  %v813_v12 = vld [vmem:[#allocation7 + $0xbf0] sm:$0xff] }
 0x11c   :  { %1180 = vmatprep.subr.mxu1 %v866_v14  ;;  %1238 = vmatprep.mubr.f32.mxu1 %v2708_v54  ;;  %v941_v13 = vld [vmem:[#allocation7 + $0xff0] sm:$0xff]  ;;  %v810_v14 = vld [vmem:[#allocation7 + $0xbd8] sm:$0xff] }
 0x11d   :  { %1104 = vmatpush1.msra.mxu0 %v737_v15  ;;  %1181 = vmatpush1.msra.mxu1 %v865_v16  ;;  %v938_v15 = vld [vmem:[#allocation7 + $0xfd8] sm:$0xff]  ;;  %v809_v16 = vld [vmem:[#allocation7 + $0xbd0] sm:$0xff] }
 0x11e   :  { %1105 = vmatprep.subr.mxu0 %v734_v17  ;;  %1182 = vmatprep.subr.mxu1 %v862_v18  ;;  %v937_v17 = vld [vmem:[#allocation7 + $0xfd0] sm:$0xff]  ;;  %v806_v18 = vld [vmem:[#allocation7 + $0xbb8] sm:$0xff] }
 0x11f   :  { %1106 = vmatpush1.msra.mxu0 %v733_v19  ;;  %1183 = vmatpush1.msra.mxu1 %v861_v20  ;;  %v934_v19 = vld [vmem:[#allocation7 + $0xfb8] sm:$0xff]  ;;  %v805_v20 = vld [vmem:[#allocation7 + $0xbb0] sm:$0xff] }
 0x120   :  { %1107 = vmatprep.subr.mxu0 %v730_v21  ;;  %1184 = vmatprep.subr.mxu1 %v858_v22  ;;  %v933_v21 = vld [vmem:[#allocation7 + $0xfb0] sm:$0xff]  ;;  %v802_v22 = vld [vmem:[#allocation7 + $0xb98] sm:$0xff] }
 0x121   :  { %1108 = vmatpush1.msra.mxu0 %v729_v23  ;;  %1185 = vmatpush1.msra.mxu1 %v857_v24  ;;  %v930_v23 = vld [vmem:[#allocation7 + $0xf98] sm:$0xff]  ;;  %v801_v24 = vld [vmem:[#allocation7 + $0xb90] sm:$0xff] }
 0x122   :  { %1109 = vmatprep.subr.mxu0 %v726_v25  ;;  %1186 = vmatprep.subr.mxu1 %v854_v26  ;;  %v929_v25 = vld [vmem:[#allocation7 + $0xf90] sm:$0xff]  ;;  %v798_v26 = vld [vmem:[#allocation7 + $0xb78] sm:$0xff] }
 0x123   :  { %1110 = vmatpush1.msra.mxu0 %v725_v27  ;;  %1187 = vmatpush1.msra.mxu1 %v853_v28  ;;  %v926_v27 = vld [vmem:[#allocation7 + $0xf78] sm:$0xff]  ;;  %v797_v28 = vld [vmem:[#allocation7 + $0xb70] sm:$0xff] }
 0x124   :  { %1111 = vmatprep.subr.mxu0 %v722_v29  ;;  %1188 = vmatprep.subr.mxu1 %v850_v31  ;;  %v925_v29 = vld [vmem:[#allocation7 + $0xf70] sm:$0xff]  ;;  %v794_v31 = vld [vmem:[#allocation7 + $0xb58] sm:$0xff] }
 0x125   :  { %1112 = vmatpush1.msra.mxu0 %v721_v32  ;;  %1189 = vmatpush1.msra.mxu1 %v849_v33  ;;  %v922_v32 = vld [vmem:[#allocation7 + $0xf58] sm:$0xff]  ;;  %v793_v33 = vld [vmem:[#allocation7 + $0xb50] sm:$0xff] }
 0x126   :  { %1113 = vmatprep.subr.mxu0 %v718_v34  ;;  %1190 = vmatprep.subr.mxu1 %v846_v35  ;;  %v921_v34 = vld [vmem:[#allocation7 + $0xf50] sm:$0xff]  ;;  %v790_v35 = vld [vmem:[#allocation7 + $0xb38] sm:$0xff] }
 0x127   :  { %1114 = vmatpush1.msra.mxu0 %v717_v36  ;;  %1191 = vmatpush1.msra.mxu1 %v845_v37  ;;  %v918_v36 = vld [vmem:[#allocation7 + $0xf38] sm:$0xff]  ;;  %v789_v37 = vld [vmem:[#allocation7 + $0xb30] sm:$0xff] }
 0x128   :  { %1115 = vmatprep.subr.mxu0 %v714_v38  ;;  %1192 = vmatprep.subr.mxu1 %v842_v39  ;;  %v917_v38 = vld [vmem:[#allocation7 + $0xf30] sm:$0xff]  ;;  %v786_v39 = vld [vmem:[#allocation7 + $0xb18] sm:$0xff] }
 0x129   :  { %1116 = vmatpush1.msra.mxu0 %v713_v40  ;;  %1193 = vmatpush1.msra.mxu1 %v841_v41  ;;  %v914_v40 = vld [vmem:[#allocation7 + $0xf18] sm:$0xff]  ;;  %v785_v41 = vld [vmem:[#allocation7 + $0xb10] sm:$0xff] }
 0x12a   :  { %1117 = vmatprep.subr.mxu0 %v710_v42  ;;  %1194 = vmatprep.subr.mxu1 %v838_v43  ;;  %v913_v42 = vld [vmem:[#allocation7 + $0xf10] sm:$0xff]  ;;  %v782_v43 = vld [vmem:[#allocation7 + $0xaf8] sm:$0xff] }
 0x12b   :  { %1118 = vmatpush1.msra.mxu0 %v709_v44  ;;  %1195 = vmatpush1.msra.mxu1 %v837_v45  ;;  %v910_v44 = vld [vmem:[#allocation7 + $0xef8] sm:$0xff]  ;;  %v781_v45 = vld [vmem:[#allocation7 + $0xaf0] sm:$0xff] }
 0x12c   :  { %1119 = vmatprep.subr.mxu0 %v706_v46  ;;  %1196 = vmatprep.subr.mxu1 %v834_v47  ;;  %v909_v46 = vld [vmem:[#allocation7 + $0xef0] sm:$0xff]  ;;  %v778_v47 = vld [vmem:[#allocation7 + $0xad8] sm:$0xff] }
 0x12d   :  { %1120 = vmatpush1.msra.mxu0 %v705_v48  ;;  %1197 = vmatpush1.msra.mxu1 %v833_v49  ;;  %v906_v48 = vld [vmem:[#allocation7 + $0xed8] sm:$0xff]  ;;  %v777_v49 = vld [vmem:[#allocation7 + $0xad0] sm:$0xff] }
 0x12e   :  { %1121 = vmatprep.subr.mxu0 %v702_v50  ;;  %1198 = vmatprep.subr.mxu1 %v830_v51  ;;  %v905_v50 = vld [vmem:[#allocation7 + $0xed0] sm:$0xff]  ;;  %v774_v51 = vld [vmem:[#allocation7 + $0xab8] sm:$0xff] }
 0x12f   :  { %1122 = vmatpush1.msra.mxu0 %v701_v52  ;;  %1199 = vmatpush1.msra.mxu1 %v829_v55  ;;  %v902_v52 = vld [vmem:[#allocation7 + $0xeb8] sm:$0xff]  ;;  %v773_v55 = vld [vmem:[#allocation7 + $0xab0] sm:$0xff] }
 0x130   :  { %1123 = vmatprep.subr.mxu0 %v698_v56  ;;  %1200 = vmatprep.subr.mxu1 %v826_v59  ;;  %v901_v56 = vld [vmem:[#allocation7 + $0xeb0] sm:$0xff]  ;;  %v770_v59 = vld [vmem:[#allocation7 + $0xa98] sm:$0xff] }
 0x131   :  { %1124 = vmatpush1.msra.mxu0 %v697_v60  ;;  %1201 = vmatpush1.msra.mxu1 %v825_v61  ;;  %v898_v60 = vld [vmem:[#allocation7 + $0xe98] sm:$0xff]  ;;  %v769_v61 = vld [vmem:[#allocation7 + $0xa90] sm:$0xff] }
 0x132   :  { %1125 = vmatprep.subr.mxu0 %v694_v62  ;;  %1202 = vmatprep.subr.mxu1 %v822_v63  ;;  %v897_v62 = vld [vmem:[#allocation7 + $0xe90] sm:$0xff]  ;;  %v766_v63 = vld [vmem:[#allocation7 + $0xa78] sm:$0xff] }
 0x133   :  { %1126 = vmatpush1.msra.mxu0 %v693_v0  ;;  %1203 = vmatpush1.msra.mxu1 %v821_v1  ;;  %v894_v0 = vld [vmem:[#allocation7 + $0xe78] sm:$0xff]  ;;  %v765_v1 = vld [vmem:[#allocation7 + $0xa70] sm:$0xff] }
 0x134   :  { %1127 = vmatprep.subr.mxu0 %v690_v2  ;;  %1204 = vmatprep.subr.mxu1 %v818_v5  ;;  %v893_v2 = vld [vmem:[#allocation7 + $0xe70] sm:$0xff]  ;;  %v762_v5 = vld [vmem:[#allocation7 + $0xa58] sm:$0xff] }
 0x135   :  { %1128 = vmatpush1.msra.mxu0 %v689_v6  ;;  %1205 = vmatpush1.msra.mxu1 %v817_v7  ;;  %v890_v6 = vld [vmem:[#allocation7 + $0xe58] sm:$0xff]  ;;  %v761_v7 = vld [vmem:[#allocation7 + $0xa50] sm:$0xff] }
 0x136   :  { %1129 = vmatprep.subr.mxu0 %v814_v8  ;;  %1206 = vmatprep.subr.mxu1 %v942_v11  ;;  %v889_v8 = vld [vmem:[#allocation7 + $0xe50] sm:$0xff]  ;;  %v758_v11 = vld [vmem:[#allocation7 + $0xa38] sm:$0xff] }
 0x137   :  { %1130 = vmatpush2.msra.mxu0 %v813_v12  ;;  %1207 = vmatpush2.msra.mxu1 %v941_v13  ;;  %v886_v12 = vld [vmem:[#allocation7 + $0xe38] sm:$0xff]  ;;  %v757_v13 = vld [vmem:[#allocation7 + $0xa30] sm:$0xff] }
 0x138   :  { %1131 = vmatprep.subr.mxu0 %v810_v14  ;;  %1208 = vmatprep.subr.mxu1 %v938_v15  ;;  %v885_v14 = vld [vmem:[#allocation7 + $0xe30] sm:$0xff]  ;;  %v754_v15 = vld [vmem:[#allocation7 + $0xa18] sm:$0xff] }
 0x139   :  { %1132 = vmatpush2.msra.mxu0 %v809_v16  ;;  %1209 = vmatpush2.msra.mxu1 %v937_v17  ;;  %v882_v16 = vld [vmem:[#allocation7 + $0xe18] sm:$0xff]  ;;  %v753_v17 = vld [vmem:[#allocation7 + $0xa10] sm:$0xff] }
 0x13a   :  { %1133 = vmatprep.subr.mxu0 %v806_v18  ;;  %1210 = vmatprep.subr.mxu1 %v934_v19  ;;  %v881_v18 = vld [vmem:[#allocation7 + $0xe10] sm:$0xff]  ;;  %v491_v19 = vld [vmem:[#allocation7 + $0x1e8] sm:$0xff] }
 0x13b   :  { %1134 = vmatpush2.msra.mxu0 %v805_v20  ;;  %1211 = vmatpush2.msra.mxu1 %v933_v21  ;;  %v619_v20 = vld [vmem:[#allocation7 + $0x5e8] sm:$0xff]  ;;  %v490_v21 = vld [vmem:[#allocation7 + $0x1e0] sm:$0xff] }
 0x13c   :  { %1135 = vmatprep.subr.mxu0 %v802_v22  ;;  %1212 = vmatprep.subr.mxu1 %v930_v23  ;;  %v618_v22 = vld [vmem:[#allocation7 + $0x5e0] sm:$0xff]  ;;  %v487_v23 = vld [vmem:[#allocation7 + $0x1c8] sm:$0xff] }
 0x13d   :  { %1136 = vmatpush2.msra.mxu0 %v801_v24  ;;  %1213 = vmatpush2.msra.mxu1 %v929_v25  ;;  %v615_v24 = vld [vmem:[#allocation7 + $0x5c8] sm:$0xff]  ;;  %v2735_v25 = vadd.s32 4294967295, %v2702_v30 }
 0x13e   :  { %1137 = vmatprep.subr.mxu0 %v798_v26  ;;  %1214 = vmatprep.subr.mxu1 %v926_v27  ;;  %v486_v26 = vld [vmem:[#allocation7 + $0x1c0] sm:$0xff] }
 0x13f   :  { %1138 = vmatpush2.msra.mxu0 %v797_v28  ;;  %1215 = vmatpush2.msra.mxu1 %v925_v29  ;;  %v614_v27 = vld [vmem:[#allocation7 + $0x5c0] sm:$0xff]  ;;  %v410_v28 = vrot.slane %v2716_v3, 7  ;;  %v483_v29 = vld [vmem:[#allocation7 + $0x1a8] sm:$0xff]  ;;  %vm182_vm1 = vcmp.ge.s32.totalorder %v2735_v25, 0 }
 0x140   :  { %1139 = vmatprep.subr.mxu0 %v794_v31  ;;  %1216 = vmatprep.subr.mxu1 %v922_v32  ;;  %v611_v31 = vld [vmem:[#allocation7 + $0x5a8] sm:$0xff]  ;;  %v412_v32 = vrot.slane %v2718_v4, 7 }
 0x141   :  { %1140 = vmatpush2.msra.mxu0 %v793_v33  ;;  %1217 = vmatpush2.msra.mxu1 %v921_v34  ;;  %v482_v33 = vld [vmem:[#allocation7 + $0x1a0] sm:$0xff]  ;;  %v406_v34 = vrot.slane %v2706_v53, 7  ;;  %v1638_v25 = vld [vmem:[#allocation7 + $0x11a8] sm:$0xff] }
 0x142   :  { %1141 = vmatprep.subr.mxu0 %v790_v35  ;;  %1218 = vmatprep.subr.mxu1 %v918_v36  ;;  %v610_v35 = vld [vmem:[#allocation7 + $0x5a0] sm:$0xff]  ;;  %v408_v36 = vrot.slane %v2708_v54, 7 }
 0x143   :  { %1142 = vmatpush2.msra.mxu0 %v789_v37  ;;  %1219 = vmatpush2.msra.mxu1 %v917_v38  ;;  %v2753_v37 = vsel %vm413_vm2, %v410_v28, %v406_v34  ;;  %v479_v38 = vld [vmem:[#allocation7 + $0x188] sm:$0xff] }
 0x144   :  { %1143 = vmatprep.subr.mxu0 %v786_v39  ;;  %1220 = vmatprep.subr.mxu1 %v914_v40  ;;  %v607_v39 = vld [vmem:[#allocation7 + $0x588] sm:$0xff]  ;;  %v2764_v40 = vsel %vm413_vm2, %v412_v32, %v408_v36 }
 0x145   :  { %1144 = vmatpush2.msra.mxu0 %v785_v41  ;;  %1221 = vmatpush2.msra.mxu1 %v913_v42  ;;  %v478_v41 = vld [vmem:[#allocation7 + $0x180] sm:$0xff] }
 0x146   :  { %1145 = vmatprep.subr.mxu0 %v782_v43  ;;  %1222 = vmatprep.subr.mxu1 %v910_v44  ;;  %v606_v42 = vld [vmem:[#allocation7 + $0x580] sm:$0xff]  ;;  %v475_v43 = vld [vmem:[#allocation7 + $0x168] sm:$0xff] }
 0x147   :  { %1146 = vmatpush2.msra.mxu0 %v781_v45  ;;  %1223 = vmatpush2.msra.mxu1 %v909_v46  ;;  %v603_v44 = vld [vmem:[#allocation7 + $0x568] sm:$0xff]  ;;  %v474_v45 = vld [vmem:[#allocation7 + $0x160] sm:$0xff] }
 0x148   :  { %1147 = vmatprep.subr.mxu0 %v778_v47  ;;  %1224 = vmatprep.subr.mxu1 %v906_v48  ;;  %v602_v46 = vld [vmem:[#allocation7 + $0x560] sm:$0xff]  ;;  %v471_v47 = vld [vmem:[#allocation7 + $0x148] sm:$0xff] }
 0x149   :  { %1148 = vmatpush2.msra.mxu0 %v777_v49  ;;  %1225 = vmatpush2.msra.mxu1 %v905_v50  ;;  %v599_v48 = vld [vmem:[#allocation7 + $0x548] sm:$0xff]  ;;  %v470_v49 = vld [vmem:[#allocation7 + $0x140] sm:$0xff] }
 0x14a   :  { %1149 = vmatprep.subr.mxu0 %v774_v51  ;;  %1226 = vmatprep.subr.mxu1 %v902_v52  ;;  %v598_v50 = vld [vmem:[#allocation7 + $0x540] sm:$0xff]  ;;  %v467_v51 = vld [vmem:[#allocation7 + $0x128] sm:$0xff] }
 0x14b   :  { %1150 = vmatpush2.msra.mxu0 %v773_v55  ;;  %1227 = vmatpush2.msra.mxu1 %v901_v56  ;;  %v595_v52 = vld [vmem:[#allocation7 + $0x528] sm:$0xff]  ;;  %v466_v55 = vld [vmem:[#allocation7 + $0x120] sm:$0xff] }
 0x14c   :  { %1151 = vmatprep.subr.mxu0 %v770_v59  ;;  %1228 = vmatprep.subr.mxu1 %v898_v60  ;;  %v594_v56 = vld [vmem:[#allocation7 + $0x520] sm:$0xff]  ;;  %v463_v59 = vld [vmem:[#allocation7 + $0x108] sm:$0xff] }
 0x14d   :  { %1152 = vmatpush2.msra.mxu0 %v769_v61  ;;  %1229 = vmatpush2.msra.mxu1 %v897_v62  ;;  %v591_v60 = vld [vmem:[#allocation7 + $0x508] sm:$0xff]  ;;  %v462_v61 = vld [vmem:[#allocation7 + $0x100] sm:$0xff] }
 0x14e   :  { %1153 = vmatprep.subr.mxu0 %v766_v63  ;;  %1230 = vmatprep.subr.mxu1 %v894_v0  ;;  %v590_v62 = vld [vmem:[#allocation7 + $0x500] sm:$0xff]  ;;  %v459_v63 = vld [vmem:[#allocation7 + $0xe8] sm:$0xff] }
 0x14f   :  { %1154 = vmatpush2.msra.mxu0 %v765_v1  ;;  %1231 = vmatpush2.msra.mxu1 %v893_v2  ;;  %v587_v0 = vld [vmem:[#allocation7 + $0x4e8] sm:$0xff]  ;;  %v458_v1 = vld [vmem:[#allocation7 + $0xe0] sm:$0xff] }
 0x150   :  { %1155 = vmatprep.subr.mxu0 %v762_v5  ;;  %1232 = vmatprep.subr.mxu1 %v890_v6  ;;  %v586_v2 = vld [vmem:[#allocation7 + $0x4e0] sm:$0xff]  ;;  %v455_v5 = vld [vmem:[#allocation7 + $0xc8] sm:$0xff] }
 0x151   :  { %1156 = vmatpush2.msra.mxu0 %v761_v7  ;;  %1233 = vmatpush2.msra.mxu1 %v889_v8  ;;  %v583_v6 = vld [vmem:[#allocation7 + $0x4c8] sm:$0xff]  ;;  %v454_v7 = vld [vmem:[#allocation7 + $0xc0] sm:$0xff] }
 0x152   :  { %1157 = vmatprep.subr.mxu0 %v758_v11  ;;  %1234 = vmatprep.subr.mxu1 %v886_v12  ;;  %v582_v8 = vld [vmem:[#allocation7 + $0x4c0] sm:$0xff]  ;;  %v451_v11 = vld [vmem:[#allocation7 + $0xa8] sm:$0xff] }
 0x153   :  { %1158 = vmatpush2.msra.mxu0 %v757_v13  ;;  %1235 = vmatpush2.msra.mxu1 %v885_v14  ;;  %v579_v12 = vld [vmem:[#allocation7 + $0x4a8] sm:$0xff]  ;;  %v450_v13 = vld [vmem:[#allocation7 + $0xa0] sm:$0xff] }
 0x154   :  { %1159 = vmatprep.subr.mxu0 %v754_v15  ;;  %1236 = vmatprep.subr.mxu1 %v882_v16  ;;  %v578_v14 = vld [vmem:[#allocation7 + $0x4a0] sm:$0xff]  ;;  %v447_v15 = vld [vmem:[#allocation7 + $0x88] sm:$0xff] }
 0x155   :  { %1160 = vmatpush2.msra.mxu0 %v753_v17  ;;  %1237 = vmatpush2.msra.mxu1 %v881_v18  ;;  %v575_v16 = vld [vmem:[#allocation7 + $0x488] sm:$0xff]  ;;  %v446_v17 = vld [vmem:[#allocation7 + $0x80] sm:$0xff] }
 0x156   :  { %1162 = vmatmul.mubr.f32.vlgmr.msra.gmra.mxu0 %v2710_v57  ;;  %1239 = vmatmul.mubr.f32.vlgmr.msra.gmra.mxu1 %v2712_v58  ;;  %v574_v18 = vld [vmem:[#allocation7 + $0x480] sm:$0xff] }
 0x157   :  { %1251 = vmatprep.subr.mxu0 %v491_v19  ;;  %1328 = vmatprep.subr.mxu1 %v619_v20  ;;  %v443_v19 = vld [vmem:[#allocation7 + $0x68] sm:$0xff] }
 0x158   :  { %1167 = vmatprep.mubr.f32.mxu0 %v2716_v3  ;;  %1244 = vmatprep.mubr.f32.mxu1 %v2718_v4  ;;  %v571_v20 = vld [vmem:[#allocation7 + $0x468] sm:$0xff] }
 0x159   :  { %1252 = vmatpush1.msra.mxu0 %v490_v21  ;;  %1329 = vmatpush1.msra.mxu1 %v618_v22  ;;  %v442_v21 = vld [vmem:[#allocation7 + $0x60] sm:$0xff] }
 0x15a   :  { %1253 = vmatprep.subr.mxu0 %v487_v23  ;;  %1330 = vmatprep.subr.mxu1 %v615_v24  ;;  %v570_v22 = vld [vmem:[#allocation7 + $0x460] sm:$0xff]  ;;  %v439_v23 = vld [vmem:[#allocation7 + $0x48] sm:$0xff] }
 0x15b   :  { %1254 = vmatpush1.msra.mxu0 %v486_v26  ;;  %1331 = vmatpush1.msra.mxu1 %v614_v27  ;;  %v567_v24 = vld [vmem:[#allocation7 + $0x448] sm:$0xff]  ;;  %v438_v26 = vld [vmem:[#allocation7 + $0x40] sm:$0xff] }
 0x15c   :  { %1168 = vmatmul.mubr.f32.gmra.mxu0 %v2722_v9  ;;  %1245 = vmatmul.mubr.f32.gmra.mxu1 %v2724_v10  ;;  %v566_v27 = vld [vmem:[#allocation7 + $0x440] sm:$0xff] }
 0x15d   :  { %1255 = vmatprep.subr.mxu0 %v483_v29  ;;  %1332 = vmatprep.subr.mxu1 %v611_v31  ;;  %v435_v29 = vld [vmem:[#allocation7 + $0x28] sm:$0xff] }
 0x15e   :  { %1256 = vmatpush1.msra.mxu0 %v482_v33  ;;  %2409 = vmatprep.mubr.msk.f32.mxu0 %vm182_vm1, %v2753_v37  ;;  %v563_v31 = vld [vmem:[#allocation7 + $0x428] sm:$0xff]  ;;  %v434_v33 = vld [vmem:[#allocation7 + $0x20] sm:$0xff] }
 0x15f   :  { %1333 = vmatpush1.msra.mxu1 %v610_v35  ;;  %2411 = vmatprep.mubr.msk.f32.mxu1 %vm182_vm1, %v2764_v40  ;;  %v562_v35 = vld [vmem:[#allocation7 + $0x420] sm:$0xff] }
 0x160   :  { %1257 = vmatprep.subr.mxu0 %v479_v38  ;;  %1334 = vmatprep.subr.mxu1 %v607_v39  ;;  %v431_v38 = vld [vmem:[#allocation7 + $0x8] sm:$0xff] }
 0x161   :  { %1258 = vmatpush1.msra.mxu0 %v478_v41  ;;  %1335 = vmatpush1.msra.mxu1 %v606_v42  ;;  %v559_v39 = vld [vmem:[#allocation7 + $0x408] sm:$0xff]  ;;  %v430_v41 = vld [vmem:[#allocation7] sm:$0xff] }
 0x162   :  { %1259 = vmatprep.subr.mxu0 %v475_v43  ;;  %1336 = vmatprep.subr.mxu1 %v603_v44  ;;  %v558_v42 = vld [vmem:[#allocation7 + $0x400] sm:$0xff]  ;;  %v555_v43 = vld [vmem:[#allocation7 + $0x3e8] sm:$0xff] }
 0x163   :  { %1260 = vmatpush1.msra.mxu0 %v474_v45  ;;  %1337 = vmatpush1.msra.mxu1 %v602_v46  ;;  %v683_v44 = vld [vmem:[#allocation7 + $0x7e8] sm:$0xff]  ;;  %v554_v45 = vld [vmem:[#allocation7 + $0x3e0] sm:$0xff] }
 0x164   :  { %1261 = vmatprep.subr.mxu0 %v471_v47  ;;  %1338 = vmatprep.subr.mxu1 %v599_v48  ;;  %v682_v46 = vld [vmem:[#allocation7 + $0x7e0] sm:$0xff]  ;;  %v551_v47 = vld [vmem:[#allocation7 + $0x3c8] sm:$0xff] }
 0x165   :  { %1262 = vmatpush1.msra.mxu0 %v470_v49  ;;  %1339 = vmatpush1.msra.mxu1 %v598_v50  ;;  %v679_v48 = vld [vmem:[#allocation7 + $0x7c8] sm:$0xff]  ;;  %v550_v49 = vld [vmem:[#allocation7 + $0x3c0] sm:$0xff] }
 0x166   :  { %1263 = vmatprep.subr.mxu0 %v467_v51  ;;  %1340 = vmatprep.subr.mxu1 %v595_v52  ;;  %v678_v50 = vld [vmem:[#allocation7 + $0x7c0] sm:$0xff]  ;;  %v547_v51 = vld [vmem:[#allocation7 + $0x3a8] sm:$0xff] }
 0x167   :  { %1264 = vmatpush1.msra.mxu0 %v466_v55  ;;  %1341 = vmatpush1.msra.mxu1 %v594_v56  ;;  %v675_v52 = vld [vmem:[#allocation7 + $0x7a8] sm:$0xff]  ;;  %v546_v55 = vld [vmem:[#allocation7 + $0x3a0] sm:$0xff] }
 0x168   :  { %1265 = vmatprep.subr.mxu0 %v463_v59  ;;  %1342 = vmatprep.subr.mxu1 %v591_v60  ;;  %v674_v56 = vld [vmem:[#allocation7 + $0x7a0] sm:$0xff]  ;;  %v543_v59 = vld [vmem:[#allocation7 + $0x388] sm:$0xff] }
 0x169   :  { %1266 = vmatpush1.msra.mxu0 %v462_v61  ;;  %1343 = vmatpush1.msra.mxu1 %v590_v62  ;;  %v671_v60 = vld [vmem:[#allocation7 + $0x788] sm:$0xff]  ;;  %v542_v61 = vld [vmem:[#allocation7 + $0x380] sm:$0xff] }
 0x16a   :  { %1267 = vmatprep.subr.mxu0 %v459_v63  ;;  %1344 = vmatprep.subr.mxu1 %v587_v0  ;;  %v670_v62 = vld [vmem:[#allocation7 + $0x780] sm:$0xff]  ;;  %v539_v63 = vld [vmem:[#allocation7 + $0x368] sm:$0xff] }
 0x16b   :  { %1268 = vmatpush1.msra.mxu0 %v458_v1  ;;  %1345 = vmatpush1.msra.mxu1 %v586_v2  ;;  %v667_v0 = vld [vmem:[#allocation7 + $0x768] sm:$0xff]  ;;  %v538_v1 = vld [vmem:[#allocation7 + $0x360] sm:$0xff] }
 0x16c   :  { %1269 = vmatprep.subr.mxu0 %v455_v5  ;;  %1346 = vmatprep.subr.mxu1 %v583_v6  ;;  %v666_v2 = vld [vmem:[#allocation7 + $0x760] sm:$0xff]  ;;  %v535_v5 = vld [vmem:[#allocation7 + $0x348] sm:$0xff] }
 0x16d   :  { %1270 = vmatpush1.msra.mxu0 %v454_v7  ;;  %1347 = vmatpush1.msra.mxu1 %v582_v8  ;;  %v663_v6 = vld [vmem:[#allocation7 + $0x748] sm:$0xff]  ;;  %v534_v7 = vld [vmem:[#allocation7 + $0x340] sm:$0xff] }
 0x16e   :  { %1271 = vmatprep.subr.mxu0 %v451_v11  ;;  %1348 = vmatprep.subr.mxu1 %v579_v12  ;;  %v662_v8 = vld [vmem:[#allocation7 + $0x740] sm:$0xff]  ;;  %v531_v11 = vld [vmem:[#allocation7 + $0x328] sm:$0xff] }
 0x16f   :  { %1272 = vmatpush1.msra.mxu0 %v450_v13  ;;  %1349 = vmatpush1.msra.mxu1 %v578_v14  ;;  %v659_v12 = vld [vmem:[#allocation7 + $0x728] sm:$0xff]  ;;  %v530_v13 = vld [vmem:[#allocation7 + $0x320] sm:$0xff] }
 0x170   :  { %1273 = vmatprep.subr.mxu0 %v447_v15  ;;  %1350 = vmatprep.subr.mxu1 %v575_v16  ;;  %v658_v14 = vld [vmem:[#allocation7 + $0x720] sm:$0xff]  ;;  %v527_v15 = vld [vmem:[#allocation7 + $0x308] sm:$0xff] }
 0x171   :  { %1274 = vmatpush1.msra.mxu0 %v446_v17  ;;  %1351 = vmatpush1.msra.mxu1 %v574_v18  ;;  %v655_v16 = vld [vmem:[#allocation7 + $0x708] sm:$0xff]  ;;  %v526_v17 = vld [vmem:[#allocation7 + $0x300] sm:$0xff] }
 0x172   :  { %1275 = vmatprep.subr.mxu0 %v443_v19  ;;  %1352 = vmatprep.subr.mxu1 %v571_v20  ;;  %v654_v18 = vld [vmem:[#allocation7 + $0x700] sm:$0xff]  ;;  %v523_v19 = vld [vmem:[#allocation7 + $0x2e8] sm:$0xff] }
 0x173   :  { %1276 = vmatpush1.msra.mxu0 %v442_v21  ;;  %1353 = vmatpush1.msra.mxu1 %v570_v22  ;;  %v651_v20 = vld [vmem:[#allocation7 + $0x6e8] sm:$0xff]  ;;  %v522_v21 = vld [vmem:[#allocation7 + $0x2e0] sm:$0xff] }
 0x174   :  { %1277 = vmatprep.subr.mxu0 %v439_v23  ;;  %1354 = vmatprep.subr.mxu1 %v567_v24  ;;  %v650_v22 = vld [vmem:[#allocation7 + $0x6e0] sm:$0xff]  ;;  %v519_v23 = vld [vmem:[#allocation7 + $0x2c8] sm:$0xff] }
 0x175   :  { %1278 = vmatpush1.msra.mxu0 %v438_v26  ;;  %1355 = vmatpush1.msra.mxu1 %v566_v27  ;;  %v647_v24 = vld [vmem:[#allocation7 + $0x6c8] sm:$0xff]  ;;  %v518_v26 = vld [vmem:[#allocation7 + $0x2c0] sm:$0xff] }
 0x176   :  { %1279 = vmatprep.subr.mxu0 %v435_v29  ;;  %1356 = vmatprep.subr.mxu1 %v563_v31  ;;  %v646_v27 = vld [vmem:[#allocation7 + $0x6c0] sm:$0xff]  ;;  %v515_v29 = vld [vmem:[#allocation7 + $0x2a8] sm:$0xff] }
 0x177   :  { %1280 = vmatpush1.msra.mxu0 %v434_v33  ;;  %1357 = vmatpush1.msra.mxu1 %v562_v35  ;;  %v643_v31 = vld [vmem:[#allocation7 + $0x6a8] sm:$0xff]  ;;  %v514_v33 = vld [vmem:[#allocation7 + $0x2a0] sm:$0xff] }
 0x178   :  { %1281 = vmatprep.subr.mxu0 %v431_v38  ;;  %1358 = vmatprep.subr.mxu1 %v559_v39  ;;  %v642_v35 = vld [vmem:[#allocation7 + $0x6a0] sm:$0xff]  ;;  %v511_v38 = vld [vmem:[#allocation7 + $0x288] sm:$0xff] }
 0x179   :  { %1282 = vmatpush1.msra.mxu0 %v430_v41  ;;  %1359 = vmatpush1.msra.mxu1 %v558_v42  ;;  %v639_v39 = vld [vmem:[#allocation7 + $0x688] sm:$0xff]  ;;  %v510_v41 = vld [vmem:[#allocation7 + $0x280] sm:$0xff] }
 0x17a   :  { %1283 = vmatprep.subr.mxu0 %v555_v43  ;;  %1360 = vmatprep.subr.mxu1 %v683_v44  ;;  %v638_v42 = vld [vmem:[#allocation7 + $0x680] sm:$0xff]  ;;  %v507_v43 = vld [vmem:[#allocation7 + $0x268] sm:$0xff] }
 0x17b   :  { %1284 = vmatpush2.msra.mxu0 %v554_v45  ;;  %1361 = vmatpush2.msra.mxu1 %v682_v46  ;;  %v635_v44 = vld [vmem:[#allocation7 + $0x668] sm:$0xff]  ;;  %v506_v45 = vld [vmem:[#allocation7 + $0x260] sm:$0xff] }
 0x17c   :  { %1285 = vmatprep.subr.mxu0 %v551_v47  ;;  %1362 = vmatprep.subr.mxu1 %v679_v48  ;;  %v634_v46 = vld [vmem:[#allocation7 + $0x660] sm:$0xff]  ;;  %v503_v47 = vld [vmem:[#allocation7 + $0x248] sm:$0xff] }
 0x17d   :  { %1286 = vmatpush2.msra.mxu0 %v550_v49  ;;  %1363 = vmatpush2.msra.mxu1 %v678_v50  ;;  %v631_v48 = vld [vmem:[#allocation7 + $0x648] sm:$0xff]  ;;  %v502_v49 = vld [vmem:[#allocation7 + $0x240] sm:$0xff] }
 0x17e   :  { %1287 = vmatprep.subr.mxu0 %v547_v51  ;;  %1364 = vmatprep.subr.mxu1 %v675_v52  ;;  %v630_v50 = vld [vmem:[#allocation7 + $0x640] sm:$0xff]  ;;  %v499_v51 = vld [vmem:[#allocation7 + $0x228] sm:$0xff] }
 0x17f   :  { %1288 = vmatpush2.msra.mxu0 %v546_v55  ;;  %1365 = vmatpush2.msra.mxu1 %v674_v56  ;;  %v627_v52 = vld [vmem:[#allocation7 + $0x628] sm:$0xff]  ;;  %v498_v55 = vld [vmem:[#allocation7 + $0x220] sm:$0xff] }
 0x180   :  { %1289 = vmatprep.subr.mxu0 %v543_v59  ;;  %1366 = vmatprep.subr.mxu1 %v671_v60  ;;  %v626_v56 = vld [vmem:[#allocation7 + $0x620] sm:$0xff]  ;;  %v409_v59 = vrot.slane %v2722_v9, 7  ;;  %v411_v60 = vrot.slane %v2724_v10, 7 }
 0x181   :  { %1290 = vmatpush2.msra.mxu0 %v542_v61  ;;  %1367 = vmatpush2.msra.mxu1 %v670_v62  ;;  %v495_v61 = vld [vmem:[#allocation7 + $0x208] sm:$0xff] }
 0x182   :  { %1291 = vmatprep.subr.mxu0 %v539_v63  ;;  %1368 = vmatprep.subr.mxu1 %v667_v0  ;;  %v623_v62 = vld [vmem:[#allocation7 + $0x608] sm:$0xff]  ;;  %v494_v63 = vld [vmem:[#allocation7 + $0x200] sm:$0xff] }
 0x183   :  { %1292 = vmatpush2.msra.mxu0 %v538_v1  ;;  %1369 = vmatpush2.msra.mxu1 %v666_v2  ;;  %v622_v0 = vld [vmem:[#allocation7 + $0x600] sm:$0xff]  ;;  %v405_v1 = vrot.slane %v2710_v57, 7  ;;  %v407_v2 = vrot.slane %v2712_v58, 7 }
 0x184   :  { %1293 = vmatprep.subr.mxu0 %v535_v5  ;;  %1370 = vmatprep.subr.mxu1 %v663_v6  ;;  %v493_v5 = vld [vmem:[#allocation7 + $0x1f8] sm:$0xff] }
 0x185   :  { %1294 = vmatpush2.msra.mxu0 %v534_v7  ;;  %1371 = vmatpush2.msra.mxu1 %v662_v8  ;;  %v621_v6 = vld [vmem:[#allocation7 + $0x5f8] sm:$0xff]  ;;  %v2775_v7 = vsel %vm413_vm2, %v409_v59, %v405_v1  ;;  %v2779_v8 = vsel %vm413_vm2, %v411_v60, %v407_v2 }
 0x186   :  { %1295 = vmatprep.subr.mxu0 %v531_v11  ;;  %1372 = vmatprep.subr.mxu1 %v659_v12  ;;  %v492_v11 = vld [vmem:[#allocation7 + $0x1f0] sm:$0xff] }
 0x187   :  { %1296 = vmatpush2.msra.mxu0 %v530_v13  ;;  %1373 = vmatpush2.msra.mxu1 %v658_v14  ;;  %v620_v12 = vld [vmem:[#allocation7 + $0x5f0] sm:$0xff]  ;;  %v2793_v13 = vsel %vm413_vm2, %v406_v34, %v410_v28  ;;  %v2801_v14 = vsel %vm413_vm2, %v408_v36, %v412_v32  ;;  %v485_v28 = vld [vmem:[#allocation7 + $0x1b8] sm:$0xff]  ;;  %v2807_v32 = vsel %vm413_vm2, %v405_v1, %v409_v59 }
 0x188   :  { %1297 = vmatprep.subr.mxu0 %v527_v15  ;;  %1374 = vmatprep.subr.mxu1 %v655_v16  ;;  %v489_v15 = vld [vmem:[#allocation7 + $0x1d8] sm:$0xff]  ;;  %v2811_v36 = vsel %vm413_vm2, %v407_v2, %v411_v60  ;;  %v448_v1 = vld [vmem:[#allocation7 + $0x90] sm:$0xff] }
 0x189   :  { %1298 = vmatpush2.msra.mxu0 %v526_v17  ;;  %1375 = vmatpush2.msra.mxu1 %v654_v18  ;;  %v617_v16 = vld [vmem:[#allocation7 + $0x5d8] sm:$0xff]  ;;  %v488_v17 = vld [vmem:[#allocation7 + $0x1d0] sm:$0xff] }
 0x18a   :  { %1299 = vmatprep.subr.mxu0 %v523_v19  ;;  %1376 = vmatprep.subr.mxu1 %v651_v20  ;;  %v616_v18 = vld [vmem:[#allocation7 + $0x5d0] sm:$0xff]  ;;  %v613_v34 = vld [vmem:[#allocation7 + $0x5b8] sm:$0xff] }
 0x18b   :  { %1300 = vmatpush2.msra.mxu0 %v522_v21  ;;  %1377 = vmatpush2.msra.mxu1 %v650_v22  ;;  %v484_v19 = vld [vmem:[#allocation7 + $0x1b0] sm:$0xff]  ;;  %v481_v21 = vld [vmem:[#allocation7 + $0x198] sm:$0xff] }
 0x18c   :  { %1301 = vmatprep.subr.mxu0 %v519_v23  ;;  %1378 = vmatprep.subr.mxu1 %v647_v24  ;;  %v612_v20 = vld [vmem:[#allocation7 + $0x5b0] sm:$0xff]  ;;  %v609_v22 = vld [vmem:[#allocation7 + $0x598] sm:$0xff] }
 0x18d   :  { %1302 = vmatpush2.msra.mxu0 %v518_v26  ;;  %1379 = vmatpush2.msra.mxu1 %v646_v27  ;;  %v480_v23 = vld [vmem:[#allocation7 + $0x190] sm:$0xff]  ;;  %v477_v26 = vld [vmem:[#allocation7 + $0x178] sm:$0xff] }
 0x18e   :  { %1303 = vmatprep.subr.mxu0 %v515_v29  ;;  %1380 = vmatprep.subr.mxu1 %v643_v31  ;;  %v608_v24 = vld [vmem:[#allocation7 + $0x590] sm:$0xff]  ;;  %v605_v27 = vld [vmem:[#allocation7 + $0x578] sm:$0xff] }
 0x18f   :  { %1304 = vmatpush2.msra.mxu0 %v514_v33  ;;  %1381 = vmatpush2.msra.mxu1 %v642_v35  ;;  %v476_v29 = vld [vmem:[#allocation7 + $0x170] sm:$0xff]  ;;  %v473_v33 = vld [vmem:[#allocation7 + $0x158] sm:$0xff] }
 0x190   :  { %1305 = vmatprep.subr.mxu0 %v511_v38  ;;  %1382 = vmatprep.subr.mxu1 %v639_v39  ;;  %v604_v31 = vld [vmem:[#allocation7 + $0x570] sm:$0xff]  ;;  %v601_v35 = vld [vmem:[#allocation7 + $0x558] sm:$0xff] }
 0x191   :  { %1306 = vmatpush2.msra.mxu0 %v510_v41  ;;  %1383 = vmatpush2.msra.mxu1 %v638_v42  ;;  %v600_v38 = vld [vmem:[#allocation7 + $0x550] sm:$0xff]  ;;  %v469_v39 = vld [vmem:[#allocation7 + $0x138] sm:$0xff] }
 0x192   :  { %1307 = vmatprep.subr.mxu0 %v507_v43  ;;  %1384 = vmatprep.subr.mxu1 %v635_v44  ;;  %v597_v41 = vld [vmem:[#allocation7 + $0x538] sm:$0xff]  ;;  %v596_v42 = vld [vmem:[#allocation7 + $0x530] sm:$0xff] }
 0x193   :  { %1308 = vmatpush2.msra.mxu0 %v506_v45  ;;  %1385 = vmatpush2.msra.mxu1 %v634_v46  ;;  %v465_v43 = vld [vmem:[#allocation7 + $0x118] sm:$0xff]  ;;  %v464_v45 = vld [vmem:[#allocation7 + $0x110] sm:$0xff] }
 0x194   :  { %1309 = vmatprep.subr.mxu0 %v503_v47  ;;  %1386 = vmatprep.subr.mxu1 %v631_v48  ;;  %v593_v44 = vld [vmem:[#allocation7 + $0x518] sm:$0xff]  ;;  %v592_v46 = vld [vmem:[#allocation7 + $0x510] sm:$0xff] }
 0x195   :  { %1310 = vmatpush2.msra.mxu0 %v502_v49  ;;  %1387 = vmatpush2.msra.mxu1 %v630_v50  ;;  %v461_v47 = vld [vmem:[#allocation7 + $0xf8] sm:$0xff]  ;;  %v460_v49 = vld [vmem:[#allocation7 + $0xf0] sm:$0xff] }
 0x196   :  { %1311 = vmatprep.subr.mxu0 %v499_v51  ;;  %1388 = vmatprep.subr.mxu1 %v627_v52  ;;  %v589_v48 = vld [vmem:[#allocation7 + $0x4f8] sm:$0xff]  ;;  %v588_v50 = vld [vmem:[#allocation7 + $0x4f0] sm:$0xff] }
 0x197   :  { %1312 = vmatpush2.msra.mxu0 %v498_v55  ;;  %1389 = vmatpush2.msra.mxu1 %v626_v56  ;;  %v457_v51 = vld [vmem:[#allocation7 + $0xd8] sm:$0xff]  ;;  %v456_v55 = vld [vmem:[#allocation7 + $0xd0] sm:$0xff] }
 0x198   :  { %1313 = vmatprep.subr.mxu0 %v495_v61  ;;  %1390 = vmatprep.subr.mxu1 %v623_v62  ;;  %v585_v52 = vld [vmem:[#allocation7 + $0x4d8] sm:$0xff]  ;;  %v584_v56 = vld [vmem:[#allocation7 + $0x4d0] sm:$0xff] }
 0x199   :  { %1314 = vmatpush2.msra.mxu0 %v494_v63  ;;  %1391 = vmatpush2.msra.mxu1 %v622_v0  ;;  %v453_v59 = vld [vmem:[#allocation7 + $0xb8] sm:$0xff]  ;;  %v452_v61 = vld [vmem:[#allocation7 + $0xb0] sm:$0xff] }
 0x19a   :  { %2410 = vmatmul.mubr.msk.f32.vlgmr.msra.gmra.mxu0 %vm182_vm1, %v2775_v7  ;;  %2412 = vmatmul.mubr.msk.f32.vlgmr.msra.gmra.mxu1 %vm182_vm1, %v2779_v8  ;;  %v581_v60 = vld [vmem:[#allocation7 + $0x4b8] sm:$0xff]  ;;  %v580_v62 = vld [vmem:[#allocation7 + $0x4b0] sm:$0xff] }
 0x19b   :  { %1405 = vmatprep.subr.mxu0 %v493_v5  ;;  %1482 = vmatprep.subr.mxu1 %v621_v6  ;;  %v449_v63 = vld [vmem:[#allocation7 + $0x98] sm:$0xff]  ;;  %v576_v2 = vld [vmem:[#allocation7 + $0x490] sm:$0xff] }
 0x19c   :  { %1321 = vmatprep.mubr.f32.mxu0 %v2793_v13  ;;  %1398 = vmatprep.mubr.f32.mxu1 %v2801_v14  ;;  %v577_v0 = vld [vmem:[#allocation7 + $0x498] sm:$0xff] }
 0x19d   :  { %1406 = vmatpush1.msra.mxu0 %v492_v11  ;;  %1483 = vmatpush1.msra.mxu1 %v620_v12  ;;  %v445_v5 = vld [vmem:[#allocation7 + $0x78] sm:$0xff]  ;;  %v444_v11 = vld [vmem:[#allocation7 + $0x70] sm:$0xff] }
 0x19e   :  { %1407 = vmatprep.subr.mxu0 %v489_v15  ;;  %1484 = vmatprep.subr.mxu1 %v617_v16  ;;  %v573_v6 = vld [vmem:[#allocation7 + $0x478] sm:$0xff]  ;;  %v572_v12 = vld [vmem:[#allocation7 + $0x470] sm:$0xff] }
 0x19f   :  { %1408 = vmatpush1.msra.mxu0 %v488_v17  ;;  %1485 = vmatpush1.msra.mxu1 %v616_v18  ;;  %v441_v15 = vld [vmem:[#allocation7 + $0x58] sm:$0xff]  ;;  %v440_v17 = vld [vmem:[#allocation7 + $0x50] sm:$0xff] }
 0x1a0   :  { %1322 = vmatmul.mubr.f32.gmra.mxu0 %v2807_v32  ;;  %1399 = vmatmul.mubr.f32.gmra.mxu1 %v2811_v36  ;;  %v569_v16 = vld [vmem:[#allocation7 + $0x458] sm:$0xff]  ;;  %v568_v18 = vld [vmem:[#allocation7 + $0x450] sm:$0xff] }
 0x1a1   :  { %1409 = vmatprep.subr.mxu0 %v485_v28  ;;  %1486 = vmatprep.subr.mxu1 %v613_v34  ;;  %v437_v28 = vld [vmem:[#allocation7 + $0x38] sm:$0xff] }
 0x1a2   :  { %1410 = vmatpush1.msra.mxu0 %v484_v19  ;;  %2413 = vmatprep.mubr.msk.f32.mxu0 %vm182_vm1, %v2753_v37  ;;  %v472_v37 = vld [vmem:[#allocation7 + $0x150] sm:$0xff]  ;;  %v565_v34 = vld [vmem:[#allocation7 + $0x438] sm:$0xff] }
 0x1a3   :  { %1487 = vmatpush1.msra.mxu1 %v612_v20  ;;  %2415 = vmatprep.mubr.msk.f32.mxu1 %vm182_vm1, %v2764_v40  ;;  %v468_v40 = vld [vmem:[#allocation7 + $0x130] sm:$0xff] }
 0x1a4   :  { %1411 = vmatprep.subr.mxu0 %v481_v21  ;;  %1488 = vmatprep.subr.mxu1 %v609_v22  ;;  %v436_v19 = vld [vmem:[#allocation7 + $0x30] sm:$0xff]  ;;  %v433_v21 = vld [vmem:[#allocation7 + $0x18] sm:$0xff] }
 0x1a5   :  { %1412 = vmatpush1.msra.mxu0 %v480_v23  ;;  %1489 = vmatpush1.msra.mxu1 %v608_v24  ;;  %v564_v20 = vld [vmem:[#allocation7 + $0x430] sm:$0xff]  ;;  %v561_v22 = vld [vmem:[#allocation7 + $0x418] sm:$0xff] }
 0x1a6   :  { %1413 = vmatprep.subr.mxu0 %v477_v26  ;;  %1490 = vmatprep.subr.mxu1 %v605_v27  ;;  %v432_v23 = vld [vmem:[#allocation7 + $0x10] sm:$0xff]  ;;  %v557_v26 = vld [vmem:[#allocation7 + $0x3f8] sm:$0xff] }
 0x1a7   :  { %1414 = vmatpush1.msra.mxu0 %v476_v29  ;;  %1491 = vmatpush1.msra.mxu1 %v604_v31  ;;  %v560_v24 = vld [vmem:[#allocation7 + $0x410] sm:$0xff]  ;;  %v685_v27 = vld [vmem:[#allocation7 + $0x7f8] sm:$0xff] }
 0x1a8   :  { %1415 = vmatprep.subr.mxu0 %v473_v33  ;;  %1492 = vmatprep.subr.mxu1 %v601_v35  ;;  %v556_v29 = vld [vmem:[#allocation7 + $0x3f0] sm:$0xff]  ;;  %v553_v33 = vld [vmem:[#allocation7 + $0x3d8] sm:$0xff] }
 0x1a9   :  { %1416 = vmatpush1.msra.mxu0 %v472_v37  ;;  %1493 = vmatpush1.msra.mxu1 %v600_v38  ;;  %v684_v31 = vld [vmem:[#allocation7 + $0x7f0] sm:$0xff]  ;;  %v681_v35 = vld [vmem:[#allocation7 + $0x7d8] sm:$0xff] }
 0x1aa   :  { %1417 = vmatprep.subr.mxu0 %v469_v39  ;;  %1494 = vmatprep.subr.mxu1 %v597_v41  ;;  %v552_v37 = vld [vmem:[#allocation7 + $0x3d0] sm:$0xff]  ;;  %v549_v39 = vld [vmem:[#allocation7 + $0x3b8] sm:$0xff] }
 0x1ab   :  { %1418 = vmatpush1.msra.mxu0 %v468_v40  ;;  %1495 = vmatpush1.msra.mxu1 %v596_v42  ;;  %v680_v38 = vld [vmem:[#allocation7 + $0x7d0] sm:$0xff]  ;;  %v677_v41 = vld [vmem:[#allocation7 + $0x7b8] sm:$0xff] }
 0x1ac   :  { %1419 = vmatprep.subr.mxu0 %v465_v43  ;;  %1496 = vmatprep.subr.mxu1 %v593_v44  ;;  %v548_v40 = vld [vmem:[#allocation7 + $0x3b0] sm:$0xff]  ;;  %v545_v43 = vld [vmem:[#allocation7 + $0x398] sm:$0xff] }
 0x1ad   :  { %1420 = vmatpush1.msra.mxu0 %v464_v45  ;;  %1497 = vmatpush1.msra.mxu1 %v592_v46  ;;  %v676_v42 = vld [vmem:[#allocation7 + $0x7b0] sm:$0xff]  ;;  %v673_v44 = vld [vmem:[#allocation7 + $0x798] sm:$0xff] }
 0x1ae   :  { %1421 = vmatprep.subr.mxu0 %v461_v47  ;;  %1498 = vmatprep.subr.mxu1 %v589_v48  ;;  %v544_v45 = vld [vmem:[#allocation7 + $0x390] sm:$0xff]  ;;  %v541_v47 = vld [vmem:[#allocation7 + $0x378] sm:$0xff] }
 0x1af   :  { %1422 = vmatpush1.msra.mxu0 %v460_v49  ;;  %1499 = vmatpush1.msra.mxu1 %v588_v50  ;;  %v672_v46 = vld [vmem:[#allocation7 + $0x790] sm:$0xff]  ;;  %v669_v48 = vld [vmem:[#allocation7 + $0x778] sm:$0xff] }
 0x1b0   :  { %1423 = vmatprep.subr.mxu0 %v457_v51  ;;  %1500 = vmatprep.subr.mxu1 %v585_v52  ;;  %v540_v49 = vld [vmem:[#allocation7 + $0x370] sm:$0xff]  ;;  %v537_v51 = vld [vmem:[#allocation7 + $0x358] sm:$0xff] }
 0x1b1   :  { %1424 = vmatpush1.msra.mxu0 %v456_v55  ;;  %1501 = vmatpush1.msra.mxu1 %v584_v56  ;;  %v668_v50 = vld [vmem:[#allocation7 + $0x770] sm:$0xff]  ;;  %v665_v52 = vld [vmem:[#allocation7 + $0x758] sm:$0xff] }
 0x1b2   :  { %1425 = vmatprep.subr.mxu0 %v453_v59  ;;  %1502 = vmatprep.subr.mxu1 %v581_v60  ;;  %v536_v55 = vld [vmem:[#allocation7 + $0x350] sm:$0xff]  ;;  %v533_v59 = vld [vmem:[#allocation7 + $0x338] sm:$0xff] }
 0x1b3   :  { %1426 = vmatpush1.msra.mxu0 %v452_v61  ;;  %1503 = vmatpush1.msra.mxu1 %v580_v62  ;;  %v664_v56 = vld [vmem:[#allocation7 + $0x750] sm:$0xff]  ;;  %v661_v60 = vld [vmem:[#allocation7 + $0x738] sm:$0xff] }
 0x1b4   :  { %1427 = vmatprep.subr.mxu0 %v449_v63  ;;  %1504 = vmatprep.subr.mxu1 %v577_v0  ;;  %v532_v61 = vld [vmem:[#allocation7 + $0x330] sm:$0xff]  ;;  %v529_v63 = vld [vmem:[#allocation7 + $0x318] sm:$0xff] }
 0x1b5   :  { %1428 = vmatpush1.msra.mxu0 %v448_v1  ;;  %1505 = vmatpush1.msra.mxu1 %v576_v2  ;;  %v660_v62 = vld [vmem:[#allocation7 + $0x730] sm:$0xff]  ;;  %v657_v0 = vld [vmem:[#allocation7 + $0x718] sm:$0xff] }
 0x1b6   :  { %1429 = vmatprep.subr.mxu0 %v445_v5  ;;  %1506 = vmatprep.subr.mxu1 %v573_v6  ;;  %v528_v1 = vld [vmem:[#allocation7 + $0x310] sm:$0xff]  ;;  %v525_v5 = vld [vmem:[#allocation7 + $0x2f8] sm:$0xff] }
 0x1b7   :  { %1430 = vmatpush1.msra.mxu0 %v444_v11  ;;  %1507 = vmatpush1.msra.mxu1 %v572_v12  ;;  %v656_v2 = vld [vmem:[#allocation7 + $0x710] sm:$0xff]  ;;  %v653_v6 = vld [vmem:[#allocation7 + $0x6f8] sm:$0xff] }
 0x1b8   :  { %1431 = vmatprep.subr.mxu0 %v441_v15  ;;  %1508 = vmatprep.subr.mxu1 %v569_v16  ;;  %v524_v11 = vld [vmem:[#allocation7 + $0x2f0] sm:$0xff]  ;;  %v521_v15 = vld [vmem:[#allocation7 + $0x2d8] sm:$0xff] }
 0x1b9   :  { %1432 = vmatpush1.msra.mxu0 %v440_v17  ;;  %1509 = vmatpush1.msra.mxu1 %v568_v18  ;;  %v652_v12 = vld [vmem:[#allocation7 + $0x6f0] sm:$0xff]  ;;  %v649_v16 = vld [vmem:[#allocation7 + $0x6d8] sm:$0xff] }
 0x1ba   :  { %1433 = vmatprep.subr.mxu0 %v437_v28  ;;  %1510 = vmatprep.subr.mxu1 %v565_v34  ;;  %v520_v17 = vld [vmem:[#allocation7 + $0x2d0] sm:$0xff]  ;;  %v517_v28 = vld [vmem:[#allocation7 + $0x2b8] sm:$0xff] }
 0x1bb   :  { %1434 = vmatpush1.msra.mxu0 %v436_v19  ;;  %1511 = vmatpush1.msra.mxu1 %v564_v20  ;;  %v648_v18 = vld [vmem:[#allocation7 + $0x6d0] sm:$0xff]  ;;  %v645_v34 = vld [vmem:[#allocation7 + $0x6b8] sm:$0xff] }
 0x1bc   :  { %1435 = vmatprep.subr.mxu0 %v433_v21  ;;  %1512 = vmatprep.subr.mxu1 %v561_v22  ;;  %v516_v19 = vld [vmem:[#allocation7 + $0x2b0] sm:$0xff]  ;;  %v513_v21 = vld [vmem:[#allocation7 + $0x298] sm:$0xff] }
 0x1bd   :  { %1436 = vmatpush1.msra.mxu0 %v432_v23  ;;  %1513 = vmatpush1.msra.mxu1 %v560_v24  ;;  %v644_v20 = vld [vmem:[#allocation7 + $0x6b0] sm:$0xff]  ;;  %v641_v22 = vld [vmem:[#allocation7 + $0x698] sm:$0xff] }
 0x1be   :  { %1437 = vmatprep.subr.mxu0 %v557_v26  ;;  %1514 = vmatprep.subr.mxu1 %v685_v27  ;;  %v512_v23 = vld [vmem:[#allocation7 + $0x290] sm:$0xff]  ;;  %v509_v26 = vld [vmem:[#allocation7 + $0x278] sm:$0xff] }
 0x1bf   :  { %1438 = vmatpush2.msra.mxu0 %v556_v29  ;;  %1515 = vmatpush2.msra.mxu1 %v684_v31  ;;  %v640_v24 = vld [vmem:[#allocation7 + $0x690] sm:$0xff]  ;;  %v637_v27 = vld [vmem:[#allocation7 + $0x678] sm:$0xff] }
 0x1c0   :  { %1439 = vmatprep.subr.mxu0 %v553_v33  ;;  %1516 = vmatprep.subr.mxu1 %v681_v35  ;;  %v508_v29 = vld [vmem:[#allocation7 + $0x270] sm:$0xff]  ;;  %v505_v33 = vld [vmem:[#allocation7 + $0x258] sm:$0xff] }
 0x1c1   :  { %1440 = vmatpush2.msra.mxu0 %v552_v37  ;;  %1517 = vmatpush2.msra.mxu1 %v680_v38  ;;  %v636_v31 = vld [vmem:[#allocation7 + $0x670] sm:$0xff]  ;;  %v633_v35 = vld [vmem:[#allocation7 + $0x658] sm:$0xff] }
 0x1c2   :  { %1441 = vmatprep.subr.mxu0 %v549_v39  ;;  %1518 = vmatprep.subr.mxu1 %v677_v41  ;;  %v504_v37 = vld [vmem:[#allocation7 + $0x250] sm:$0xff]  ;;  %v501_v39 = vld [vmem:[#allocation7 + $0x238] sm:$0xff] }
 0x1c3   :  { %1442 = vmatpush2.msra.mxu0 %v548_v40  ;;  %1519 = vmatpush2.msra.mxu1 %v676_v42  ;;  %v632_v38 = vld [vmem:[#allocation7 + $0x650] sm:$0xff]  ;;  %v629_v41 = vld [vmem:[#allocation7 + $0x638] sm:$0xff] }
 0x1c4   :  { %1443 = vmatprep.subr.mxu0 %v545_v43  ;;  %1520 = vmatprep.subr.mxu1 %v673_v44  ;;  %v500_v40 = vld [vmem:[#allocation7 + $0x230] sm:$0xff]  ;;  %v497_v43 = vld [vmem:[#allocation7 + $0x218] sm:$0xff] }
 0x1c5   :  { %1444 = vmatpush2.msra.mxu0 %v544_v45  ;;  %1521 = vmatpush2.msra.mxu1 %v672_v46  ;;  %v628_v42 = vld [vmem:[#allocation7 + $0x630] sm:$0xff]  ;;  %v625_v44 = vld [vmem:[#allocation7 + $0x618] sm:$0xff] }
 0x1c6   :  { %1445 = vmatprep.subr.mxu0 %v541_v47  ;;  %1522 = vmatprep.subr.mxu1 %v669_v48  ;;  %v496_v45 = vld [vmem:[#allocation7 + $0x210] sm:$0xff]  ;;  %v1646_v47 = vld [vmem:[#allocation7 + $0x11e8] sm:$0xff] }
 0x1c7   :  { %1446 = vmatpush2.msra.mxu0 %v540_v49  ;;  %1523 = vmatpush2.msra.mxu1 %v668_v50  ;;  %v624_v46 = vld [vmem:[#allocation7 + $0x610] sm:$0xff]  ;;  %v1774_v48 = vld [vmem:[#allocation7 + $0x15e8] sm:$0xff]  ;;  %v1645_v49 = vld [vmem:[#allocation7 + $0x11e0] sm:$0xff] }
 0x1c8   :  { %1447 = vmatprep.subr.mxu0 %v537_v51  ;;  %1524 = vmatprep.subr.mxu1 %v665_v52  ;;  %v1773_v50 = vld [vmem:[#allocation7 + $0x15e0] sm:$0xff]  ;;  %v1642_v51 = vld [vmem:[#allocation7 + $0x11c8] sm:$0xff] }
 0x1c9   :  { %1448 = vmatpush2.msra.mxu0 %v536_v55  ;;  %1525 = vmatpush2.msra.mxu1 %v664_v56  ;;  %v1770_v52 = vld [vmem:[#allocation7 + $0x15c8] sm:$0xff]  ;;  %v1641_v55 = vld [vmem:[#allocation7 + $0x11c0] sm:$0xff] }
 0x1ca   :  { %1449 = vmatprep.subr.mxu0 %v533_v59  ;;  %1526 = vmatprep.subr.mxu1 %v661_v60  ;;  %v1769_v56 = vld [vmem:[#allocation7 + $0x15c0] sm:$0xff]  ;;  %v1566_v59 = vrot.slane %v2718_v4, 1  ;;  %v1768_v4 = vld [vmem:[#allocation7 + $0x15b8] sm:$0xff] }
 0x1cb   :  { %1450 = vmatpush2.msra.mxu0 %v532_v61  ;;  %1527 = vmatpush2.msra.mxu1 %v660_v62  ;;  %v1637_v60 = vld [vmem:[#allocation7 + $0x11a0] sm:$0xff]  ;;  %v1560_v61 = vrot.slane %v2706_v53, 1  ;;  %v1643_v53 = vld [vmem:[#allocation7 + $0x11d0] sm:$0xff] }
 0x1cc   :  { %1451 = vmatprep.subr.mxu0 %v529_v63  ;;  %1528 = vmatprep.subr.mxu1 %v657_v0  ;;  %v1634_v63 = vld [vmem:[#allocation7 + $0x1188] sm:$0xff] }
 0x1cd   :  { %1452 = vmatpush2.msra.mxu0 %v528_v1  ;;  %1529 = vmatpush2.msra.mxu1 %v656_v2  ;;  %v1762_v0 = vld [vmem:[#allocation7 + $0x1588] sm:$0xff]  ;;  %v1761_v1 = vld [vmem:[#allocation7 + $0x1580] sm:$0xff] }
 0x1ce   :  { %1453 = vmatprep.subr.mxu0 %v525_v5  ;;  %1530 = vmatprep.subr.mxu1 %v653_v6  ;;  %v1630_v2 = vld [vmem:[#allocation7 + $0x1168] sm:$0xff]  ;;  %v1629_v6 = vld [vmem:[#allocation7 + $0x1160] sm:$0xff] }
 0x1cf   :  { %1454 = vmatpush2.msra.mxu0 %v524_v11  ;;  %1531 = vmatpush2.msra.mxu1 %v652_v12  ;;  %v1758_v5 = vld [vmem:[#allocation7 + $0x1568] sm:$0xff]  ;;  %v1757_v11 = vld [vmem:[#allocation7 + $0x1560] sm:$0xff] }
 0x1d0   :  { %1455 = vmatprep.subr.mxu0 %v521_v15  ;;  %1532 = vmatprep.subr.mxu1 %v649_v16  ;;  %v1626_v12 = vld [vmem:[#allocation7 + $0x1148] sm:$0xff]  ;;  %v1625_v16 = vld [vmem:[#allocation7 + $0x1140] sm:$0xff] }
 0x1d1   :  { %1456 = vmatpush2.msra.mxu0 %v520_v17  ;;  %1533 = vmatpush2.msra.mxu1 %v648_v18  ;;  %v1754_v15 = vld [vmem:[#allocation7 + $0x1548] sm:$0xff]  ;;  %v1753_v17 = vld [vmem:[#allocation7 + $0x1540] sm:$0xff] }
 0x1d2   :  { %1457 = vmatprep.subr.mxu0 %v517_v28  ;;  %1534 = vmatprep.subr.mxu1 %v645_v34  ;;  %v1622_v18 = vld [vmem:[#allocation7 + $0x1128] sm:$0xff]  ;;  %v1621_v34 = vld [vmem:[#allocation7 + $0x1120] sm:$0xff] }
 0x1d3   :  { %1458 = vmatpush2.msra.mxu0 %v516_v19  ;;  %1535 = vmatpush2.msra.mxu1 %v644_v20  ;;  %v1750_v28 = vld [vmem:[#allocation7 + $0x1528] sm:$0xff]  ;;  %v1749_v19 = vld [vmem:[#allocation7 + $0x1520] sm:$0xff] }
 0x1d4   :  { %1459 = vmatprep.subr.mxu0 %v513_v21  ;;  %1536 = vmatprep.subr.mxu1 %v641_v22  ;;  %v1618_v20 = vld [vmem:[#allocation7 + $0x1108] sm:$0xff]  ;;  %v1617_v22 = vld [vmem:[#allocation7 + $0x1100] sm:$0xff] }
 0x1d5   :  { %1460 = vmatpush2.msra.mxu0 %v512_v23  ;;  %1537 = vmatpush2.msra.mxu1 %v640_v24  ;;  %v1746_v21 = vld [vmem:[#allocation7 + $0x1508] sm:$0xff]  ;;  %v1745_v23 = vld [vmem:[#allocation7 + $0x1500] sm:$0xff] }
 0x1d6   :  { %1461 = vmatprep.subr.mxu0 %v509_v26  ;;  %1538 = vmatprep.subr.mxu1 %v637_v27  ;;  %v1614_v24 = vld [vmem:[#allocation7 + $0x10e8] sm:$0xff]  ;;  %v1613_v27 = vld [vmem:[#allocation7 + $0x10e0] sm:$0xff] }
 0x1d7   :  { %1462 = vmatpush2.msra.mxu0 %v508_v29  ;;  %1539 = vmatpush2.msra.mxu1 %v636_v31  ;;  %v1742_v26 = vld [vmem:[#allocation7 + $0x14e8] sm:$0xff]  ;;  %v1741_v29 = vld [vmem:[#allocation7 + $0x14e0] sm:$0xff] }
 0x1d8   :  { %1463 = vmatprep.subr.mxu0 %v505_v33  ;;  %1540 = vmatprep.subr.mxu1 %v633_v35  ;;  %v1610_v31 = vld [vmem:[#allocation7 + $0x10c8] sm:$0xff]  ;;  %v1609_v35 = vld [vmem:[#allocation7 + $0x10c0] sm:$0xff] }
 0x1d9   :  { %1464 = vmatpush2.msra.mxu0 %v504_v37  ;;  %1541 = vmatpush2.msra.mxu1 %v632_v38  ;;  %v1738_v33 = vld [vmem:[#allocation7 + $0x14c8] sm:$0xff]  ;;  %v1737_v37 = vld [vmem:[#allocation7 + $0x14c0] sm:$0xff] }
 0x1da   :  { %1465 = vmatprep.subr.mxu0 %v501_v39  ;;  %1542 = vmatprep.subr.mxu1 %v629_v41  ;;  %v1606_v38 = vld [vmem:[#allocation7 + $0x10a8] sm:$0xff]  ;;  %v1605_v41 = vld [vmem:[#allocation7 + $0x10a0] sm:$0xff] }
 0x1db   :  { %1466 = vmatpush2.msra.mxu0 %v500_v40  ;;  %1543 = vmatpush2.msra.mxu1 %v628_v42  ;;  %v1734_v39 = vld [vmem:[#allocation7 + $0x14a8] sm:$0xff]  ;;  %v1733_v40 = vld [vmem:[#allocation7 + $0x14a0] sm:$0xff] }
 0x1dc   :  { %1467 = vmatprep.subr.mxu0 %v497_v43  ;;  %1544 = vmatprep.subr.mxu1 %v625_v44  ;;  %v1602_v42 = vld [vmem:[#allocation7 + $0x1088] sm:$0xff]  ;;  %v1601_v44 = vld [vmem:[#allocation7 + $0x1080] sm:$0xff] }
 0x1dd   :  { %1468 = vmatpush2.msra.mxu0 %v496_v45  ;;  %1545 = vmatpush2.msra.mxu1 %v624_v46  ;;  %v1730_v43 = vld [vmem:[#allocation7 + $0x1488] sm:$0xff]  ;;  %v1729_v45 = vld [vmem:[#allocation7 + $0x1480] sm:$0xff] }
 0x1de   :  { %2414 = vmatmul.mubr.msk.f32.vlgmr.msra.gmra.mxu0 %vm182_vm1, %v2775_v7  ;;  %2416 = vmatmul.mubr.msk.f32.vlgmr.msra.gmra.mxu1 %vm182_vm1, %v2779_v8  ;;  %v1564_v7 = vrot.slane %v2716_v3, 1  ;;  %v1766_v8 = vld [vmem:[#allocation7 + $0x15a8] sm:$0xff]  ;;  %v1771_v3 = vld [vmem:[#allocation7 + $0x15d0] sm:$0xff] }
 0x1df   :  { %1841 = vmatprep.subr.mxu0 %v1646_v47  ;;  %1918 = vmatprep.subr.mxu1 %v1774_v48  ;;  %v1598_v46 = vld [vmem:[#allocation7 + $0x1068] sm:$0xff]  ;;  %v1597_v48 = vld [vmem:[#allocation7 + $0x1060] sm:$0xff] }
 0x1e0   :  { %1475 = vmatprep.mubr.f32.mxu0 %v2793_v13  ;;  %1552 = vmatprep.mubr.f32.mxu1 %v2801_v14  ;;  %v1765_v13 = vld [vmem:[#allocation7 + $0x15a0] sm:$0xff]  ;;  %v1562_v14 = vrot.slane %v2708_v54, 1  ;;  %v2842_v62 = vsel %vm1567_vm3, %v1560_v61, %v1564_v7  ;;  %v1726_v47 = vld [vmem:[#allocation7 + $0x1468] sm:$0xff]  ;;  %v1640_v54 = vld [vmem:[#allocation7 + $0x11b8] sm:$0xff] }
 0x1e1   :  { %1842 = vmatpush1.msra.mxu0 %v1645_v49  ;;  %1919 = vmatpush1.msra.mxu1 %v1773_v50  ;;  %v1725_v49 = vld [vmem:[#allocation7 + $0x1460] sm:$0xff]  ;;  %v1594_v50 = vld [vmem:[#allocation7 + $0x1048] sm:$0xff] }
 0x1e2   :  { %1843 = vmatprep.subr.mxu0 %v1642_v51  ;;  %1920 = vmatprep.subr.mxu1 %v1770_v52  ;;  %v1722_v51 = vld [vmem:[#allocation7 + $0x1448] sm:$0xff]  ;;  %v1593_v52 = vld [vmem:[#allocation7 + $0x1040] sm:$0xff] }
 0x1e3   :  { %1844 = vmatpush1.msra.mxu0 %v1641_v55  ;;  %1921 = vmatpush1.msra.mxu1 %v1769_v56  ;;  %v1721_v55 = vld [vmem:[#allocation7 + $0x1440] sm:$0xff]  ;;  %v1590_v56 = vld [vmem:[#allocation7 + $0x1028] sm:$0xff] }
 0x1e4   :  { %1476 = vmatmul.mubr.f32.gmra.mxu0 %v2807_v32  ;;  %1553 = vmatmul.mubr.f32.gmra.mxu1 %v2811_v36  ;;  %v2851_v32 = vsel %vm1567_vm3, %v1562_v14, %v1566_v59  ;;  %v1633_v36 = vld [vmem:[#allocation7 + $0x1180] sm:$0xff] }
 0x1e5   :  { %1845 = vmatprep.subr.mxu0 %v1638_v25  ;;  %1922 = vmatprep.subr.mxu1 %v1766_v8  ;;  %v1718_v25 = vld [vmem:[#allocation7 + $0x1428] sm:$0xff]  ;;  %v1589_v8 = vld [vmem:[#allocation7 + $0x1020] sm:$0xff] }
 0x1e6   :  { %1846 = vmatpush1.msra.mxu0 %v1637_v60  ;;  %1905 = vmatprep.mubr.f32.mxu0 %v2842_v62  ;;  %v1717_v60 = vld [vmem:[#allocation7 + $0x1420] sm:$0xff] }
 0x1e7   :  { %1923 = vmatpush1.msra.mxu1 %v1765_v13  ;;  %1982 = vmatprep.mubr.f32.mxu1 %v2851_v32  ;;  %v1586_v13 = vld [vmem:[#allocation7 + $0x1008] sm:$0xff] }
 0x1e8   :  { %1847 = vmatprep.subr.mxu0 %v1634_v63  ;;  %1924 = vmatprep.subr.mxu1 %v1762_v0  ;;  %v1714_v63 = vld [vmem:[#allocation7 + $0x1408] sm:$0xff]  ;;  %v1585_v0 = vld [vmem:[#allocation7 + $0x1000] sm:$0xff] }
 0x1e9   :  { %1848 = vmatpush1.msra.mxu0 %v1633_v36  ;;  %1925 = vmatpush1.msra.mxu1 %v1761_v1  ;;  %v1713_v36 = vld [vmem:[#allocation7 + $0x1400] sm:$0xff]  ;;  %v1710_v1 = vld [vmem:[#allocation7 + $0x13e8] sm:$0xff] }
 0x1ea   :  { %1849 = vmatprep.subr.mxu0 %v1630_v2  ;;  %1926 = vmatprep.subr.mxu1 %v1758_v5  ;;  %v1838_v2 = vld [vmem:[#allocation7 + $0x17e8] sm:$0xff]  ;;  %v1709_v5 = vld [vmem:[#allocation7 + $0x13e0] sm:$0xff] }
 0x1eb   :  { %1850 = vmatpush1.msra.mxu0 %v1629_v6  ;;  %1927 = vmatpush1.msra.mxu1 %v1757_v11  ;;  %v1837_v6 = vld [vmem:[#allocation7 + $0x17e0] sm:$0xff]  ;;  %v1706_v11 = vld [vmem:[#allocation7 + $0x13c8] sm:$0xff] }
 0x1ec   :  { %1851 = vmatprep.subr.mxu0 %v1626_v12  ;;  %1928 = vmatprep.subr.mxu1 %v1754_v15  ;;  %v1834_v12 = vld [vmem:[#allocation7 + $0x17c8] sm:$0xff]  ;;  %v1705_v15 = vld [vmem:[#allocation7 + $0x13c0] sm:$0xff] }
 0x1ed   :  { %1852 = vmatpush1.msra.mxu0 %v1625_v16  ;;  %1929 = vmatpush1.msra.mxu1 %v1753_v17  ;;  %v1833_v16 = vld [vmem:[#allocation7 + $0x17c0] sm:$0xff]  ;;  %v1702_v17 = vld [vmem:[#allocation7 + $0x13a8] sm:$0xff] }
 0x1ee   :  { %1853 = vmatprep.subr.mxu0 %v1622_v18  ;;  %1930 = vmatprep.subr.mxu1 %v1750_v28  ;;  %v1830_v18 = vld [vmem:[#allocation7 + $0x17a8] sm:$0xff]  ;;  %v1701_v28 = vld [vmem:[#allocation7 + $0x13a0] sm:$0xff] }
 0x1ef   :  { %1854 = vmatpush1.msra.mxu0 %v1621_v34  ;;  %1931 = vmatpush1.msra.mxu1 %v1749_v19  ;;  %v1829_v34 = vld [vmem:[#allocation7 + $0x17a0] sm:$0xff]  ;;  %v1698_v19 = vld [vmem:[#allocation7 + $0x1388] sm:$0xff] }
 0x1f0   :  { %1855 = vmatprep.subr.mxu0 %v1618_v20  ;;  %1932 = vmatprep.subr.mxu1 %v1746_v21  ;;  %v1826_v20 = vld [vmem:[#allocation7 + $0x1788] sm:$0xff]  ;;  %v1697_v21 = vld [vmem:[#allocation7 + $0x1380] sm:$0xff] }
 0x1f1   :  { %1856 = vmatpush1.msra.mxu0 %v1617_v22  ;;  %1933 = vmatpush1.msra.mxu1 %v1745_v23  ;;  %v1825_v22 = vld [vmem:[#allocation7 + $0x1780] sm:$0xff]  ;;  %v1694_v23 = vld [vmem:[#allocation7 + $0x1368] sm:$0xff] }
 0x1f2   :  { %1857 = vmatprep.subr.mxu0 %v1614_v24  ;;  %1934 = vmatprep.subr.mxu1 %v1742_v26  ;;  %v1822_v24 = vld [vmem:[#allocation7 + $0x1768] sm:$0xff]  ;;  %v1693_v26 = vld [vmem:[#allocation7 + $0x1360] sm:$0xff] }
 0x1f3   :  { %1858 = vmatpush1.msra.mxu0 %v1613_v27  ;;  %1935 = vmatpush1.msra.mxu1 %v1741_v29  ;;  %v1821_v27 = vld [vmem:[#allocation7 + $0x1760] sm:$0xff]  ;;  %v1690_v29 = vld [vmem:[#allocation7 + $0x1348] sm:$0xff] }
 0x1f4   :  { %1859 = vmatprep.subr.mxu0 %v1610_v31  ;;  %1936 = vmatprep.subr.mxu1 %v1738_v33  ;;  %v1818_v31 = vld [vmem:[#allocation7 + $0x1748] sm:$0xff]  ;;  %v2854_v33 = vpop.f32.mrf.mxu0 }
 0x1f5   :  { %1860 = vmatpush1.msra.mxu0 %v1609_v35  ;;  %1937 = vmatpush1.msra.mxu1 %v1737_v37  ;;  %v2856_v35 = vpop.f32.mrf.mxu1  ;;  %v1689_v37 = vld [vmem:[#allocation7 + $0x1340] sm:$0xff] }
 0x1f6   :  { %1861 = vmatprep.subr.mxu0 %v1606_v38  ;;  %1938 = vmatprep.subr.mxu1 %v1734_v39  ;;  %v1817_v38 = vld [vmem:[#allocation7 + $0x1740] sm:$0xff]  ;;  %v1686_v39 = vld [vmem:[#allocation7 + $0x1328] sm:$0xff] }
 0x1f7   :  { %1862 = vmatpush1.msra.mxu0 %v1605_v41  ;;  %1939 = vmatpush1.msra.mxu1 %v1733_v40  ;;  %v1814_v41 = vld [vmem:[#allocation7 + $0x1728] sm:$0xff]  ;;  %v1685_v40 = vld [vmem:[#allocation7 + $0x1320] sm:$0xff] }
 0x1f8   :  { %1863 = vmatprep.subr.mxu0 %v1602_v42  ;;  %1940 = vmatprep.subr.mxu1 %v1730_v43  ;;  %v1813_v42 = vld [vmem:[#allocation7 + $0x1720] sm:$0xff]  ;;  %v1682_v43 = vld [vmem:[#allocation7 + $0x1308] sm:$0xff] }
 0x1f9   :  { %1864 = vmatpush1.msra.mxu0 %v1601_v44  ;;  %1941 = vmatpush1.msra.mxu1 %v1729_v45  ;;  %v1810_v44 = vld [vmem:[#allocation7 + $0x1708] sm:$0xff]  ;;  %v2858_v45 = vpop.f32.mrf.mxu0 }
 0x1fa   :  { %1865 = vmatprep.subr.mxu0 %v1598_v46  ;;  %1942 = vmatprep.subr.mxu1 %v1726_v47  ;;  %v2860_v46 = vpop.f32.mrf.mxu1  ;;  %v1681_v47 = vld [vmem:[#allocation7 + $0x1300] sm:$0xff] }
 0x1fb   :  { %1866 = vmatpush1.msra.mxu0 %v1597_v48  ;;  %1943 = vmatpush1.msra.mxu1 %v1725_v49  ;;  %v1809_v48 = vld [vmem:[#allocation7 + $0x1700] sm:$0xff]  ;;  %v1678_v49 = vld [vmem:[#allocation7 + $0x12e8] sm:$0xff] }
 0x1fc   :  { %1867 = vmatprep.subr.mxu0 %v1594_v50  ;;  %1944 = vmatprep.subr.mxu1 %v1722_v51  ;;  %v1806_v50 = vld [vmem:[#allocation7 + $0x16e8] sm:$0xff]  ;;  %v1677_v51 = vld [vmem:[#allocation7 + $0x12e0] sm:$0xff] }
 0x1fd   :  { %1868 = vmatpush1.msra.mxu0 %v1593_v52  ;;  %1945 = vmatpush1.msra.mxu1 %v1721_v55  ;;  %v1805_v52 = vld [vmem:[#allocation7 + $0x16e0] sm:$0xff]  ;;  %v2862_v55 = vpop.f32.mrf.mxu0 }
 0x1fe   :  { %1869 = vmatprep.subr.mxu0 %v1590_v56  ;;  %1946 = vmatprep.subr.mxu1 %v1718_v25  ;;  %v2864_v56 = vpop.f32.mrf.mxu1  ;;  %v1674_v25 = vld [vmem:[#allocation7 + $0x12c8] sm:$0xff] }
 0x1ff   :  { %1870 = vmatpush1.msra.mxu0 %v1589_v8  ;;  %1947 = vmatpush1.msra.mxu1 %v1717_v60  ;;  %v1802_v8 = vld [vmem:[#allocation7 + $0x16c8] sm:$0xff]  ;;  %v1673_v60 = vld [vmem:[#allocation7 + $0x12c0] sm:$0xff] }
 0x200   :  { %1871 = vmatprep.subr.mxu0 %v1586_v13  ;;  %1948 = vmatprep.subr.mxu1 %v1714_v63  ;;  %v1801_v13 = vld [vmem:[#allocation7 + $0x16c0] sm:$0xff]  ;;  %v1670_v63 = vld [vmem:[#allocation7 + $0x12a8] sm:$0xff] }
 0x201   :  { %1872 = vmatpush1.msra.mxu0 %v1585_v0  ;;  %1949 = vmatpush1.msra.mxu1 %v1713_v36  ;;  %v1798_v0 = vld [vmem:[#allocation7 + $0x16a8] sm:$0xff]  ;;  %v1669_v36 = vld [vmem:[#allocation7 + $0x12a0] sm:$0xff] }
 0x202   :  { %1873 = vmatprep.subr.mxu0 %v1710_v1  ;;  %1950 = vmatprep.subr.mxu1 %v1838_v2  ;;  %v1797_v1 = vld [vmem:[#allocation7 + $0x16a0] sm:$0xff]  ;;  %v2866_v2 = vpop.f32.mrf.mxu0 }
 0x203   :  { %1874 = vmatpush2.msra.mxu0 %v1709_v5  ;;  %1951 = vmatpush2.msra.mxu1 %v1837_v6  ;;  %v2868_v5 = vpop.f32.mrf.mxu1  ;;  %v1666_v6 = vld [vmem:[#allocation7 + $0x1288] sm:$0xff] }
 0x204   :  { %1875 = vmatprep.subr.mxu0 %v1706_v11  ;;  %1952 = vmatprep.subr.mxu1 %v1834_v12  ;;  %v1794_v11 = vld [vmem:[#allocation7 + $0x1688] sm:$0xff]  ;;  %v1665_v12 = vld [vmem:[#allocation7 + $0x1280] sm:$0xff] }
 0x205   :  { %1876 = vmatpush2.msra.mxu0 %v1705_v15  ;;  %1953 = vmatpush2.msra.mxu1 %v1833_v16  ;;  %v1793_v15 = vld [vmem:[#allocation7 + $0x1680] sm:$0xff] }
 0x206   :  { %1877 = vmatprep.subr.mxu0 %v1702_v17  ;;  %1954 = vmatprep.subr.mxu1 %v1830_v18  ;;  %v1662_v18 = vld [vmem:[#allocation7 + $0x1268] sm:$0xff] }
 0x207   :  { %1878 = vmatpush2.msra.mxu0 %v1701_v28  ;;  %1955 = vmatpush2.msra.mxu1 %v1829_v34  ;;  %v1790_v28 = vld [vmem:[#allocation7 + $0x1668] sm:$0xff] }
 0x208   :  { %1879 = vmatprep.subr.mxu0 %v1698_v19  ;;  %1956 = vmatprep.subr.mxu1 %v1826_v20  ;;  %v1661_v19 = vld [vmem:[#allocation7 + $0x1260] sm:$0xff] }
 0x209   :  { %1880 = vmatpush2.msra.mxu0 %v1697_v21  ;;  %1957 = vmatpush2.msra.mxu1 %v1825_v22  ;;  %v1789_v20 = vld [vmem:[#allocation7 + $0x1660] sm:$0xff] }
 0x20a   :  { %1881 = vmatprep.subr.mxu0 %v1694_v23  ;;  %1958 = vmatprep.subr.mxu1 %v1822_v24  ;;  %v1658_v23 = vld [vmem:[#allocation7 + $0x1248] sm:$0xff] }
 0x20b   :  { %1882 = vmatpush2.msra.mxu0 %v1693_v26  ;;  %1959 = vmatpush2.msra.mxu1 %v1821_v27  ;;  %v1786_v24 = vld [vmem:[#allocation7 + $0x1648] sm:$0xff]  ;;  %v179_v26 = vadd.s32 8, %v2702_v30 }
 0x20c   :  { %1883 = vmatprep.subr.mxu0 %v1690_v29  ;;  %1960 = vmatprep.subr.mxu1 %v1818_v31  ;;  %v1657_v29 = vld [vmem:[#allocation7 + $0x1240] sm:$0xff] }
 0x20d   :  { %1884 = vmatpush2.msra.mxu0 %v1689_v37  ;;  %1961 = vmatpush2.msra.mxu1 %v1817_v38  ;;  %v1785_v31 = vld [vmem:[#allocation7 + $0x1640] sm:$0xff]  ;;  %v1654_v37 = vld [vmem:[#allocation7 + $0x1228] sm:$0xff] }
 0x20e   :  { %1885 = vmatprep.subr.mxu0 %v1686_v39  ;;  %1962 = vmatprep.subr.mxu1 %v1814_v41  ;;  %v1782_v38 = vld [vmem:[#allocation7 + $0x1628] sm:$0xff]  ;;  %v1653_v39 = vld [vmem:[#allocation7 + $0x1220] sm:$0xff] }
 0x20f   :  { %1886 = vmatpush2.msra.mxu0 %v1685_v40  ;;  %1963 = vmatpush2.msra.mxu1 %v1813_v42  ;;  %v1781_v41 = vld [vmem:[#allocation7 + $0x1620] sm:$0xff] }
 0x210   :  { %1887 = vmatprep.subr.mxu0 %v1682_v43  ;;  %1964 = vmatprep.subr.mxu1 %v1810_v44  ;;  %v1563_v43 = vrot.slane %v2722_v9, 1  ;;  %v1565_v44 = vrot.slane %v2724_v10, 1  ;;  %v1561_v9 = vrot.slane %v2712_v58, 1  ;;  %v1775_v58 = vld [vmem:[#allocation7 + $0x15f0] sm:$0xff] }
 0x211   :  { %1888 = vmatpush2.msra.mxu0 %v1681_v47  ;;  %1965 = vmatpush2.msra.mxu1 %v1809_v48  ;;  %v1650_v47 = vld [vmem:[#allocation7 + $0x1208] sm:$0xff] }
 0x212   :  { %1889 = vmatprep.subr.mxu0 %v1678_v49  ;;  %1966 = vmatprep.subr.mxu1 %v1806_v50  ;;  %v1778_v48 = vld [vmem:[#allocation7 + $0x1608] sm:$0xff]  ;;  %v2877_v49 = vadd.s32 1, %v179_v26  ;;  %v1755_v26 = vld [vmem:[#allocation7 + $0x1550] sm:$0xff] }
 0x213   :  { %1890 = vmatpush2.msra.mxu0 %v1677_v51  ;;  %1967 = vmatpush2.msra.mxu1 %v1805_v52  ;;  %v1649_v51 = vld [vmem:[#allocation7 + $0x1200] sm:$0xff] }
 0x214   :  { %1891 = vmatprep.subr.mxu0 %v1674_v25  ;;  %1968 = vmatprep.subr.mxu1 %v1802_v8  ;;  %v1777_v52 = vld [vmem:[#allocation7 + $0x1600] sm:$0xff]  ;;  %vm193_vm4 = vcmp.lt.s32.totalorder %v2877_v49, 16  ;;  %v120_v49 = vld [vmem:[#allocation8 + $0x48] sm:$0xff] }
 0x215   :  { %1892 = vmatpush2.msra.mxu0 %v1673_v60  ;;  %1969 = vmatpush2.msra.mxu1 %v1801_v13  ;;  %v1559_v60 = vrot.slane %v2710_v57, 1  ;;  %v1648_v13 = vld [vmem:[#allocation7 + $0x11f8] sm:$0xff]  ;;  %v1647_v57 = vld [vmem:[#allocation7 + $0x11f0] sm:$0xff] }
 0x216   :  { %1893 = vmatprep.subr.mxu0 %v1670_v63  ;;  %1970 = vmatprep.subr.mxu1 %v1798_v0  ;;  %v1163_v16 = vpop.f32.mrf.mxu0  ;;  %v1240_v17 = vpop.f32.mrf.mxu1  ;;  %v1776_v63 = vld [vmem:[#allocation7 + $0x15f8] sm:$0xff] }
 0x217   :  { %1894 = vmatpush2.msra.mxu0 %v1669_v36  ;;  %1971 = vmatpush2.msra.mxu1 %v1797_v1  ;;  %v2870_v34 = vadd.f32 %v1240_v17, %v1163_v16  ;;  %v2887_v0 = vsel %vm1567_vm3, %v1559_v60, %v1563_v43  ;;  %v2891_v36 = vsel %vm1567_vm3, %v1561_v9, %v1565_v44  ;;  %v1764_v16 = vld [vmem:[#allocation7 + $0x1598] sm:$0xff]  ;;  %v1635_v17 = vld [vmem:[#allocation7 + $0x1190] sm:$0xff] }
 0x218   :  { %1895 = vmatprep.subr.mxu0 %v1666_v6  ;;  %1972 = vmatprep.subr.mxu1 %v1794_v11  ;;  %v1165_v21 = vpop.f32.mrf.mxu0  ;;  %v1242_v22 = vpop.f32.mrf.mxu1  ;;  %v2902_v1 = vsel %vm1567_vm3, %v1564_v7, %v1560_v61  ;;  %v2910_v6 = vsel %vm1567_vm3, %v1566_v59, %v1562_v14  ;;  %v1644_v11 = vld [vmem:[#allocation7 + $0x11d8] sm:$0xff]  ;;  %v2920_v7 = vsel %vm1567_vm3, %v1563_v43, %v1559_v60  ;;  %v1639_v61 = vld [vmem:[#allocation7 + $0x11b0] sm:$0xff] }
 0x219   :  { %1896 = vmatpush2.msra.mxu0 %v1665_v12  ;;  %1973 = vmatpush2.msra.mxu1 %v1793_v15  ;;  %v2873_v27 = vadd.f32 %v1242_v22, %v1165_v21  ;;  %v1772_v12 = vld [vmem:[#allocation7 + $0x15d8] sm:$0xff]  ;;  %v2924_v59 = vsel %vm1567_vm3, %v1565_v44, %v1561_v9  ;;  %v1767_v14 = vld [vmem:[#allocation7 + $0x15b0] sm:$0xff] }
 0x21a   :  { %1897 = vmatprep.subr.mxu0 %v1662_v18  ;;  %1974 = vmatprep.subr.mxu1 %v1790_v28  ;;  %v1636_v15 = vld [vmem:[#allocation7 + $0x1198] sm:$0xff]  ;;  %v1763_v18 = vld [vmem:[#allocation7 + $0x1590] sm:$0xff] }
 0x21b   :  { %1898 = vmatpush2.msra.mxu0 %v1661_v19  ;;  %1975 = vmatpush2.msra.mxu1 %v1789_v20  ;;  %v1632_v28 = vld [vmem:[#allocation7 + $0x1178] sm:$0xff]  ;;  %v1631_v20 = vld [vmem:[#allocation7 + $0x1170] sm:$0xff] }
 0x21c   :  { %1899 = vmatprep.subr.mxu0 %v1658_v23  ;;  %1976 = vmatprep.subr.mxu1 %v1786_v24  ;;  %v1169_v40 = vpop.f32.mrf.mxu0  ;;  %v1246_v42 = vpop.f32.mrf.mxu1  ;;  %v1760_v19 = vld [vmem:[#allocation7 + $0x1578] sm:$0xff]  ;;  %v1759_v21 = vld [vmem:[#allocation7 + $0x1570] sm:$0xff] }
 0x21d   :  { %1900 = vmatpush2.msra.mxu0 %v1657_v29  ;;  %1977 = vmatpush2.msra.mxu1 %v1785_v31  ;;  %v2879_v50 = vadd.f32 %v1246_v42, %v1169_v40  ;;  %v1628_v22 = vld [vmem:[#allocation7 + $0x1158] sm:$0xff]  ;;  %v1627_v24 = vld [vmem:[#allocation7 + $0x1150] sm:$0xff] }
 0x21e   :  { %1901 = vmatprep.subr.mxu0 %v1654_v37  ;;  %1978 = vmatprep.subr.mxu1 %v1782_v38  ;;  %v1171_v25 = vpop.f32.mrf.mxu0  ;;  %v1248_v8 = vpop.f32.mrf.mxu1  ;;  %v1756_v23 = vld [vmem:[#allocation7 + $0x1558] sm:$0xff]  ;;  %v1751_v31 = vld [vmem:[#allocation7 + $0x1530] sm:$0xff] }
 0x21f   :  { %1902 = vmatpush2.msra.mxu0 %v1653_v39  ;;  %1979 = vmatpush2.msra.mxu1 %v1781_v41  ;;  %v2883_v10 = vadd.f32 %v1248_v8, %v1171_v25  ;;  %v1752_v29 = vld [vmem:[#allocation7 + $0x1538] sm:$0xff]  ;;  %v1619_v39 = vld [vmem:[#allocation7 + $0x1110] sm:$0xff] }
 0x220   :  { %1903 = vmatprep.subr.mxu0 %v1650_v47  ;;  %1980 = vmatprep.subr.mxu1 %v1778_v48  ;;  %v1620_v37 = vld [vmem:[#allocation7 + $0x1118] sm:$0xff]  ;;  %v1747_v41 = vld [vmem:[#allocation7 + $0x1510] sm:$0xff] }
 0x221   :  { %1904 = vmatpush2.msra.mxu0 %v1649_v51  ;;  %1981 = vmatpush2.msra.mxu1 %v1777_v52  ;;  %v1748_v38 = vld [vmem:[#allocation7 + $0x1518] sm:$0xff]  ;;  %v1615_v43 = vld [vmem:[#allocation7 + $0x10f0] sm:$0xff] }
 0x222   :  { %1906 = vmatmul.mubr.f32.vlgmr.msra.gmra.mxu0 %v2887_v0  ;;  %1983 = vmatmul.mubr.f32.vlgmr.msra.gmra.mxu1 %v2891_v36  ;;  %v1616_v40 = vld [vmem:[#allocation7 + $0x10f8] sm:$0xff]  ;;  %v1743_v44 = vld [vmem:[#allocation7 + $0x14f0] sm:$0xff] }
 0x223   :  { %1995 = vmatprep.subr.mxu0 %v1648_v13  ;;  %2072 = vmatprep.subr.mxu1 %v1776_v63  ;;  %v1744_v42 = vld [vmem:[#allocation7 + $0x14f8] sm:$0xff]  ;;  %v1611_v51 = vld [vmem:[#allocation7 + $0x10d0] sm:$0xff] }
 0x224   :  { %2417 = vmatprep.mubr.msk.f32.mxu0 %vm193_vm4, %v2902_v1  ;;  %2419 = vmatprep.mubr.msk.f32.mxu1 %vm193_vm4, %v2910_v6  ;;  %v1612_v47 = vld [vmem:[#allocation7 + $0x10d8] sm:$0xff]  ;;  %v1739_v52 = vld [vmem:[#allocation7 + $0x14d0] sm:$0xff] }
 0x225   :  { %1996 = vmatpush1.msra.mxu0 %v1647_v57  ;;  %2073 = vmatpush1.msra.mxu1 %v1775_v58  ;;  %v1740_v48 = vld [vmem:[#allocation7 + $0x14d8] sm:$0xff]  ;;  %v1607_v60 = vld [vmem:[#allocation7 + $0x10b0] sm:$0xff] }
 0x226   :  { %1997 = vmatprep.subr.mxu0 %v1644_v11  ;;  %2074 = vmatprep.subr.mxu1 %v1772_v12  ;;  %v1608_v25 = vld [vmem:[#allocation7 + $0x10b8] sm:$0xff]  ;;  %v1735_v9 = vld [vmem:[#allocation7 + $0x14b0] sm:$0xff] }
 0x227   :  { %1998 = vmatpush1.msra.mxu0 %v1643_v53  ;;  %2075 = vmatpush1.msra.mxu1 %v1771_v3  ;;  %v1736_v8 = vld [vmem:[#allocation7 + $0x14b8] sm:$0xff]  ;;  %v1603_v57 = vld [vmem:[#allocation7 + $0x1090] sm:$0xff] }
 0x228   :  { %2418 = vmatmul.mubr.msk.f32.gmra.mxu0 %vm193_vm4, %v2920_v7  ;;  %2420 = vmatmul.mubr.msk.f32.gmra.mxu1 %vm193_vm4, %v2924_v59  ;;  %v1604_v13 = vld [vmem:[#allocation7 + $0x1098] sm:$0xff]  ;;  %v1731_v58 = vld [vmem:[#allocation7 + $0x1490] sm:$0xff] }
 0x229   :  { %1999 = vmatprep.subr.mxu0 %v1640_v54  ;;  %2076 = vmatprep.subr.mxu1 %v1768_v4  ;;  %v1732_v63 = vld [vmem:[#allocation7 + $0x1498] sm:$0xff]  ;;  %v1599_v53 = vld [vmem:[#allocation7 + $0x1070] sm:$0xff] }
 0x22a   :  { %2000 = vmatpush1.msra.mxu0 %v1639_v61  ;;  %2059 = vmatprep.mubr.f32.mxu0 %v2842_v62  ;;  %v1624_v62 = vld [vmem:[#allocation7 + $0x1138] sm:$0xff]  ;;  %v1727_v3 = vld [vmem:[#allocation7 + $0x1470] sm:$0xff] }
 0x22b   :  { %2077 = vmatpush1.msra.mxu1 %v1767_v14  ;;  %2136 = vmatprep.mubr.f32.mxu1 %v2851_v32  ;;  %v1623_v32 = vld [vmem:[#allocation7 + $0x1130] sm:$0xff]  ;;  %v1600_v11 = vld [vmem:[#allocation7 + $0x1078] sm:$0xff] }
 0x22c   :  { %2001 = vmatprep.subr.mxu0 %v1636_v15  ;;  %2078 = vmatprep.subr.mxu1 %v1764_v16  ;;  %v1728_v12 = vld [vmem:[#allocation7 + $0x1478] sm:$0xff]  ;;  %v1595_v61 = vld [vmem:[#allocation7 + $0x1050] sm:$0xff] }
 0x22d   :  { %2002 = vmatpush1.msra.mxu0 %v1635_v17  ;;  %2079 = vmatpush1.msra.mxu1 %v1763_v18  ;;  %v1596_v54 = vld [vmem:[#allocation7 + $0x1058] sm:$0xff]  ;;  %v1723_v14 = vld [vmem:[#allocation7 + $0x1450] sm:$0xff] }
 0x22e   :  { %2003 = vmatprep.subr.mxu0 %v1632_v28  ;;  %2080 = vmatprep.subr.mxu1 %v1760_v19  ;;  %v1724_v4 = vld [vmem:[#allocation7 + $0x1458] sm:$0xff]  ;;  %v1591_v17 = vld [vmem:[#allocation7 + $0x1030] sm:$0xff] }
 0x22f   :  { %2004 = vmatpush1.msra.mxu0 %v1631_v20  ;;  %2081 = vmatpush1.msra.mxu1 %v1759_v21  ;;  %v1592_v15 = vld [vmem:[#allocation7 + $0x1038] sm:$0xff]  ;;  %v1719_v18 = vld [vmem:[#allocation7 + $0x1430] sm:$0xff] }
 0x230   :  { %2005 = vmatprep.subr.mxu0 %v1628_v22  ;;  %2082 = vmatprep.subr.mxu1 %v1756_v23  ;;  %v1720_v16 = vld [vmem:[#allocation7 + $0x1438] sm:$0xff]  ;;  %v1587_v20 = vld [vmem:[#allocation7 + $0x1010] sm:$0xff] }
 0x231   :  { %2006 = vmatpush1.msra.mxu0 %v1627_v24  ;;  %2083 = vmatpush1.msra.mxu1 %v1755_v26  ;;  %v1588_v28 = vld [vmem:[#allocation7 + $0x1018] sm:$0xff]  ;;  %v1715_v21 = vld [vmem:[#allocation7 + $0x1410] sm:$0xff] }
 0x232   :  { %2007 = vmatprep.subr.mxu0 %v1624_v62  ;;  %2084 = vmatprep.subr.mxu1 %v1752_v29  ;;  %v1716_v19 = vld [vmem:[#allocation7 + $0x1418] sm:$0xff]  ;;  %v1711_v24 = vld [vmem:[#allocation7 + $0x13f0] sm:$0xff] }
 0x233   :  { %2008 = vmatpush1.msra.mxu0 %v1623_v32  ;;  %2085 = vmatpush1.msra.mxu1 %v1751_v31  ;;  %v1712_v22 = vld [vmem:[#allocation7 + $0x13f8] sm:$0xff]  ;;  %v1839_v26 = vld [vmem:[#allocation7 + $0x17f0] sm:$0xff] }
 0x234   :  { %2009 = vmatprep.subr.mxu0 %v1620_v37  ;;  %2086 = vmatprep.subr.mxu1 %v1748_v38  ;;  %v1840_v23 = vld [vmem:[#allocation7 + $0x17f8] sm:$0xff]  ;;  %v1707_v32 = vld [vmem:[#allocation7 + $0x13d0] sm:$0xff] }
 0x235   :  { %2010 = vmatpush1.msra.mxu0 %v1619_v39  ;;  %2087 = vmatpush1.msra.mxu1 %v1747_v41  ;;  %v1708_v62 = vld [vmem:[#allocation7 + $0x13d8] sm:$0xff]  ;;  %v1835_v31 = vld [vmem:[#allocation7 + $0x17d0] sm:$0xff] }
 0x236   :  { %2011 = vmatprep.subr.mxu0 %v1616_v40  ;;  %2088 = vmatprep.subr.mxu1 %v1744_v42  ;;  %v1836_v29 = vld [vmem:[#allocation7 + $0x17d8] sm:$0xff]  ;;  %v1703_v39 = vld [vmem:[#allocation7 + $0x13b0] sm:$0xff] }
 0x237   :  { %2012 = vmatpush1.msra.mxu0 %v1615_v43  ;;  %2089 = vmatpush1.msra.mxu1 %v1743_v44  ;;  %v1704_v37 = vld [vmem:[#allocation7 + $0x13b8] sm:$0xff]  ;;  %v1831_v41 = vld [vmem:[#allocation7 + $0x17b0] sm:$0xff] }
 0x238   :  { %2013 = vmatprep.subr.mxu0 %v1612_v47  ;;  %2090 = vmatprep.subr.mxu1 %v1740_v48  ;;  %v1832_v38 = vld [vmem:[#allocation7 + $0x17b8] sm:$0xff]  ;;  %v1699_v43 = vld [vmem:[#allocation7 + $0x1390] sm:$0xff] }
 0x239   :  { %2014 = vmatpush1.msra.mxu0 %v1611_v51  ;;  %2091 = vmatpush1.msra.mxu1 %v1739_v52  ;;  %v1700_v40 = vld [vmem:[#allocation7 + $0x1398] sm:$0xff]  ;;  %v1827_v44 = vld [vmem:[#allocation7 + $0x1790] sm:$0xff] }
 0x23a   :  { %2015 = vmatprep.subr.mxu0 %v1608_v25  ;;  %2092 = vmatprep.subr.mxu1 %v1736_v8  ;;  %v1828_v42 = vld [vmem:[#allocation7 + $0x1798] sm:$0xff]  ;;  %v1695_v51 = vld [vmem:[#allocation7 + $0x1370] sm:$0xff] }
 0x23b   :  { %2016 = vmatpush1.msra.mxu0 %v1607_v60  ;;  %2093 = vmatpush1.msra.mxu1 %v1735_v9  ;;  %v1696_v47 = vld [vmem:[#allocation7 + $0x1378] sm:$0xff]  ;;  %v1823_v52 = vld [vmem:[#allocation7 + $0x1770] sm:$0xff] }
 0x23c   :  { %2017 = vmatprep.subr.mxu0 %v1604_v13  ;;  %2094 = vmatprep.subr.mxu1 %v1732_v63  ;;  %v1824_v48 = vld [vmem:[#allocation7 + $0x1778] sm:$0xff]  ;;  %v1691_v60 = vld [vmem:[#allocation7 + $0x1350] sm:$0xff] }
 0x23d   :  { %2018 = vmatpush1.msra.mxu0 %v1603_v57  ;;  %2095 = vmatpush1.msra.mxu1 %v1731_v58  ;;  %v1692_v25 = vld [vmem:[#allocation7 + $0x1358] sm:$0xff]  ;;  %v1819_v9 = vld [vmem:[#allocation7 + $0x1750] sm:$0xff] }
 0x23e   :  { %2019 = vmatprep.subr.mxu0 %v1600_v11  ;;  %2096 = vmatprep.subr.mxu1 %v1728_v12  ;;  %v1820_v8 = vld [vmem:[#allocation7 + $0x1758] sm:$0xff]  ;;  %v1687_v57 = vld [vmem:[#allocation7 + $0x1330] sm:$0xff] }
 0x23f   :  { %2020 = vmatpush1.msra.mxu0 %v1599_v53  ;;  %2097 = vmatpush1.msra.mxu1 %v1727_v3  ;;  %v1688_v13 = vld [vmem:[#allocation7 + $0x1338] sm:$0xff]  ;;  %v1815_v58 = vld [vmem:[#allocation7 + $0x1730] sm:$0xff] }
 0x240   :  { %2021 = vmatprep.subr.mxu0 %v1596_v54  ;;  %2098 = vmatprep.subr.mxu1 %v1724_v4  ;;  %v1816_v63 = vld [vmem:[#allocation7 + $0x1738] sm:$0xff]  ;;  %v1683_v53 = vld [vmem:[#allocation7 + $0x1310] sm:$0xff] }
 0x241   :  { %2022 = vmatpush1.msra.mxu0 %v1595_v61  ;;  %2099 = vmatpush1.msra.mxu1 %v1723_v14  ;;  %v1684_v11 = vld [vmem:[#allocation7 + $0x1318] sm:$0xff]  ;;  %v1811_v3 = vld [vmem:[#allocation7 + $0x1710] sm:$0xff] }
 0x242   :  { %2023 = vmatprep.subr.mxu0 %v1592_v15  ;;  %2100 = vmatprep.subr.mxu1 %v1720_v16  ;;  %v1812_v12 = vld [vmem:[#allocation7 + $0x1718] sm:$0xff]  ;;  %v1679_v61 = vld [vmem:[#allocation7 + $0x12f0] sm:$0xff] }
 0x243   :  { %2024 = vmatpush1.msra.mxu0 %v1591_v17  ;;  %2101 = vmatpush1.msra.mxu1 %v1719_v18  ;;  %v1680_v54 = vld [vmem:[#allocation7 + $0x12f8] sm:$0xff]  ;;  %v1807_v14 = vld [vmem:[#allocation7 + $0x16f0] sm:$0xff] }
 0x244   :  { %2025 = vmatprep.subr.mxu0 %v1588_v28  ;;  %2102 = vmatprep.subr.mxu1 %v1716_v19  ;;  %v1808_v4 = vld [vmem:[#allocation7 + $0x16f8] sm:$0xff]  ;;  %v1675_v17 = vld [vmem:[#allocation7 + $0x12d0] sm:$0xff] }
 0x245   :  { %2026 = vmatpush1.msra.mxu0 %v1587_v20  ;;  %2103 = vmatpush1.msra.mxu1 %v1715_v21  ;;  %v1676_v15 = vld [vmem:[#allocation7 + $0x12d8] sm:$0xff]  ;;  %v1803_v18 = vld [vmem:[#allocation7 + $0x16d0] sm:$0xff] }
 0x246   :  { %2027 = vmatprep.subr.mxu0 %v1712_v22  ;;  %2104 = vmatprep.subr.mxu1 %v1840_v23  ;;  %v1804_v16 = vld [vmem:[#allocation7 + $0x16d8] sm:$0xff]  ;;  %v1671_v20 = vld [vmem:[#allocation7 + $0x12b0] sm:$0xff] }
 0x247   :  { %2028 = vmatpush2.msra.mxu0 %v1711_v24  ;;  %2105 = vmatpush2.msra.mxu1 %v1839_v26  ;;  %v1672_v28 = vld [vmem:[#allocation7 + $0x12b8] sm:$0xff]  ;;  %v1799_v21 = vld [vmem:[#allocation7 + $0x16b0] sm:$0xff] }
 0x248   :  { %2029 = vmatprep.subr.mxu0 %v1708_v62  ;;  %2106 = vmatprep.subr.mxu1 %v1836_v29  ;;  %v1800_v19 = vld [vmem:[#allocation7 + $0x16b8] sm:$0xff]  ;;  %v1667_v24 = vld [vmem:[#allocation7 + $0x1290] sm:$0xff] }
 0x249   :  { %2030 = vmatpush2.msra.mxu0 %v1707_v32  ;;  %2107 = vmatpush2.msra.mxu1 %v1835_v31  ;;  %v1668_v22 = vld [vmem:[#allocation7 + $0x1298] sm:$0xff]  ;;  %v1795_v26 = vld [vmem:[#allocation7 + $0x1690] sm:$0xff] }
 0x24a   :  { %2031 = vmatprep.subr.mxu0 %v1704_v37  ;;  %2108 = vmatprep.subr.mxu1 %v1832_v38  ;;  %v1796_v23 = vld [vmem:[#allocation7 + $0x1698] sm:$0xff]  ;;  %v1663_v32 = vld [vmem:[#allocation7 + $0x1270] sm:$0xff] }
 0x24b   :  { %2032 = vmatpush2.msra.mxu0 %v1703_v39  ;;  %2109 = vmatpush2.msra.mxu1 %v1831_v41  ;;  %v1664_v62 = vld [vmem:[#allocation7 + $0x1278] sm:$0xff]  ;;  %v1791_v31 = vld [vmem:[#allocation7 + $0x1670] sm:$0xff] }
 0x24c   :  { %2033 = vmatprep.subr.mxu0 %v1700_v40  ;;  %2110 = vmatprep.subr.mxu1 %v1828_v42  ;;  %v1792_v29 = vld [vmem:[#allocation7 + $0x1678] sm:$0xff]  ;;  %v1659_v39 = vld [vmem:[#allocation7 + $0x1250] sm:$0xff] }
 0x24d   :  { %2034 = vmatpush2.msra.mxu0 %v1699_v43  ;;  %2111 = vmatpush2.msra.mxu1 %v1827_v44  ;;  %v1660_v37 = vld [vmem:[#allocation7 + $0x1258] sm:$0xff]  ;;  %v1787_v41 = vld [vmem:[#allocation7 + $0x1650] sm:$0xff] }
 0x24e   :  { %2035 = vmatprep.subr.mxu0 %v1696_v47  ;;  %2112 = vmatprep.subr.mxu1 %v1824_v48  ;;  %v1788_v38 = vld [vmem:[#allocation7 + $0x1658] sm:$0xff]  ;;  %v1655_v43 = vld [vmem:[#allocation7 + $0x1230] sm:$0xff] }
 0x24f   :  { %2036 = vmatpush2.msra.mxu0 %v1695_v51  ;;  %2113 = vmatpush2.msra.mxu1 %v1823_v52  ;;  %v1656_v40 = vld [vmem:[#allocation7 + $0x1238] sm:$0xff]  ;;  %v1783_v44 = vld [vmem:[#allocation7 + $0x1630] sm:$0xff] }
 0x250   :  { %2037 = vmatprep.subr.mxu0 %v1692_v25  ;;  %2114 = vmatprep.subr.mxu1 %v1820_v8  ;;  %v1784_v42 = vld [vmem:[#allocation7 + $0x1638] sm:$0xff]  ;;  %v1651_v51 = vld [vmem:[#allocation7 + $0x1210] sm:$0xff] }
 0x251   :  { %2038 = vmatpush2.msra.mxu0 %v1691_v60  ;;  %2115 = vmatpush2.msra.mxu1 %v1819_v9  ;;  %v1652_v47 = vld [vmem:[#allocation7 + $0x1218] sm:$0xff]  ;;  %v1779_v52 = vld [vmem:[#allocation7 + $0x1610] sm:$0xff] }
 0x252   :  { %2039 = vmatprep.subr.mxu0 %v1688_v13  ;;  %2116 = vmatprep.subr.mxu1 %v1816_v63  ;;  %v1780_v48 = vld [vmem:[#allocation7 + $0x1618] sm:$0xff]  ;;  %v141_v60 = vld [vmem:[#allocation8 + $0xf0] sm:$0xff]  ;;  %v123_v13 = vld [vmem:[#allocation8 + $0x60] sm:$0xff] }
 0x253   :  { %2040 = vmatpush2.msra.mxu0 %v1687_v57  ;;  %2117 = vmatpush2.msra.mxu1 %v1815_v58  ;;  %v142_v25 = vld [vmem:[#allocation8 + $0xf8] sm:$0xff]  ;;  %v125_v9 = vld [vmem:[#allocation8 + $0x70] sm:$0xff] }
 0x254   :  { %2041 = vmatprep.subr.mxu0 %v1684_v11  ;;  %2118 = vmatprep.subr.mxu1 %v1812_v12  ;;  %v126_v8 = vld [vmem:[#allocation8 + $0x78] sm:$0xff]  ;;  %v137_v57 = vld [vmem:[#allocation8 + $0xd0] sm:$0xff]  ;;  %v119_v11 = vld [vmem:[#allocation8 + $0x40] sm:$0xff] }
 0x255   :  { %2042 = vmatpush2.msra.mxu0 %v1683_v53  ;;  %2119 = vmatpush2.msra.mxu1 %v1811_v3  ;;  %v122_v63 = vld [vmem:[#allocation8 + $0x58] sm:$0xff]  ;;  %v121_v58 = vld [vmem:[#allocation8 + $0x50] sm:$0xff] }
 0x256   :  { %2043 = vmatprep.subr.mxu0 %v1680_v54  ;;  %2120 = vmatprep.subr.mxu1 %v1808_v4  ;;  %v134_v12 = vld [vmem:[#allocation8 + $0xb8] sm:$0xff]  ;;  %v133_v3 = vld [vmem:[#allocation8 + $0xb0] sm:$0xff]  ;;  %v132_v4 = vld [vmem:[#allocation8 + $0xa8] sm:$0xff] }
 0x257   :  { %2044 = vmatpush2.msra.mxu0 %v1679_v61  ;;  %2121 = vmatpush2.msra.mxu1 %v1807_v14  ;;  %v118_v53 = vld [vmem:[#allocation8 + $0x38] sm:$0xff]  ;;  %v117_v54 = vld [vmem:[#allocation8 + $0x30] sm:$0xff]  ;;  %v116_v61 = vld [vmem:[#allocation8 + $0x28] sm:$0xff] }
 0x258   :  { %2045 = vmatprep.subr.mxu0 %v1676_v15  ;;  %2122 = vmatprep.subr.mxu1 %v1804_v16  ;;  %v131_v14 = vld [vmem:[#allocation8 + $0xa0] sm:$0xff]  ;;  %v130_v16 = vld [vmem:[#allocation8 + $0x98] sm:$0xff] }
 0x259   :  { %2046 = vmatpush2.msra.mxu0 %v1675_v17  ;;  %2123 = vmatpush2.msra.mxu1 %v1803_v18  ;;  %v115_v15 = vld [vmem:[#allocation8 + $0x20] sm:$0xff]  ;;  %v114_v17 = vld [vmem:[#allocation8 + $0x18] sm:$0xff]  ;;  %v129_v18 = vld [vmem:[#allocation8 + $0x90] sm:$0xff] }
 0x25a   :  { %2047 = vmatprep.subr.mxu0 %v1672_v28  ;;  %2124 = vmatprep.subr.mxu1 %v1800_v19  ;;  %v113_v28 = vld [vmem:[#allocation8 + $0x10] sm:$0xff]  ;;  %v128_v19 = vld [vmem:[#allocation8 + $0x88] sm:$0xff] }
 0x25b   :  { %2048 = vmatpush2.msra.mxu0 %v1671_v20  ;;  %2125 = vmatpush2.msra.mxu1 %v1799_v21  ;;  %v112_v20 = vld [vmem:[#allocation8 + $0x8] sm:$0xff]  ;;  %v127_v21 = vld [vmem:[#allocation8 + $0x80] sm:$0xff] }
 0x25c   :  { %2049 = vmatprep.subr.mxu0 %v1668_v22  ;;  %2126 = vmatprep.subr.mxu1 %v1796_v23  ;;  %v111_v22 = vld [vmem:[#allocation8] sm:$0xff]  ;;  %v2948_v23 = vpop.f32.mrf.mxu0 }
 0x25d   :  { %2050 = vmatpush2.msra.mxu0 %v1667_v24  ;;  %2127 = vmatpush2.msra.mxu1 %v1795_v26  ;;  %v2950_v24 = vpop.f32.mrf.mxu1 }
 0x25e   :  { %2051 = vmatprep.subr.mxu0 %v1664_v62  ;;  %2128 = vmatprep.subr.mxu1 %v1792_v29  ;;  %v2952_v26 = vpop.f32.mrf.mxu0 }
 0x25f   :  { %2052 = vmatpush2.msra.mxu0 %v1663_v32  ;;  %2129 = vmatpush2.msra.mxu1 %v1791_v31  ;;  %v2954_v62 = vpop.f32.mrf.mxu1 }
 0x260   :  { %2053 = vmatprep.subr.mxu0 %v1660_v37  ;;  %2130 = vmatprep.subr.mxu1 %v1788_v38  ;;  %v2956_v29 = vpop.f32.mrf.mxu0 }
 0x261   :  { %2054 = vmatpush2.msra.mxu0 %v1659_v39  ;;  %2131 = vmatpush2.msra.mxu1 %v1787_v41  ;;  %v2958_v32 = vpop.f32.mrf.mxu1 }
 0x262   :  { %2055 = vmatprep.subr.mxu0 %v1656_v40  ;;  %2132 = vmatprep.subr.mxu1 %v1784_v42  ;;  %v2960_v31 = vpop.f32.mrf.mxu0 }
 0x263   :  { %2056 = vmatpush2.msra.mxu0 %v1655_v43  ;;  %2133 = vmatpush2.msra.mxu1 %v1783_v44  ;;  %v2962_v37 = vpop.f32.mrf.mxu1 }
 0x264   :  { %2057 = vmatprep.subr.mxu0 %v1652_v47  ;;  %2134 = vmatprep.subr.mxu1 %v1780_v48 }
 0x265   :  { %2058 = vmatpush2.msra.mxu0 %v1651_v51  ;;  %2135 = vmatpush2.msra.mxu1 %v1779_v52 }
 0x266   :  { %2060 = vmatmul.mubr.f32.vlgmr.msra.gmra.mxu0 %v2887_v0  ;;  %2137 = vmatmul.mubr.f32.vlgmr.msra.gmra.mxu1 %v2891_v36  ;;  %v140_v0 = vld [vmem:[#allocation8 + $0xe8] sm:$0xff] }
 0x267   :  { %2421 = vmatprep.mubr.msk.f32.mxu0 %vm193_vm4, %v2902_v1  ;;  %2423 = vmatprep.mubr.msk.f32.mxu1 %vm193_vm4, %v2910_v6  ;;  %v124_v36 = vld [vmem:[#allocation8 + $0x68] sm:$0xff]  ;;  %v139_v1 = vld [vmem:[#allocation8 + $0xe0] sm:$0xff]  ;;  %v138_v6 = vld [vmem:[#allocation8 + $0xd8] sm:$0xff] }
 0x268   :  { %2425 = vmatprep.subr.mxu0 %v142_v25  ;;  %v174_v25 = vld [vmem:[#allocation8 + $0x1f8] sm:$0xff] }
 0x269   :  { %2426 = vmatpush3.msra.mxu0 %v126_v8  ;;  %2460 = vmatprep.subr.mxu1 %v174_v25 }
 0x26a   :  { %2422 = vmatmul.mubr.msk.f32.gmra.mxu0 %vm193_vm4, %v2920_v7  ;;  %2424 = vmatmul.mubr.msk.f32.gmra.mxu1 %vm193_vm4, %v2924_v59  ;;  %v136_v7 = vld [vmem:[#allocation8 + $0xc8] sm:$0xff]  ;;  %v135_v59 = vld [vmem:[#allocation8 + $0xc0] sm:$0xff] }
 0x26b   :  { %2427 = vmatprep.subr.mxu0 %v141_v60  ;;  %v158_v60 = vld [vmem:[#allocation8 + $0x178] sm:$0xff] }
 0x26c   :  { %2428 = vmatpush3.msra.mxu0 %v125_v9  ;;  %2461 = vmatpush3.msra.mxu1 %v158_v60  ;;  %v2988_v60 = vld [vmem:[#allocation10] sm:$0x77] }
 0x26d   :  { %2429 = vmatprep.subr.mxu0 %v140_v0  ;;  %v173_v0 = vld [vmem:[#allocation8 + $0x1f0] sm:$0xff] }
 0x26e   :  { %2430 = vmatpush3.msra.mxu0 %v124_v36  ;;  %2462 = vmatprep.subr.mxu1 %v173_v0 }
 0x26f   :  { %2431 = vmatprep.subr.mxu0 %v139_v1  ;;  %v157_v1 = vld [vmem:[#allocation8 + $0x170] sm:$0xff] }
 0x270   :  { %2432 = vmatpush3.msra.mxu0 %v123_v13  ;;  %2463 = vmatpush3.msra.mxu1 %v157_v1  ;;  %v172_v13 = vld [vmem:[#allocation8 + $0x1e8] sm:$0xff] }
 0x271   :  { %2433 = vmatprep.subr.mxu0 %v138_v6  ;;  %2464 = vmatprep.subr.mxu1 %v172_v13  ;;  %v156_v6 = vld [vmem:[#allocation8 + $0x168] sm:$0xff] }
 0x272   :  { %2434 = vmatpush3.msra.mxu0 %v122_v63  ;;  %2465 = vmatpush3.msra.mxu1 %v156_v6  ;;  %v155_v63 = vld [vmem:[#allocation8 + $0x160] sm:$0xff] }
 0x273   :  { %2435 = vmatprep.subr.mxu0 %v137_v57  ;;  %v170_v57 = vld [vmem:[#allocation8 + $0x1d8] sm:$0xff] }
 0x274   :  { %2436 = vmatpush3.msra.mxu0 %v121_v58  ;;  %v154_v58 = vld [vmem:[#allocation8 + $0x158] sm:$0xff] }
 0x275   :  { %2437 = vmatprep.subr.mxu0 %v136_v7  ;;  %v153_v7 = vld [vmem:[#allocation8 + $0x150] sm:$0xff] }
 0x276   :  { %2438 = vmatpush3.msra.mxu0 %v120_v49  ;;  %v168_v49 = vld [vmem:[#allocation8 + $0x1c8] sm:$0xff] }
 0x277   :  { %2439 = vmatprep.subr.mxu0 %v135_v59  ;;  %v152_v59 = vld [vmem:[#allocation8 + $0x148] sm:$0xff] }
 0x278   :  { %2440 = vmatpush3.msra.mxu0 %v119_v11  ;;  %v167_v11 = vld [vmem:[#allocation8 + $0x1c0] sm:$0xff] }
 0x279   :  { %2441 = vmatprep.subr.mxu0 %v134_v12  ;;  %v151_v12 = vld [vmem:[#allocation8 + $0x140] sm:$0xff] }
 0x27a   :  { %2442 = vmatpush3.msra.mxu0 %v118_v53  ;;  %v166_v53 = vld [vmem:[#allocation8 + $0x1b8] sm:$0xff] }
 0x27b   :  { %2443 = vmatprep.subr.mxu0 %v133_v3  ;;  %v150_v3 = vld [vmem:[#allocation8 + $0x138] sm:$0xff] }
 0x27c   :  { %2444 = vmatpush3.msra.mxu0 %v117_v54  ;;  %v165_v54 = vld [vmem:[#allocation8 + $0x1b0] sm:$0xff] }
 0x27d   :  { %2445 = vmatprep.subr.mxu0 %v132_v4  ;;  %v149_v4 = vld [vmem:[#allocation8 + $0x130] sm:$0xff] }
 0x27e   :  { %2446 = vmatpush3.msra.mxu0 %v116_v61  ;;  %v164_v61 = vld [vmem:[#allocation8 + $0x1a8] sm:$0xff] }
 0x27f   :  { %2447 = vmatprep.subr.mxu0 %v131_v14  ;;  %v148_v14 = vld [vmem:[#allocation8 + $0x128] sm:$0xff] }
 0x280   :  { %2448 = vmatpush3.msra.mxu0 %v115_v15  ;;  %v163_v15 = vld [vmem:[#allocation8 + $0x1a0] sm:$0xff] }
 0x281   :  { %2449 = vmatprep.subr.mxu0 %v130_v16  ;;  %v147_v16 = vld [vmem:[#allocation8 + $0x120] sm:$0xff] }
 0x282   :  { %2450 = vmatpush3.msra.mxu0 %v114_v17  ;;  %v162_v17 = vld [vmem:[#allocation8 + $0x198] sm:$0xff] }
 0x283   :  { %2451 = vmatprep.subr.mxu0 %v129_v18  ;;  %v146_v18 = vld [vmem:[#allocation8 + $0x118] sm:$0xff] }
 0x284   :  { %2452 = vmatpush3.msra.mxu0 %v113_v28  ;;  %v161_v28 = vld [vmem:[#allocation8 + $0x190] sm:$0xff] }
 0x285   :  { %2453 = vmatprep.subr.mxu0 %v128_v19  ;;  %v145_v19 = vld [vmem:[#allocation8 + $0x110] sm:$0xff] }
 0x286   :  { %2454 = vmatpush3.msra.mxu0 %v112_v20  ;;  %v160_v20 = vld [vmem:[#allocation8 + $0x188] sm:$0xff] }
 0x287   :  { %2455 = vmatprep.subr.mxu0 %v127_v21  ;;  %v144_v21 = vld [vmem:[#allocation8 + $0x108] sm:$0xff] }
 0x288   :  { %2456 = vmatpush3.msra.mxu0 %v111_v22  ;;  %v159_v22 = vld [vmem:[#allocation8 + $0x180] sm:$0xff] }
 0x29e   :  { %v1471_v38 = vpop.f32.mrf.mxu0  ;;  %v1548_v39 = vpop.f32.mrf.mxu1 }
 0x29f   :  { %v1472_v41 = vadd.f32 %v1471_v38, %v2870_v34  ;;  %v143_v38 = vld [vmem:[#allocation8 + $0x100] sm:$0xff] }
 0x2a0   :  { %v1473_v40 = vpop.f32.mrf.mxu0  ;;  %v1550_v42 = vpop.f32.mrf.mxu1 }
 0x2a1   :  { %v2965_v43 = vadd.f32 %v1548_v39, %v1472_v41  ;;  %v1474_v44 = vadd.f32 %v1473_v40, %v2873_v27  ;;  %v1087_v39 = vadd.f32 %v2856_v35, %v2854_v33  ;;  %v2979_v41 = vsub.s32 1, %v2702_v30 }
 0x2a2   :  { %v1089_v40 = vadd.f32 %v2860_v46, %v2858_v45  ;;  %v1095_v35 = vadd.f32 %v2868_v5, %v2866_v2 }
 0x2a3   :  { %v2968_v47 = vadd.f32 %v1550_v42, %v1474_v44  ;;  %v1318_v42 = vadd.f32 %v2948_v23, %v1087_v39  ;;  %v2163_v44 = vsub.s32 5, %v2702_v30  ;;  %v2160_v33 = vrot.slane %v2988_v60, %v2979_v41  ;;  %v2507_v39 = vld [vmem:[#allocation10 + $0x8] sm:$0x77] }
 0x2a4   :  { %v1477_v48 = vpop.f32.mrf.mxu0  ;;  %v1554_v51 = vpop.f32.mrf.mxu1  ;;  %v1320_v25 = vadd.f32 %v2952_v26, %v1089_v40  ;;  %v1326_v26 = vadd.f32 %v2960_v31, %v1095_v35  ;;  %v2168_v40 = vrot.slane %v2507_v39, %v2979_v41 }
 0x2a5   :  { %v1478_v52 = vadd.f32 %v1477_v48, %v2879_v50  ;;  %v171_v50 = vld [vmem:[#allocation8 + $0x1e0] sm:$0xff]  ;;  %v1395_v23 = vadd.f32 %v2950_v24, %v1318_v42  ;;  %v2180_v1 = vrot.slane %v2160_v33, %v2979_v41  ;;  %v2172_v42 = vrot.slane %v2507_v39, %v2163_v44 }
 0x2a6   :  { %v1479_v8 = vpop.f32.mrf.mxu0  ;;  %v1556_v36 = vpop.f32.mrf.mxu1  ;;  %2466 = vmatprep.subr.mxu1 %v171_v50  ;;  %v2188_v35 = vrot.slane %v2168_v40, %v2979_v41 }
 0x2a7   :  { %v2971_v9 = vadd.f32 %v1554_v51, %v1478_v52  ;;  %v1480_v34 = vadd.f32 %v1479_v8, %v2883_v10  ;;  %2467 = vmatpush3.msra.mxu1 %v155_v63  ;;  %v169_v10 = vld [vmem:[#allocation8 + $0x1d0] sm:$0xff]  ;;  %v1093_v52 = vadd.f32 %v2864_v56, %v2862_v55  ;;  %v2164_v55 = vrot.slane %v2988_v60, %v2163_v44 }
 0x2a8   :  { %2468 = vmatprep.subr.mxu1 %v170_v57  ;;  %v1397_v56 = vadd.f32 %v2954_v62, %v1320_v25  ;;  %v1403_v57 = vadd.f32 %v2962_v37, %v1326_v26 }
 0x2a9   :  { %v2974_v27 = vadd.f32 %v1556_v36, %v1480_v34  ;;  %2469 = vmatpush3.msra.mxu1 %v154_v58  ;;  %v1324_v34 = vadd.f32 %v2956_v29, %v1093_v52  ;;  %v2184_v50 = vrot.slane %v2164_v55, %v2979_v41 }
 0x2aa   :  { %2470 = vmatprep.subr.mxu1 %v169_v10 }
 0x2ab   :  { %2471 = vmatpush3.msra.mxu1 %v153_v7  ;;  %v1401_v2 = vadd.f32 %v2958_v32, %v1324_v34 }
 0x2ac   :  { %2472 = vmatprep.subr.mxu1 %v168_v49 }
 0x2ad   :  { %2473 = vmatpush3.msra.mxu1 %v152_v59 }
 0x2ae   :  { %2474 = vmatprep.subr.mxu1 %v167_v11 }
 0x2af   :  { %2475 = vmatpush3.msra.mxu1 %v151_v12 }
 0x2b0   :  { %2476 = vmatprep.subr.mxu1 %v166_v53 }
 0x2b1   :  { %2477 = vmatpush3.msra.mxu1 %v150_v3 }
 0x2b2   :  { %2478 = vmatprep.subr.mxu1 %v165_v54 }
 0x2b3   :  { %2479 = vmatpush3.msra.mxu1 %v149_v4 }
 0x2b4   :  { %2480 = vmatprep.subr.mxu1 %v164_v61 }
 0x2b5   :  { %2481 = vmatpush3.msra.mxu1 %v148_v14 }
 0x2b6   :  { %2482 = vmatprep.subr.mxu1 %v163_v15 }
 0x2b7   :  { %2483 = vmatpush3.msra.mxu1 %v147_v16 }
 0x2b8   :  { %2484 = vmatprep.subr.mxu1 %v162_v17 }
 0x2b9   :  { %2485 = vmatpush3.msra.mxu1 %v146_v18 }
 0x2ba   :  { %2486 = vmatprep.subr.mxu1 %v161_v28 }
 0x2bb   :  { %2487 = vmatpush3.msra.mxu1 %v145_v19 }
 0x2bc   :  { %2488 = vmatprep.subr.mxu1 %v160_v20 }
 0x2bd   :  { %2489 = vmatpush3.msra.mxu1 %v144_v21 }
 0x2be   :  { %2490 = vmatprep.subr.mxu1 %v159_v22 }
 0x2bf   :  { %2491 = vmatpush3.msra.mxu1 %v143_v38 }
 0x2e2   :  { %v1907_v48 = vpop.f32.mrf.mxu0  ;;  %v1984_v51 = vpop.f32.mrf.mxu1 }
 0x2e3   :  { %v1985_v8 = vadd.f32 %v1984_v51, %v1907_v48 }
 0x2e4   :  { %v1909_v45 = vpop.f32.mrf.mxu0  ;;  %v1986_v46 = vpop.f32.mrf.mxu1 }
 0x2e5   :  { %v1987_v0 = vadd.f32 %v1986_v46, %v1909_v45  ;;  %v2149_v36 = vadd.f32 %v1985_v8, %v1395_v23  ;;  %v2192_v46 = vrot.slane %v2172_v42, %v2979_v41 }
 0x2e7   :  { %v2150_v5 = vadd.f32 %v1987_v0, %v1397_v56  ;;  %v2193_v58 = vadd.f32 %v2180_v1, %v2149_v36 }
 0x2e8   :  { %v1913_v13 = vpop.f32.mrf.mxu0  ;;  %v1990_v6 = vpop.f32.mrf.mxu1 }
 0x2e9   :  { %v1991_v24 = vadd.f32 %v1990_v6, %v1913_v13  ;;  %v2194_v7 = vadd.f32 %v2184_v50, %v2150_v5  ;;  %v2201_v59 = vmax.f32 %v2193_v58, 0.0 }
 0x2ea   :  { %v1915_v63 = vpop.f32.mrf.mxu0  ;;  %v1992_v29 = vpop.f32.mrf.mxu1 }
 0x2eb   :  { %v2153_v10 = vadd.f32 %v1991_v24, %v1401_v2  ;;  %v1993_v62 = vadd.f32 %v1992_v29, %v1915_v63  ;;  %v2202_v53 = vmax.f32 %v2194_v7, 0.0 }
 0x2ed   :  { %v2197_v31 = vadd.f32 %v2180_v1, %v2153_v10  ;;  %v2154_v49 = vadd.f32 %v1993_v62, %v1403_v57 }
 0x2ef   :  { %v2205_v11 = vmax.f32 %v2197_v31, 0.0  ;;  %v2198_v12 = vadd.f32 %v2184_v50, %v2154_v49 }
 0x2f1   :  { %v2209_v3 = vadd.f32 %v2205_v11, %v2201_v59  ;;  %v2206_v32 = vmax.f32 %v2198_v12, 0.0 }
 0x2f3   :  { %v2210_v54 = vrot.slane %v2209_v3, 4  ;;  %v2216_v4 = vadd.f32 %v2206_v32, %v2202_v53  ;;  %v2244_v32 = vsub.s32 2, %v2702_v30 }
 0x2f5   :  { %v2211_v61 = vadd.f32 %v2210_v54, %v2209_v3  ;;  %v2217_v14 = vrot.slane %v2216_v4, 4 }
 0x2f7   :  { %v2212_v15 = vrot.slane %v2211_v61, 2  ;;  %v2218_v16 = vadd.f32 %v2217_v14, %v2216_v4  ;;  %v2245_v4 = vrot.slane %v2988_v60, %v2244_v32 }
 0x2f9   :  { %v2213_v17 = vadd.f32 %v2212_v15, %v2211_v61  ;;  %v2219_v37 = vrot.slane %v2218_v16, 2 }
 0x2fb   :  { %v2214_v18 = vrot.slane %v2213_v17, 1  ;;  %v2220_v28 = vadd.f32 %v2219_v37, %v2218_v16 }
 0x2fd   :  { %v2221_v19 = vrot.slane %v2220_v28, 1  ;;  %v2215_v20 = vadd.f32 %v2214_v18, %v2213_v17 }
 0x2ff   :  { %v2222_v21 = vadd.f32 %v2221_v19, %v2220_v28  ;;  %v2238_v38 = vmul.f32 0.0625, %v2215_v20 }
 0x301   :  { %v2239_v22 = vmul.f32 0.0625, %v2222_v21 }
 0x303   :  { %2311 = vmatprep.mubr.f32.mxu0 %v2239_v22 }
 0x304   :  { %2312 = vmatmul.mubr.f32.vlgmr.msra.gmra.mxu0 %v2238_v38 }
 0x326   :  { %v2061_v48 = vpop.f32.mrf.mxu0  ;;  %v2138_v51 = vpop.f32.mrf.mxu1 }
 0x327   :  { %v2139_v52 = vadd.f32 %v2138_v51, %v2061_v48 }
 0x328   :  { %v2063_v25 = vpop.f32.mrf.mxu0  ;;  %v2140_v8 = vpop.f32.mrf.mxu1 }
 0x329   :  { %v2151_v33 = vadd.f32 %v2139_v52, %v2965_v43  ;;  %v2141_v45 = vadd.f32 %v2140_v8, %v2063_v25 }
 0x32a   :  { %v2067_v23 = vpop.f32.mrf.mxu0  ;;  %v2144_v34 = vpop.f32.mrf.mxu1 }
 0x32b   :  { %v2152_v0 = vadd.f32 %v2141_v45, %v2968_v47  ;;  %v2145_v55 = vadd.f32 %v2144_v34, %v2067_v23  ;;  %v2195_v44 = vadd.f32 %v2188_v35, %v2151_v33 }
 0x32c   :  { %v2069_v56 = vpop.f32.mrf.mxu0  ;;  %v2146_v26 = vpop.f32.mrf.mxu1 }
 0x32d   :  { %v2196_v36 = vadd.f32 %v2192_v46, %v2152_v0  ;;  %v2155_v1 = vadd.f32 %v2145_v55, %v2971_v9  ;;  %v2147_v13 = vadd.f32 %v2146_v26, %v2069_v56  ;;  %v2203_v2 = vmax.f32 %v2195_v44, 0.0 }
 0x32f   :  { %v2199_v6 = vadd.f32 %v2188_v35, %v2155_v1  ;;  %v2156_v43 = vadd.f32 %v2147_v13, %v2974_v27  ;;  %v2204_v24 = vmax.f32 %v2196_v36, 0.0 }
 0x331   :  { %v2207_v5 = vmax.f32 %v2199_v6, 0.0  ;;  %v2200_v50 = vadd.f32 %v2192_v46, %v2156_v43 }
 0x333   :  { %v2223_v41 = vadd.f32 %v2207_v5, %v2203_v2  ;;  %v2208_v63 = vmax.f32 %v2200_v50, 0.0 }
 0x335   :  { %v2224_v29 = vrot.slane %v2223_v41, 4  ;;  %v2230_v57 = vadd.f32 %v2208_v63, %v2204_v24 }
 0x337   :  { %v2225_v47 = vadd.f32 %v2224_v29, %v2223_v41  ;;  %v2231_v58 = vrot.slane %v2230_v57, 4 }
 0x339   :  { %v2226_v10 = vrot.slane %v2225_v47, 2  ;;  %v2232_v62 = vadd.f32 %v2231_v58, %v2230_v57 }
 0x33b   :  { %v2227_v7 = vadd.f32 %v2226_v10, %v2225_v47  ;;  %v2233_v31 = vrot.slane %v2232_v62, 2 }
 0x33d   :  { %v2228_v49 = vrot.slane %v2227_v7, 1  ;;  %v2234_v9 = vadd.f32 %v2233_v31, %v2232_v62 }
 0x33f   :  { %v2235_v59 = vrot.slane %v2234_v9, 1  ;;  %v2229_v11 = vadd.f32 %v2228_v49, %v2227_v7 }
 0x341   :  { %v2236_v12 = vadd.f32 %v2235_v59, %v2234_v9  ;;  %v2240_v53 = vmul.f32 0.0625, %v2229_v11 }
 0x343   :  { %v2241_v27 = vmul.f32 0.0625, %v2236_v12 }
 0x345   :  { %2381 = vmatprep.mubr.f32.mxu1 %v2241_v27 }
 0x346   :  { %2382 = vmatmul.mubr.f32.vlgmr.msra.gmra.mxu1 %v2240_v53 }
 0x3c4   :  { %v2457_v3 = vpop.f32.mrf.mxu0 }
 0x3c6   :  { %v2458_v54 = vpop.f32.mrf.mxu0 }
 0x3c7   :  { %v2459_v61 = vadd.f32 %v2458_v54, %v2457_v3 }
 0x3c9   :  { %v2314_v16 = vadd.f32 %v2459_v61, %v2245_v4 }
 0x406   :  { %v2492_v14 = vpop.f32.mrf.mxu1 }
 0x408   :  { %v2493_v15 = vpop.f32.mrf.mxu1 }
 0x409   :  { %v2494_v17 = vadd.f32 %v2493_v15, %v2492_v14 }
 0x40b   :  { %v2384_v37 = vadd.f32 %v2494_v17, %v2314_v16 }
 0x40d   :  { %2387 = vst [vmem:[#allocation11] sm:$0x1] %v2384_v37 }
 0x40e   :  { %2619 = shalt.err (!%p2616_p1)
}
 0x40f   :  { %2397 = dma.vmem_to_hbm [thread:$0]  %s2395_s4, 16, %s3020_s5, [#allocation4]  }
 0x410   :  { %2634 = dma.done.wait [#allocation4], 16  }
 0x411   :  { %2635 = vsyncadd [#allocation4], 4294967280 }
 0x412   :  { %2401 = vsyncpa [#allocation3], 1 }
 0x413   :  { %2402 = vsyncpa [#allocation6], 1 }
 0x414   :  { %2403 = vsyncpa [#allocation9], 1 }
 0x415   :  { %2404 = vsyncpa [#allocation4], 1 }

</bundles_post_ra>
